<compile_context>
chip_gen: v7x
topology: tpu7x:2x2x1
jax: 0.10.0
libtpu: 0.0.40
codegen_flags: <defaults>
</compile_context>

<pallas_src>
import functools

import jax
import jax.numpy as jnp
from jax import lax
from jax.experimental import pallas as pl
from jax.experimental.pallas import tpu as pltpu


def _rup(a, b):
    return (a + b - 1) // b * b


# ----------------------------------------------------------------------------
# Pallas kernel 1: tiled bf16 MXU matmul + f32 bias epilogue
# (used for every conv via im2col and all 1x1 convs).
# ----------------------------------------------------------------------------
def _matmul_bias_1k_kernel(a_ref, b_ref, bias_ref, o_ref):
    # Single K step: no accumulator scratch, write the output tile directly.
    acc = jnp.dot(a_ref[...], b_ref[...], preferred_element_type=jnp.float32)
    o_ref[...] = (acc + bias_ref[...]).astype(o_ref.dtype)


def _matmul_bias_kernel(a_ref, b_ref, bias_ref, o_ref, acc_ref):
    @pl.when(pl.program_id(2) == 0)
    def _():
        acc_ref[...] = jnp.zeros_like(acc_ref)

    acc_ref[...] += jnp.dot(a_ref[...], b_ref[...],
                            preferred_element_type=jnp.float32)

    @pl.when(pl.program_id(2) == pl.num_programs(2) - 1)
    def _():
        o_ref[...] = (acc_ref[...] + bias_ref[...]).astype(o_ref.dtype)


def _pick_tiles(M, N, K):
    """Adaptive tiles: <=256 wide output tiles (safe on v5e/v6e/v7x), full-K when small."""
    Mp8 = _rup(M, 8)
    if Mp8 <= 256:
        TM, Mp = Mp8, Mp8
    else:
        TM, Mp = 256, _rup(M, 256)
    Np = _rup(N, 128)
    if Np <= 256:
        TN = Np
    elif Np % 256 == 0:
        TN = 256
    else:
        TN = 128
    Kp = _rup(K, 128)
    if Kp <= 1024:
        TK = Kp                      # single K step for all shapes in this model
    else:
        TK = 512 if Kp % 512 == 0 else 128
    return TM, TN, TK, Mp, Np, Kp


def pallas_matmul(a, b, bias=None, out_dtype=jnp.bfloat16):
    """a: (M, K), b: (K, N)  (cast to bf16 MXU operands), bias: (N,) f32 or None."""
    M, K = a.shape
    _, N = b.shape
    TM, TN, TK, Mp, Np, Kp = _pick_tiles(M, N, K)

    ap = a.astype(jnp.bfloat16)
    bp = b.astype(jnp.bfloat16)
    if (Mp, Kp) != (M, K):
        ap = jnp.pad(ap, ((0, Mp - M), (0, Kp - K)))
    if (Kp, Np) != (K, N):
        bp = jnp.pad(bp, ((0, Kp - K), (0, Np - N)))
    if bias is None:
        biasp = jnp.zeros((1, Np), jnp.float32)
    else:
        biasp = jnp.pad(bias.astype(jnp.float32).reshape(1, N),
                        ((0, 0), (0, Np - N)))

    cost = pl.CostEstimate(
        flops=2 * Mp * Np * Kp,
        transcendentals=0,
        bytes_accessed=(Mp * Kp + Kp * Np) * 2 + Np * 4
        + Mp * Np * jnp.dtype(out_dtype).itemsize)

    if Kp == TK:
        out = pl.pallas_call(
            _matmul_bias_1k_kernel,
            out_shape=jax.ShapeDtypeStruct((Mp, Np), out_dtype),
            grid_spec=pltpu.PrefetchScalarGridSpec(
                num_scalar_prefetch=0,
                grid=(Mp // TM, Np // TN),
                in_specs=[pl.BlockSpec((TM, TK), lambda i, j: (i, 0)),
                          pl.BlockSpec((TK, TN), lambda i, j: (0, j)),
                          pl.BlockSpec((1, TN), lambda i, j: (0, j))],
                out_specs=pl.BlockSpec((TM, TN), lambda i, j: (i, j))),
            compiler_params=pltpu.CompilerParams(
                dimension_semantics=("parallel", "parallel")),
            cost_estimate=cost,
        )(ap, bp, biasp)
    else:
        out = pl.pallas_call(
            _matmul_bias_kernel,
            out_shape=jax.ShapeDtypeStruct((Mp, Np), out_dtype),
            grid_spec=pltpu.PrefetchScalarGridSpec(
                num_scalar_prefetch=0,
                grid=(Mp // TM, Np // TN, Kp // TK),
                in_specs=[pl.BlockSpec((TM, TK), lambda i, j, k: (i, k)),
                          pl.BlockSpec((TK, TN), lambda i, j, k: (k, j)),
                          pl.BlockSpec((1, TN), lambda i, j, k: (0, j))],
                out_specs=pl.BlockSpec((TM, TN), lambda i, j, k: (i, j)),
                scratch_shapes=[pltpu.VMEM((TM, TN), jnp.float32)]),
            compiler_params=pltpu.CompilerParams(
                dimension_semantics=("parallel", "parallel", "arbitrary")),
            cost_estimate=cost,
        )(ap, bp, biasp)

    if (Mp, Np) != (M, N):
        out = out[:M, :N]
    return out


# ----------------------------------------------------------------------------
# Pallas kernel 2: fused attention (q.k^T -> softmax -> .v), batch on the grid.
# ----------------------------------------------------------------------------
def _attn_kernel(q_ref, k_ref, v_ref, o_ref, *, scale):
    q = q_ref[0]                                   # (S, C) bf16
    k = k_ref[0]
    v = v_ref[0]
    s = lax.dot_general(q, k, (((1,), (1,)), ((), ())),
                        preferred_element_type=jnp.float32) * scale   # (S, S) f32
    m = jnp.max(s, axis=-1, keepdims=True)
    p = jnp.exp(s - m)
    p = p * pl.reciprocal(jnp.sum(p, axis=-1, keepdims=True), approx=True)
    o = jnp.dot(p.astype(v.dtype), v, preferred_element_type=jnp.float32)
    o_ref[0] = o.astype(o_ref.dtype)


# ----------------------------------------------------------------------------
# Pallas kernel 3: vector quantizer, tiled over M; codebook resident.
# ----------------------------------------------------------------------------
def _vq_kernel(z_ref, e_ref, e2_ref, zq_ref, loss_ref, *, m_real, k_real, tm):
    i = pl.program_id(0)

    @pl.when(i == 0)
    def _():
        loss_ref[...] = jnp.zeros_like(loss_ref)

    z_bf = z_ref[...]                                  # (TM, Dp) bf16
    z = z_bf.astype(jnp.float32)
    e = e_ref[...]                                     # (Kp, Dp) f32
    e2 = e2_ref[...]                                   # (1, Kp) f32
    z2 = jnp.sum(z * z, axis=1, keepdims=True)         # (TM, 1) f32
    # -2 * z . e^T on the MXU in bf16; correction terms stay f32.
    cross = lax.dot_general(z_bf, e.astype(jnp.bfloat16),
                            (((1,), (1,)), ((), ())),
                            preferred_element_type=jnp.float32)      # (TM, Kp)
    d = z2 - 2.0 * cross + e2
    TMb, Kp = d.shape
    col = lax.broadcasted_iota(jnp.int32, (TMb, Kp), 1)
    d = jnp.where(col < k_real, d, jnp.inf)            # mask padded codebook cols
    idx = jnp.argmin(d, axis=1, keepdims=True)         # (TM, 1)
    onehot = (col == idx).astype(jnp.float32)          # (TM, Kp)
    zq = jnp.dot(onehot, e, preferred_element_type=jnp.float32)      # exact f32 gather
    zq_ref[...] = zq.astype(zq_ref.dtype)

    diff = zq - z
    rows = lax.broadcasted_iota(jnp.int32, diff.shape, 0) + i * tm
    sq = jnp.where(rows < m_real, diff * diff, 0.0)
    loss_ref[...] += jnp.sum(sq, axis=(0, 1), keepdims=True)


def vector_quantize(z_nhwc, codebook, beta=0.25):
    B, H, W, C = z_nhwc.shape
    M, D = B * H * W, C
    K = codebook.shape[0]
    Dp, Kp = _rup(D, 128), _rup(K, 128)
    TMv = min(256, _rup(M, 8))
    Mp = _rup(M, TMv)

    zf = z_nhwc.reshape(M, D).astype(jnp.bfloat16)
    zp = jnp.pad(zf, ((0, Mp - M), (0, Dp - D)))
    ep = jnp.pad(codebook.astype(jnp.float32), ((0, Kp - K), (0, Dp - D)))
    e2 = jnp.sum(codebook.astype(jnp.float32) ** 2, axis=1).reshape(1, K)
    e2p = jnp.pad(e2, ((0, 0), (0, Kp - K)))

    cost = pl.CostEstimate(
        flops=4 * Mp * Kp * Dp, transcendentals=0,
        bytes_accessed=Mp * Dp * 2 + Kp * Dp * 4 + Kp * 4 + Mp * Dp * 2 + 4)

    zq_p, loss_sum = pl.pallas_call(
        functools.partial(_vq_kernel, m_real=M, k_real=K, tm=TMv),
        out_shape=(jax.ShapeDtypeStruct((Mp, Dp), jnp.bfloat16),
                   jax.ShapeDtypeStruct((1, 1), jnp.float32)),
        grid_spec=pltpu.PrefetchScalarGridSpec(
            num_scalar_prefetch=0,
            grid=(Mp // TMv,),
            in_specs=[pl.BlockSpec((TMv, Dp), lambda i: (i, 0)),
                      pl.BlockSpec((Kp, Dp), lambda i: (0, 0)),
                      pl.BlockSpec((1, Kp), lambda i: (0, 0))],
            out_specs=(pl.BlockSpec((TMv, Dp), lambda i: (i, 0)),
                       pl.BlockSpec((1, 1), lambda i: (0, 0)))),
        compiler_params=pltpu.CompilerParams(
            dimension_semantics=("arbitrary",)),
        cost_estimate=cost,
    )(zp, ep, e2p)

    zq = zq_p[:M, :D].reshape(B, H, W, C)
    # forward value: beta*mean((sg(zq)-z)^2) + mean((zq-sg(z))^2) = (1+beta)*MSE
    loss = (1.0 + beta) * loss_sum[0, 0] / (M * D)
    # straight-through estimator only affects gradients; forward value is zq.
    return zq, loss


# ----------------------------------------------------------------------------
# JAX glue: conv-as-matmul (patch extraction), GroupNorm(+swish), blocks
# ----------------------------------------------------------------------------
def conv2d(x, p, k, stride=1, padding=None, out_dtype=jnp.bfloat16):
    """x: (B,H,W,Cin) NHWC bf16; p['w']: (Cin*k*k, Cout) bf16 (layout [cin][kh][kw]);
    p['b']: (Cout,) f32."""
    B, H, W, cin = x.shape
    cout = p['w'].shape[1]
    x = x.astype(jnp.bfloat16)
    if k == 1 and stride == 1:
        Ho, Wo = H, W
        patches = x.reshape(B * H * W, cin)
    else:
        pad = ((k // 2, k // 2), (k // 2, k // 2)) if padding is None else padding
        patches = lax.conv_general_dilated_patches(
            x, (k, k), (stride, stride), pad,
            dimension_numbers=('NHWC', 'HWIO', 'NHWC'))
        _, Ho, Wo, F = patches.shape
        patches = patches.reshape(B * Ho * Wo, F)
    out = pallas_matmul(patches, p['w'], p['b'], out_dtype=out_dtype)
    return out.reshape(B, Ho, Wo, cout)


def group_norm(x, p, num_groups=32, eps=1e-6, swish_act=False):
    B, H, W, C = x.shape
    G = num_groups
    xf = x.astype(jnp.float32).reshape(B, H * W, G, C // G)
    mean = xf.mean(axis=(1, 3), keepdims=True)
    var = xf.var(axis=(1, 3), keepdims=True)
    xn = ((xf - mean) * lax.rsqrt(var + eps)).reshape(B, H, W, C)
    y = xn * p['g'] + p['b']
    if swish_act:
        y = y * jax.nn.sigmoid(y)
    return y.astype(jnp.bfloat16)


def resnet_block(x, p):
    h = group_norm(x, p['n1'], swish_act=True)
    h = conv2d(h, p['c1'], k=3)
    h = group_norm(h, p['n2'], swish_act=True)
    # dropout: identity at inference
    h = conv2d(h, p['c2'], k=3)
    if 'sc' in p:
        x = conv2d(x, p['sc'], k=1)
    return x + h


def attn_block(x, p):
    B, H, W, C = x.shape
    S = H * W
    h = group_norm(x, p['n'])
    q = conv2d(h, p['q'], k=1).reshape(B, S, C)
    kk = conv2d(h, p['k'], k=1).reshape(B, S, C)
    v = conv2d(h, p['v'], k=1).reshape(B, S, C)
    scale = float(C) ** (-0.5)
    cost = pl.CostEstimate(flops=4 * B * S * S * C, transcendentals=B * S * S,
                           bytes_accessed=4 * B * S * C * 2)
    ho = pl.pallas_call(
        functools.partial(_attn_kernel, scale=scale),
        out_shape=jax.ShapeDtypeStruct((B, S, C), jnp.bfloat16),
        grid_spec=pltpu.PrefetchScalarGridSpec(
            num_scalar_prefetch=0,
            grid=(B,),
            in_specs=[pl.BlockSpec((1, S, C), lambda b: (b, 0, 0)),
                      pl.BlockSpec((1, S, C), lambda b: (b, 0, 0)),
                      pl.BlockSpec((1, S, C), lambda b: (b, 0, 0))],
            out_specs=pl.BlockSpec((1, S, C), lambda b: (b, 0, 0))),
        compiler_params=pltpu.CompilerParams(
            dimension_semantics=("parallel",)),
        cost_estimate=cost,
    )(q, kk, v).reshape(B, H, W, C)
    ho = conv2d(ho, p['po'], k=1)
    return x + ho


# ----------------------------------------------------------------------------
# Parameter initialization (deterministic, synthetic); weights stored directly
# in the matmul layout matching conv_general_dilated_patches feature ordering.
# ----------------------------------------------------------------------------
class KeyGen:
    def __init__(self, key):
        self.key = key

    def __call__(self):
        self.key, sub = jax.random.split(self.key)
        return sub


def conv_p(kg, kh, kw, cin, cout):
    w = 0.05 * jax.random.normal(kg(), (kh, kw, cin, cout), jnp.float32)
    # patches feature order is [cin][kh][kw] (channel-major) -> match it
    w2d = jnp.transpose(w, (2, 0, 1, 3)).reshape(cin * kh * kw, cout)
    return {'w': w2d.astype(jnp.bfloat16), 'b': jnp.zeros((cout,), jnp.float32)}


def norm_p(c):
    return {'g': jnp.ones((c,), jnp.float32), 'b': jnp.zeros((c,), jnp.float32)}


def resblock_p(kg, cin, cout):
    p = {'n1': norm_p(cin), 'c1': conv_p(kg, 3, 3, cin, cout),
         'n2': norm_p(cout), 'c2': conv_p(kg, 3, 3, cout, cout)}
    if cin != cout:
        p['sc'] = conv_p(kg, 1, 1, cin, cout)
    return p


def attn_p(kg, c):
    return {'n': norm_p(c), 'q': conv_p(kg, 1, 1, c, c), 'k': conv_p(kg, 1, 1, c, c),
            'v': conv_p(kg, 1, 1, c, c), 'po': conv_p(kg, 1, 1, c, c)}


def init_encoder(kg, cfg):
    ch, ch_mult, nres = cfg['ch'], cfg['ch_mult'], cfg['num_res_blocks']
    p = {'conv_in': conv_p(kg, 3, 3, cfg['in_channels'], ch)}
    in_ch_mult = (1,) + tuple(ch_mult)
    downs = []
    block_in = ch
    for i in range(len(ch_mult)):
        block_in = ch * in_ch_mult[i]
        block_out = ch * ch_mult[i]
        blocks = []
        for _ in range(nres):
            blocks.append(resblock_p(kg, block_in, block_out))
            block_in = block_out
        lvl = {'blocks': blocks}
        if i != len(ch_mult) - 1:
            lvl['down'] = conv_p(kg, 3, 3, block_in, block_in)
        downs.append(lvl)
    p['down'] = downs
    p['mid'] = {'b1': resblock_p(kg, block_in, block_in),
                'attn': attn_p(kg, block_in),
                'b2': resblock_p(kg, block_in, block_in)}
    p['norm_out'] = norm_p(block_in)
    p['conv_out'] = conv_p(kg, 3, 3, block_in, cfg['z_channels'])
    return p


def init_decoder(kg, cfg):
    ch, ch_mult, nres = cfg['ch'], cfg['ch_mult'], cfg['num_res_blocks']
    block_in = ch * ch_mult[-1]
    p = {'conv_in': conv_p(kg, 3, 3, cfg['z_channels'], block_in)}
    p['mid'] = {'b1': resblock_p(kg, block_in, block_in),
                'attn': attn_p(kg, block_in),
                'b2': resblock_p(kg, block_in, block_in)}
    ups = []
    for i in reversed(range(len(ch_mult))):
        block_out = ch * ch_mult[i]
        blocks = []
        for _ in range(nres + 1):
            blocks.append(resblock_p(kg, block_in, block_out))
            block_in = block_out
        lvl = {'blocks': blocks}
        if i != 0:
            lvl['up'] = conv_p(kg, 3, 3, block_in, block_in)
        ups.append(lvl)
    p['up'] = ups  # stored in processing (reversed) order
    p['norm_out'] = norm_p(block_in)
    p['conv_out'] = conv_p(kg, 3, 3, block_in, cfg['out_ch'])
    return p


def init_skvqgan(key, cfg, n_embed, embed_dim):
    kg = KeyGen(key)
    return {
        'encoder': init_encoder(kg, cfg),
        'decoder': init_decoder(kg, cfg),
        'quant_conv': conv_p(kg, 1, 1, cfg['z_channels'], embed_dim),
        'post_quant_conv': conv_p(kg, 1, 1, embed_dim, cfg['z_channels']),
        'codebook': jax.random.uniform(kg(), (n_embed, embed_dim), jnp.float32,
                                       minval=-1.0 / n_embed, maxval=1.0 / n_embed),
    }


# ----------------------------------------------------------------------------
# Forward passes
# ----------------------------------------------------------------------------
def encoder_fwd(p, x):
    h = conv2d(x, p['conv_in'], k=3)
    for lvl in p['down']:
        for bp in lvl['blocks']:
            h = resnet_block(h, bp)
        if 'down' in lvl:
            h = conv2d(h, lvl['down'], k=3, stride=2, padding=((0, 1), (0, 1)))
    h = resnet_block(h, p['mid']['b1'])
    h = attn_block(h, p['mid']['attn'])
    h = resnet_block(h, p['mid']['b2'])
    h = group_norm(h, p['norm_out'], swish_act=True)
    return conv2d(h, p['conv_out'], k=3)


def decoder_fwd(p, z):
    h = conv2d(z, p['conv_in'], k=3)
    h = resnet_block(h, p['mid']['b1'])
    h = attn_block(h, p['mid']['attn'])
    h = resnet_block(h, p['mid']['b2'])
    for lvl in p['up']:
        for bp in lvl['blocks']:
            h = resnet_block(h, bp)
        if 'up' in lvl:
            # TODO(synk): fold the nearest-2x upsample into the following conv's index_map
            # instead of materializing the 4x-sized intermediate.
            h = jnp.repeat(jnp.repeat(h, 2, axis=1), 2, axis=2)
            h = conv2d(h, lvl['up'], k=3)
    h = group_norm(h, p['norm_out'], swish_act=True)
    return conv2d(h, p['conv_out'], k=3, out_dtype=jnp.float32)


def skvqgan_forward(params, x_nchw):
    """SKVQGAN.forward: xrec, _ = g_model(input); return xrec.  NCHW in / NCHW out."""
    x = jnp.transpose(x_nchw, (0, 2, 3, 1)).astype(jnp.bfloat16)   # NCHW -> NHWC
    h = encoder_fwd(params['encoder'], x)
    h = conv2d(h, params['quant_conv'], k=1)
    quant, _codebook_loss = vector_quantize(h, params['codebook'], beta=0.25)
    q = conv2d(quant, params['post_quant_conv'], k=1)
    dec = decoder_fwd(params['decoder'], q)
    return jnp.transpose(dec, (0, 3, 1, 2))                         # NHWC -> NCHW


# TODO(synk): discriminator (NLayerDiscriminator), adversarial/codebook losses and the
# optimizers are training-time only and are not exercised by SKVQGAN.forward.

if __name__ == "__main__":
    # Small synthetic ddconfig consistent with the module (in_channels=out_ch=1).
    ddconfig = dict(ch=32, out_ch=1, in_channels=1, ch_mult=(1, 2),
                    num_res_blocks=1, attn_resolutions=(), resolution=16,
                    z_channels=16)
    n_embed, embed_dim = 32, 8

    key = jax.random.PRNGKey(0)
    pkey, xkey = jax.random.split(key)
    params = init_skvqgan(pkey, ddconfig, n_embed, embed_dim)

    x = jax.random.normal(xkey, (2, 1, 16, 16), jnp.float32)  # NCHW, like PyTorch

    fwd = jax.jit(skvqgan_forward)
    xrec = fwd(params, x)
    jax.block_until_ready(xrec)
    assert xrec.shape == (2, 1, 16, 16), xrec.shape
    assert bool(jnp.all(jnp.isfinite(xrec)))
    print("KERNEL_OK")
</pallas_src>

<mosaic_0001>
module attributes {stable_mosaic.version = 11 : i64} {
  func.func @_matmul_bias_1k_kernel(%arg0: i32, %arg1: i32, %arg2: memref<256x128xbf16, #tpu.memory_space<vmem>>, %arg3: memref<128x128xbf16, #tpu.memory_space<vmem>>, %arg4: memref<1x128xf32, #tpu.memory_space<vmem>>, %arg5: memref<256x128xbf16, #tpu.memory_space<vmem>>) attributes {dimension_semantics = [#tpu.dimension_semantics<parallel>, #tpu.dimension_semantics<parallel>], iteration_bounds = array<i64: 2, 1>, scalar_prefetch = 0 : i64, scratch_operands = 0 : i64, tpu.core_type = #tpu.core_type<tc>, window_params = [{transform_indices = @transform_0, window_bounds = array<i64: 256, 128>}, {transform_indices = @transform_1, window_bounds = array<i64: 128, 128>}, {transform_indices = @transform_2, window_bounds = array<i64: 1, 128>}, {transform_indices = @transform_3, window_bounds = array<i64: 256, 128>}]} {
    %c0 = arith.constant 0 : index
    %c0_0 = arith.constant 0 : index
    %0 = vector.load %arg2[%c0, %c0_0] : memref<256x128xbf16, #tpu.memory_space<vmem>>, vector<256x128xbf16>
    %c0_1 = arith.constant 0 : index
    %c0_2 = arith.constant 0 : index
    %1 = vector.load %arg3[%c0_1, %c0_2] : memref<128x128xbf16, #tpu.memory_space<vmem>>, vector<128x128xbf16>
    %cst = arith.constant dense<0.000000e+00> : vector<256x128xf32>
    %2 = tpu.matmul %0, %1, %cst {dimension_numbers = #tpu.dot_dimension_numbers<[1], [0], [0], [1], [0, 0, 1, 1], [], []>} : vector<256x128xbf16>, vector<128x128xbf16>, vector<256x128xf32> -> vector<256x128xf32>
    %c0_3 = arith.constant 0 : index
    %c0_4 = arith.constant 0 : index
    %3 = vector.load %arg4[%c0_3, %c0_4] : memref<1x128xf32, #tpu.memory_space<vmem>>, vector<1x128xf32>
    %4 = vector.broadcast %3 : vector<1x128xf32> to vector<256x128xf32>
    %5 = arith.addf %2, %4 : vector<256x128xf32>
    %6 = arith.truncf %5 : vector<256x128xf32> to vector<256x128xbf16>
    %c0_5 = arith.constant 0 : index
    %c0_6 = arith.constant 0 : index
    %7 = vector.load %arg5[%c0_5, %c0_6] : memref<256x128xbf16, #tpu.memory_space<vmem>>, vector<256x128xbf16>
    tpu.vector_store %arg5[%c0_5, %c0_6], %6 {strides = array<i32>} : memref<256x128xbf16, #tpu.memory_space<vmem>>, vector<256x128xbf16>,
    return
  }
  func.func @transform_0(%arg0: i32, %arg1: i32) -> (i32, i32) {
    %c0_i32 = arith.constant 0 : i32
    %c0_i32_0 = arith.constant 0 : i32
    return %arg0, %c0_i32 : i32, i32
  }
  func.func @transform_1(%arg0: i32, %arg1: i32) -> (i32, i32) {
    %c0_i32 = arith.constant 0 : i32
    %c0_i32_0 = arith.constant 0 : i32
    return %c0_i32, %arg1 : i32, i32
  }
  func.func @transform_2(%arg0: i32, %arg1: i32) -> (i32, i32) {
    %c0_i32 = arith.constant 0 : i32
    %c0_i32_0 = arith.constant 0 : i32
    return %c0_i32, %arg1 : i32, i32
  }
  func.func @transform_3(%arg0: i32, %arg1: i32) -> (i32, i32) {
    %c0_i32 = arith.constant 0 : i32
    return %arg0, %arg1 : i32, i32
  }
}

module attributes {stable_mosaic.version = 11 : i64} {
  func.func @_matmul_bias_1k_kernel(%arg0: i32, %arg1: i32, %arg2: memref<128x384xbf16, #tpu.memory_space<vmem>>, %arg3: memref<384x128xbf16, #tpu.memory_space<vmem>>, %arg4: memref<1x128xf32, #tpu.memory_space<vmem>>, %arg5: memref<128x128xbf16, #tpu.memory_space<vmem>>) attributes {dimension_semantics = [#tpu.dimension_semantics<parallel>, #tpu.dimension_semantics<parallel>], iteration_bounds = array<i64: 1, 1>, scalar_prefetch = 0 : i64, scratch_operands = 0 : i64, tpu.core_type = #tpu.core_type<tc>, window_params = [{transform_indices = @transform_0, window_bounds = array<i64: 128, 384>}, {transform_indices = @transform_1, window_bounds = array<i64: 384, 128>}, {transform_indices = @transform_2, window_bounds = array<i64: 1, 128>}, {transform_indices = @transform_3, window_bounds = array<i64: 128, 128>}]} {
    %c0 = arith.constant 0 : index
    %c0_0 = arith.constant 0 : index
    %0 = vector.load %arg2[%c0, %c0_0] : memref<128x384xbf16, #tpu.memory_space<vmem>>, vector<128x384xbf16>
    %c0_1 = arith.constant 0 : index
    %c0_2 = arith.constant 0 : index
    %1 = vector.load %arg3[%c0_1, %c0_2] : memref<384x128xbf16, #tpu.memory_space<vmem>>, vector<384x128xbf16>
    %cst = arith.constant dense<0.000000e+00> : vector<128x128xf32>
    %2 = tpu.matmul %0, %1, %cst {dimension_numbers = #tpu.dot_dimension_numbers<[1], [0], [0], [1], [0, 0, 1, 1], [], []>} : vector<128x384xbf16>, vector<384x128xbf16>, vector<128x128xf32> -> vector<128x128xf32>
    %c0_3 = arith.constant 0 : index
    %c0_4 = arith.constant 0 : index
    %3 = vector.load %arg4[%c0_3, %c0_4] : memref<1x128xf32, #tpu.memory_space<vmem>>, vector<1x128xf32>
    %4 = vector.broadcast %3 : vector<1x128xf32> to vector<128x128xf32>
    %5 = arith.addf %2, %4 : vector<128x128xf32>
    %6 = arith.truncf %5 : vector<128x128xf32> to vector<128x128xbf16>
    %c0_5 = arith.constant 0 : index
    %c0_6 = arith.constant 0 : index
    %7 = vector.load %arg5[%c0_5, %c0_6] : memref<128x128xbf16, #tpu.memory_space<vmem>>, vector<128x128xbf16>
    tpu.vector_store %arg5[%c0_5, %c0_6], %6 {strides = array<i32>} : memref<128x128xbf16, #tpu.memory_space<vmem>>, vector<128x128xbf16>,
    return
  }
  func.func @transform_0(%arg0: i32, %arg1: i32) -> (i32, i32) {
    %c0_i32 = arith.constant 0 : i32
    %c0_i32_0 = arith.constant 0 : i32
    return %arg0, %c0_i32 : i32, i32
  }
  func.func @transform_1(%arg0: i32, %arg1: i32) -> (i32, i32) {
    %c0_i32 = arith.constant 0 : i32
    %c0_i32_0 = arith.constant 0 : i32
    return %c0_i32, %arg1 : i32, i32
  }
  func.func @transform_2(%arg0: i32, %arg1: i32) -> (i32, i32) {
    %c0_i32 = arith.constant 0 : i32
    %c0_i32_0 = arith.constant 0 : i32
    return %c0_i32, %arg1 : i32, i32
  }
  func.func @transform_3(%arg0: i32, %arg1: i32) -> (i32, i32) {
    %c0_i32 = arith.constant 0 : i32
    return %arg0, %arg1 : i32, i32
  }
}

module attributes {stable_mosaic.version = 11 : i64} {
  func.func @_matmul_bias_1k_kernel(%arg0: i32, %arg1: i32, %arg2: memref<256x384xbf16, #tpu.memory_space<vmem>>, %arg3: memref<384x128xbf16, #tpu.memory_space<vmem>>, %arg4: memref<1x128xf32, #tpu.memory_space<vmem>>, %arg5: memref<256x128xbf16, #tpu.memory_space<vmem>>) attributes {dimension_semantics = [#tpu.dimension_semantics<parallel>, #tpu.dimension_semantics<parallel>], iteration_bounds = array<i64: 2, 1>, scalar_prefetch = 0 : i64, scratch_operands = 0 : i64, tpu.core_type = #tpu.core_type<tc>, window_params = [{transform_indices = @transform_0, window_bounds = array<i64: 256, 384>}, {transform_indices = @transform_1, window_bounds = array<i64: 384, 128>}, {transform_indices = @transform_2, window_bounds = array<i64: 1, 128>}, {transform_indices = @transform_3, window_bounds = array<i64: 256, 128>}]} {
    %c0 = arith.constant 0 : index
    %c0_0 = arith.constant 0 : index
    %0 = vector.load %arg2[%c0, %c0_0] : memref<256x384xbf16, #tpu.memory_space<vmem>>, vector<256x384xbf16>
    %c0_1 = arith.constant 0 : index
    %c0_2 = arith.constant 0 : index
    %1 = vector.load %arg3[%c0_1, %c0_2] : memref<384x128xbf16, #tpu.memory_space<vmem>>, vector<384x128xbf16>
    %cst = arith.constant dense<0.000000e+00> : vector<256x128xf32>
    %2 = tpu.matmul %0, %1, %cst {dimension_numbers = #tpu.dot_dimension_numbers<[1], [0], [0], [1], [0, 0, 1, 1], [], []>} : vector<256x384xbf16>, vector<384x128xbf16>, vector<256x128xf32> -> vector<256x128xf32>
    %c0_3 = arith.constant 0 : index
    %c0_4 = arith.constant 0 : index
    %3 = vector.load %arg4[%c0_3, %c0_4] : memref<1x128xf32, #tpu.memory_space<vmem>>, vector<1x128xf32>
    %4 = vector.broadcast %3 : vector<1x128xf32> to vector<256x128xf32>
    %5 = arith.addf %2, %4 : vector<256x128xf32>
    %6 = arith.truncf %5 : vector<256x128xf32> to vector<256x128xbf16>
    %c0_5 = arith.constant 0 : index
    %c0_6 = arith.constant 0 : index
    %7 = vector.load %arg5[%c0_5, %c0_6] : memref<256x128xbf16, #tpu.memory_space<vmem>>, vector<256x128xbf16>
    tpu.vector_store %arg5[%c0_5, %c0_6], %6 {strides = array<i32>} : memref<256x128xbf16, #tpu.memory_space<vmem>>, vector<256x128xbf16>,
    return
  }
  func.func @transform_0(%arg0: i32, %arg1: i32) -> (i32, i32) {
    %c0_i32 = arith.constant 0 : i32
    %c0_i32_0 = arith.constant 0 : i32
    return %arg0, %c0_i32 : i32, i32
  }
  func.func @transform_1(%arg0: i32, %arg1: i32) -> (i32, i32) {
    %c0_i32 = arith.constant 0 : i32
    %c0_i32_0 = arith.constant 0 : i32
    return %c0_i32, %arg1 : i32, i32
  }
  func.func @transform_2(%arg0: i32, %arg1: i32) -> (i32, i32) {
    %c0_i32 = arith.constant 0 : i32
    %c0_i32_0 = arith.constant 0 : i32
    return %c0_i32, %arg1 : i32, i32
  }
  func.func @transform_3(%arg0: i32, %arg1: i32) -> (i32, i32) {
    %c0_i32 = arith.constant 0 : i32
    return %arg0, %arg1 : i32, i32
  }
}

module attributes {stable_mosaic.version = 11 : i64} {
  func.func @_matmul_bias_1k_kernel(%arg0: i32, %arg1: i32, %arg2: memref<128x640xbf16, #tpu.memory_space<vmem>>, %arg3: memref<640x128xbf16, #tpu.memory_space<vmem>>, %arg4: memref<1x128xf32, #tpu.memory_space<vmem>>, %arg5: memref<128x128xbf16, #tpu.memory_space<vmem>>) attributes {dimension_semantics = [#tpu.dimension_semantics<parallel>, #tpu.dimension_semantics<parallel>], iteration_bounds = array<i64: 1, 1>, scalar_prefetch = 0 : i64, scratch_operands = 0 : i64, tpu.core_type = #tpu.core_type<tc>, window_params = [{transform_indices = @transform_0, window_bounds = array<i64: 128, 640>}, {transform_indices = @transform_1, window_bounds = array<i64: 640, 128>}, {transform_indices = @transform_2, window_bounds = array<i64: 1, 128>}, {transform_indices = @transform_3, window_bounds = array<i64: 128, 128>}]} {
    %c0 = arith.constant 0 : index
    %c0_0 = arith.constant 0 : index
    %0 = vector.load %arg2[%c0, %c0_0] : memref<128x640xbf16, #tpu.memory_space<vmem>>, vector<128x640xbf16>
    %c0_1 = arith.constant 0 : index
    %c0_2 = arith.constant 0 : index
    %1 = vector.load %arg3[%c0_1, %c0_2] : memref<640x128xbf16, #tpu.memory_space<vmem>>, vector<640x128xbf16>
    %cst = arith.constant dense<0.000000e+00> : vector<128x128xf32>
    %2 = tpu.matmul %0, %1, %cst {dimension_numbers = #tpu.dot_dimension_numbers<[1], [0], [0], [1], [0, 0, 1, 1], [], []>} : vector<128x640xbf16>, vector<640x128xbf16>, vector<128x128xf32> -> vector<128x128xf32>
    %c0_3 = arith.constant 0 : index
    %c0_4 = arith.constant 0 : index
    %3 = vector.load %arg4[%c0_3, %c0_4] : memref<1x128xf32, #tpu.memory_space<vmem>>, vector<1x128xf32>
    %4 = vector.broadcast %3 : vector<1x128xf32> to vector<128x128xf32>
    %5 = arith.addf %2, %4 : vector<128x128xf32>
    %6 = arith.truncf %5 : vector<128x128xf32> to vector<128x128xbf16>
    %c0_5 = arith.constant 0 : index
    %c0_6 = arith.constant 0 : index
    %7 = vector.load %arg5[%c0_5, %c0_6] : memref<128x128xbf16, #tpu.memory_space<vmem>>, vector<128x128xbf16>
    tpu.vector_store %arg5[%c0_5, %c0_6], %6 {strides = array<i32>} : memref<128x128xbf16, #tpu.memory_space<vmem>>, vector<128x128xbf16>,
    return
  }
  func.func @transform_0(%arg0: i32, %arg1: i32) -> (i32, i32) {
    %c0_i32 = arith.constant 0 : i32
    %c0_i32_0 = arith.constant 0 : i32
    return %arg0, %c0_i32 : i32, i32
  }
  func.func @transform_1(%arg0: i32, %arg1: i32) -> (i32, i32) {
    %c0_i32 = arith.constant 0 : i32
    %c0_i32_0 = arith.constant 0 : i32
    return %c0_i32, %arg1 : i32, i32
  }
  func.func @transform_2(%arg0: i32, %arg1: i32) -> (i32, i32) {
    %c0_i32 = arith.constant 0 : i32
    %c0_i32_0 = arith.constant 0 : i32
    return %c0_i32, %arg1 : i32, i32
  }
  func.func @transform_3(%arg0: i32, %arg1: i32) -> (i32, i32) {
    %c0_i32 = arith.constant 0 : i32
    return %arg0, %arg1 : i32, i32
  }
}

module attributes {stable_mosaic.version = 11 : i64} {
  func.func @_matmul_bias_1k_kernel(%arg0: i32, %arg1: i32, %arg2: memref<128x128xbf16, #tpu.memory_space<vmem>>, %arg3: memref<128x128xbf16, #tpu.memory_space<vmem>>, %arg4: memref<1x128xf32, #tpu.memory_space<vmem>>, %arg5: memref<128x128xbf16, #tpu.memory_space<vmem>>) attributes {dimension_semantics = [#tpu.dimension_semantics<parallel>, #tpu.dimension_semantics<parallel>], iteration_bounds = array<i64: 1, 1>, scalar_prefetch = 0 : i64, scratch_operands = 0 : i64, tpu.core_type = #tpu.core_type<tc>, window_params = [{transform_indices = @transform_0, window_bounds = array<i64: 128, 128>}, {transform_indices = @transform_1, window_bounds = array<i64: 128, 128>}, {transform_indices = @transform_2, window_bounds = array<i64: 1, 128>}, {transform_indices = @transform_3, window_bounds = array<i64: 128, 128>}]} {
    %c0 = arith.constant 0 : index
    %c0_0 = arith.constant 0 : index
    %0 = vector.load %arg2[%c0, %c0_0] : memref<128x128xbf16, #tpu.memory_space<vmem>>, vector<128x128xbf16>
    %c0_1 = arith.constant 0 : index
    %c0_2 = arith.constant 0 : index
    %1 = vector.load %arg3[%c0_1, %c0_2] : memref<128x128xbf16, #tpu.memory_space<vmem>>, vector<128x128xbf16>
    %cst = arith.constant dense<0.000000e+00> : vector<128x128xf32>
    %2 = tpu.matmul %0, %1, %cst {dimension_numbers = #tpu.dot_dimension_numbers<[1], [0], [0], [1], [0, 0, 1, 1], [], []>} : vector<128x128xbf16>, vector<128x128xbf16>, vector<128x128xf32> -> vector<128x128xf32>
    %c0_3 = arith.constant 0 : index
    %c0_4 = arith.constant 0 : index
    %3 = vector.load %arg4[%c0_3, %c0_4] : memref<1x128xf32, #tpu.memory_space<vmem>>, vector<1x128xf32>
    %4 = vector.broadcast %3 : vector<1x128xf32> to vector<128x128xf32>
    %5 = arith.addf %2, %4 : vector<128x128xf32>
    %6 = arith.truncf %5 : vector<128x128xf32> to vector<128x128xbf16>
    %c0_5 = arith.constant 0 : index
    %c0_6 = arith.constant 0 : index
    %7 = vector.load %arg5[%c0_5, %c0_6] : memref<128x128xbf16, #tpu.memory_space<vmem>>, vector<128x128xbf16>
    tpu.vector_store %arg5[%c0_5, %c0_6], %6 {strides = array<i32>} : memref<128x128xbf16, #tpu.memory_space<vmem>>, vector<128x128xbf16>,
    return
  }
  func.func @transform_0(%arg0: i32, %arg1: i32) -> (i32, i32) {
    %c0_i32 = arith.constant 0 : i32
    %c0_i32_0 = arith.constant 0 : i32
    return %arg0, %c0_i32 : i32, i32
  }
  func.func @transform_1(%arg0: i32, %arg1: i32) -> (i32, i32) {
    %c0_i32 = arith.constant 0 : i32
    %c0_i32_0 = arith.constant 0 : i32
    return %c0_i32, %arg1 : i32, i32
  }
  func.func @transform_2(%arg0: i32, %arg1: i32) -> (i32, i32) {
    %c0_i32 = arith.constant 0 : i32
    %c0_i32_0 = arith.constant 0 : i32
    return %c0_i32, %arg1 : i32, i32
  }
  func.func @transform_3(%arg0: i32, %arg1: i32) -> (i32, i32) {
    %c0_i32 = arith.constant 0 : i32
    return %arg0, %arg1 : i32, i32
  }
}

module attributes {stable_mosaic.version = 11 : i64} {
  func.func @_attn_kernel(%arg0: i32, %arg1: memref<1x64x64xbf16, #tpu.memory_space<vmem>>, %arg2: memref<1x64x64xbf16, #tpu.memory_space<vmem>>, %arg3: memref<1x64x64xbf16, #tpu.memory_space<vmem>>, %arg4: memref<1x64x64xbf16, #tpu.memory_space<vmem>>) attributes {dimension_semantics = [#tpu.dimension_semantics<parallel>], iteration_bounds = array<i64: 2>, scalar_prefetch = 0 : i64, scratch_operands = 0 : i64, tpu.core_type = #tpu.core_type<tc>, window_params = [{transform_indices = @transform_0, window_bounds = array<i64: 1, 64, 64>}, {transform_indices = @transform_1, window_bounds = array<i64: 1, 64, 64>}, {transform_indices = @transform_2, window_bounds = array<i64: 1, 64, 64>}, {transform_indices = @transform_3, window_bounds = array<i64: 1, 64, 64>}]} {
    %c0 = arith.constant 0 : index
    %c0_0 = arith.constant 0 : index
    %c0_1 = arith.constant 0 : index
    %0 = vector.load %arg1[%c0, %c0_0, %c0_1] : memref<1x64x64xbf16, #tpu.memory_space<vmem>>, vector<1x64x64xbf16>
    %1 = vector.shape_cast %0 : vector<1x64x64xbf16> to vector<64x64xbf16>
    %c0_2 = arith.constant 0 : index
    %c0_3 = arith.constant 0 : index
    %c0_4 = arith.constant 0 : index
    %2 = vector.load %arg2[%c0_2, %c0_3, %c0_4] : memref<1x64x64xbf16, #tpu.memory_space<vmem>>, vector<1x64x64xbf16>
    %3 = vector.shape_cast %2 : vector<1x64x64xbf16> to vector<64x64xbf16>
    %c0_5 = arith.constant 0 : index
    %c0_6 = arith.constant 0 : index
    %c0_7 = arith.constant 0 : index
    %4 = vector.load %arg3[%c0_5, %c0_6, %c0_7] : memref<1x64x64xbf16, #tpu.memory_space<vmem>>, vector<1x64x64xbf16>
    %5 = vector.shape_cast %4 : vector<1x64x64xbf16> to vector<64x64xbf16>
    %cst = arith.constant dense<0.000000e+00> : vector<64x64xf32>
    %6 = tpu.matmul %1, %3, %cst {dimension_numbers = #tpu.dot_dimension_numbers<[1], [1], [0], [0], [0, 0, 1, 0], [], []>} : vector<64x64xbf16>, vector<64x64xbf16>, vector<64x64xf32> -> vector<64x64xf32>
    %cst_8 = arith.constant 1.250000e-01 : f32
    %7 = vector.broadcast %cst_8 : f32 to vector<64x64xf32>
    %8 = arith.mulf %6, %7 : vector<64x64xf32>
    %cst_9 = arith.constant dense<0xFF800000> : vector<64xf32>
    %9 = vector.multi_reduction <maximumf>, %8, %cst_9 [1] : vector<64x64xf32> to vector<64xf32>
    %10 = vector.shape_cast %9 : vector<64xf32> to vector<64x1xf32>
    %11 = vector.broadcast %10 : vector<64x1xf32> to vector<64x64xf32>
    %12 = arith.subf %8, %11 : vector<64x64xf32>
    %13 = math.exp %12 : vector<64x64xf32>
    %cst_10 = arith.constant dense<0.000000e+00> : vector<64xf32>
    %14 = vector.multi_reduction <add>, %13, %cst_10 [1] : vector<64x64xf32> to vector<64xf32>
    %15 = vector.shape_cast %14 : vector<64xf32> to vector<64x1xf32>
    %16 = tpu.reciprocal %15 {approx = true} : vector<64x1xf32> -> vector<64x1xf32>
    %17 = vector.broadcast %16 : vector<64x1xf32> to vector<64x64xf32>
    %18 = arith.mulf %13, %17 : vector<64x64xf32>
    %19 = arith.truncf %18 : vector<64x64xf32> to vector<64x64xbf16>
    %cst_11 = arith.constant dense<0.000000e+00> : vector<64x64xf32>
    %20 = tpu.matmul %19, %5, %cst_11 {dimension_numbers = #tpu.dot_dimension_numbers<[1], [0], [0], [1], [0, 0, 1, 1], [], []>} : vector<64x64xbf16>, vector<64x64xbf16>, vector<64x64xf32> -> vector<64x64xf32>
    %21 = arith.truncf %20 : vector<64x64xf32> to vector<64x64xbf16>
    %c0_12 = arith.constant 0 : index
    %c0_13 = arith.constant 0 : index
    %c0_14 = arith.constant 0 : index
    %22 = vector.load %arg4[%c0_12, %c0_13, %c0_14] : memref<1x64x64xbf16, #tpu.memory_space<vmem>>, vector<1x64x64xbf16>
    %23 = vector.shape_cast %22 : vector<1x64x64xbf16> to vector<64x64xbf16>
    %24 = vector.shape_cast %21 : vector<64x64xbf16> to vector<1x64x64xbf16>
    tpu.vector_store %arg4[%c0_12, %c0_13, %c0_14], %24 {strides = array<i32>} : memref<1x64x64xbf16, #tpu.memory_space<vmem>>, vector<1x64x64xbf16>,
    return
  }
  func.func @transform_0(%arg0: i32) -> (i32, i32, i32) {
    %c0_i32 = arith.constant 0 : i32
    %c0_i32_0 = arith.constant 0 : i32
    %c0_i32_1 = arith.constant 0 : i32
    return %arg0, %c0_i32, %c0_i32_0 : i32, i32, i32
  }
  func.func @transform_1(%arg0: i32) -> (i32, i32, i32) {
    %c0_i32 = arith.constant 0 : i32
    %c0_i32_0 = arith.constant 0 : i32
    %c0_i32_1 = arith.constant 0 : i32
    return %arg0, %c0_i32, %c0_i32_0 : i32, i32, i32
  }
  func.func @transform_2(%arg0: i32) -> (i32, i32, i32) {
    %c0_i32 = arith.constant 0 : i32
    %c0_i32_0 = arith.constant 0 : i32
    %c0_i32_1 = arith.constant 0 : i32
    return %arg0, %c0_i32, %c0_i32_0 : i32, i32, i32
  }
  func.func @transform_3(%arg0: i32) -> (i32, i32, i32) {
    %c0_i32 = arith.constant 0 : i32
    %c0_i32_0 = arith.constant 0 : i32
    %c0_i32_1 = arith.constant 0 : i32
    return %arg0, %c0_i32, %c0_i32_0 : i32, i32, i32
  }
}

module attributes {stable_mosaic.version = 11 : i64} {
  func.func @_vq_kernel(%arg0: i32, %arg1: memref<128x128xbf16, #tpu.memory_space<vmem>>, %arg2: memref<128x128xf32, #tpu.memory_space<vmem>>, %arg3: memref<1x128xf32, #tpu.memory_space<vmem>>, %arg4: memref<128x128xbf16, #tpu.memory_space<vmem>>, %arg5: memref<1x1xf32, #tpu.memory_space<vmem>>) attributes {dimension_semantics = [#tpu.dimension_semantics<arbitrary>], iteration_bounds = array<i64: 1>, scalar_prefetch = 0 : i64, scratch_operands = 0 : i64, tpu.core_type = #tpu.core_type<tc>, window_params = [{transform_indices = @transform_0, window_bounds = array<i64: 128, 128>}, {pipeline_mode = #tpu.pipeline_mode<synchronous>, transform_indices = @transform_1, window_bounds = array<i64: 128, 128>}, {pipeline_mode = #tpu.pipeline_mode<synchronous>, transform_indices = @transform_2, window_bounds = array<i64: 1, 128>}, {transform_indices = @transform_3, window_bounds = array<i64: 128, 128>}, {pipeline_mode = #tpu.pipeline_mode<synchronous>, transform_indices = @transform_4, window_bounds = array<i64: 1, 1>}]} {
    %c0_i32 = arith.constant 0 : i32
    %0 = arith.cmpi eq, %arg0, %c0_i32 : i32
    %1 = arith.extui %0 : i1 to i32
    %c0_i32_0 = arith.constant 0 : i32
    %2 = arith.cmpi ne, %1, %c0_i32_0 : i32
    scf.if %2 {
      %cst_19 = arith.constant 0.000000e+00 : f32
      %50 = vector.broadcast %cst_19 : f32 to vector<1x1xf32>
      %c0_20 = arith.constant 0 : index
      %c0_21 = arith.constant 0 : index
      %51 = vector.load %arg5[%c0_20, %c0_21] : memref<1x1xf32, #tpu.memory_space<vmem>>, vector<1x1xf32>
      tpu.vector_store %arg5[%c0_20, %c0_21], %50 {strides = array<i32>} : memref<1x1xf32, #tpu.memory_space<vmem>>, vector<1x1xf32>,
    } else {
    }
    %c0 = arith.constant 0 : index
    %c0_1 = arith.constant 0 : index
    %3 = vector.load %arg1[%c0, %c0_1] : memref<128x128xbf16, #tpu.memory_space<vmem>>, vector<128x128xbf16>
    %4 = arith.extf %3 : vector<128x128xbf16> to vector<128x128xf32>
    %c0_2 = arith.constant 0 : index
    %c0_3 = arith.constant 0 : index
    %5 = vector.load %arg2[%c0_2, %c0_3] : memref<128x128xf32, #tpu.memory_space<vmem>>, vector<128x128xf32>
    %c0_4 = arith.constant 0 : index
    %c0_5 = arith.constant 0 : index
    %6 = vector.load %arg3[%c0_4, %c0_5] : memref<1x128xf32, #tpu.memory_space<vmem>>, vector<1x128xf32>
    %7 = arith.mulf %4, %4 : vector<128x128xf32>
    %cst = arith.constant dense<0.000000e+00> : vector<128xf32>
    %8 = vector.multi_reduction <add>, %7, %cst [1] : vector<128x128xf32> to vector<128xf32>
    %9 = vector.shape_cast %8 : vector<128xf32> to vector<128x1xf32>
    %10 = arith.truncf %5 : vector<128x128xf32> to vector<128x128xbf16>
    %cst_6 = arith.constant dense<0.000000e+00> : vector<128x128xf32>
    %11 = tpu.matmul %3, %10, %cst_6 {dimension_numbers = #tpu.dot_dimension_numbers<[1], [1], [0], [0], [0, 0, 1, 0], [], []>} : vector<128x128xbf16>, vector<128x128xbf16>, vector<128x128xf32> -> vector<128x128xf32>
    %cst_7 = arith.constant 2.000000e+00 : f32
    %12 = vector.broadcast %cst_7 : f32 to vector<128x128xf32>
    %13 = arith.mulf %12, %11 : vector<128x128xf32>
    %14 = vector.broadcast %9 : vector<128x1xf32> to vector<128x128xf32>
    %15 = arith.subf %14, %13 : vector<128x128xf32>
    %16 = vector.broadcast %6 : vector<1x128xf32> to vector<128x128xf32>
    %17 = arith.addf %15, %16 : vector<128x128xf32>
    %18 = tpu.iota {dimensions = array<i32: 1>} : vector<128x128xi32>
    %c32_i32 = arith.constant 32 : i32
    %19 = vector.broadcast %c32_i32 : i32 to vector<128x128xi32>
    %20 = arith.cmpi slt, %18, %19 : vector<128x128xi32>
    %cst_8 = arith.constant 0x7F800000 : f32
    %21 = vector.broadcast %cst_8 : f32 to vector<128x128xf32>
    %22 = arith.select %20, %17, %21 : vector<128x128xi1>, vector<128x128xf32>
    %23 = tpu.reduce_index %22 {axis = 1 : i32, kind = #tpu.reduction_kind<arg_min>} : vector<128x128xf32> -> vector<128xi32>
    %24 = vector.shape_cast %23 : vector<128xi32> to vector<128x1xi32>
    %25 = vector.broadcast %24 : vector<128x1xi32> to vector<128x128xi32>
    %26 = arith.cmpi eq, %18, %25 : vector<128x128xi32>
    %27 = arith.extui %26 : vector<128x128xi1> to vector<128x128xi32>
    %28 = arith.sitofp %27 : vector<128x128xi32> to vector<128x128xf32>
    %cst_9 = arith.constant dense<0.000000e+00> : vector<128x128xf32>
    %29 = tpu.matmul %28, %5, %cst_9 {dimension_numbers = #tpu.dot_dimension_numbers<[1], [0], [0], [1], [0, 0, 1, 1], [], []>} : vector<128x128xf32>, vector<128x128xf32>, vector<128x128xf32> -> vector<128x128xf32>
    %30 = arith.truncf %29 : vector<128x128xf32> to vector<128x128xbf16>
    %c0_10 = arith.constant 0 : index
    %c0_11 = arith.constant 0 : index
    %31 = vector.load %arg4[%c0_10, %c0_11] : memref<128x128xbf16, #tpu.memory_space<vmem>>, vector<128x128xbf16>
    tpu.vector_store %arg4[%c0_10, %c0_11], %30 {strides = array<i32>} : memref<128x128xbf16, #tpu.memory_space<vmem>>, vector<128x128xbf16>,
    %32 = arith.subf %29, %4 : vector<128x128xf32>
    %33 = tpu.iota {dimensions = array<i32: 0>} : vector<128x128xi32>
    %c128_i32 = arith.constant 128 : i32
    %34 = arith.muli %arg0, %c128_i32 : i32
    %35 = vector.broadcast %34 : i32 to vector<128x128xi32>
    %36 = arith.addi %33, %35 : vector<128x128xi32>
    %c128_i32_12 = arith.constant 128 : i32
    %37 = vector.broadcast %c128_i32_12 : i32 to vector<128x128xi32>
    %38 = arith.cmpi slt, %36, %37 : vector<128x128xi32>
    %39 = arith.mulf %32, %32 : vector<128x128xf32>
    %cst_13 = arith.constant 0.000000e+00 : f32
    %40 = vector.broadcast %cst_13 : f32 to vector<128x128xf32>
    %41 = arith.select %38, %39, %40 : vector<128x128xi1>, vector<128x128xf32>
    %c0_14 = arith.constant 0 : index
    %c0_15 = arith.constant 0 : index
    %42 = vector.load %arg5[%c0_14, %c0_15] : memref<1x1xf32, #tpu.memory_space<vmem>>, vector<1x1xf32>
    %43 = vector.shape_cast %41 : vector<128x128xf32> to vector<1x128x128xf32>
    %cst_16 = arith.constant dense<0.000000e+00> : vector<1xf32>
    %44 = vector.multi_reduction <add>, %43, %cst_16 [1, 2] : vector<1x128x128xf32> to vector<1xf32>
    %45 = vector.shape_cast %44 : vector<1xf32> to vector<1x1x1xf32>
    %46 = vector.extract %45[0, 0, 0] : f32 from vector<1x1x1xf32>
    %47 = vector.broadcast %46 : f32 to vector<1x1xf32>
    %48 = arith.addf %42, %47 : vector<1x1xf32>
    %c0_17 = arith.constant 0 : index
    %c0_18 = arith.constant 0 : index
    %49 = vector.load %arg5[%c0_17, %c0_18] : memref<1x1xf32, #tpu.memory_space<vmem>>, vector<1x1xf32>
    tpu.vector_store %arg5[%c0_17, %c0_18], %48 {strides = array<i32>} : memref<1x1xf32, #tpu.memory_space<vmem>>, vector<1x1xf32>,
    return
  }
  func.func @transform_0(%arg0: i32) -> (i32, i32) {
    %c0_i32 = arith.constant 0 : i32
    %c0_i32_0 = arith.constant 0 : i32
    return %arg0, %c0_i32 : i32, i32
  }
  func.func @transform_1(%arg0: i32) -> (i32, i32) {
    %c0_i32 = arith.constant 0 : i32
    %c0_i32_0 = arith.constant 0 : i32
    %c0_i32_1 = arith.constant 0 : i32
    return %c0_i32, %c0_i32_0 : i32, i32
  }
  func.func @transform_2(%arg0: i32) -> (i32, i32) {
    %c0_i32 = arith.constant 0 : i32
    %c0_i32_0 = arith.constant 0 : i32
    %c0_i32_1 = arith.constant 0 : i32
    return %c0_i32, %c0_i32_0 : i32, i32
  }
  func.func @transform_3(%arg0: i32) -> (i32, i32) {
    %c0_i32 = arith.constant 0 : i32
    %c0_i32_0 = arith.constant 0 : i32
    return %arg0, %c0_i32 : i32, i32
  }
  func.func @transform_4(%arg0: i32) -> (i32, i32) {
    %c0_i32 = arith.constant 0 : i32
    %c0_i32_0 = arith.constant 0 : i32
    %c0_i32_1 = arith.constant 0 : i32
    return %c0_i32, %c0_i32_0 : i32, i32
  }
}

module attributes {stable_mosaic.version = 11 : i64} {
  func.func @_matmul_bias_1k_kernel(%arg0: i32, %arg1: i32, %arg2: memref<128x256xbf16, #tpu.memory_space<vmem>>, %arg3: memref<256x128xbf16, #tpu.memory_space<vmem>>, %arg4: memref<1x128xf32, #tpu.memory_space<vmem>>, %arg5: memref<128x128xbf16, #tpu.memory_space<vmem>>) attributes {dimension_semantics = [#tpu.dimension_semantics<parallel>, #tpu.dimension_semantics<parallel>], iteration_bounds = array<i64: 1, 1>, scalar_prefetch = 0 : i64, scratch_operands = 0 : i64, tpu.core_type = #tpu.core_type<tc>, window_params = [{transform_indices = @transform_0, window_bounds = array<i64: 128, 256>}, {transform_indices = @transform_1, window_bounds = array<i64: 256, 128>}, {transform_indices = @transform_2, window_bounds = array<i64: 1, 128>}, {transform_indices = @transform_3, window_bounds = array<i64: 128, 128>}]} {
    %c0 = arith.constant 0 : index
    %c0_0 = arith.constant 0 : index
    %0 = vector.load %arg2[%c0, %c0_0] : memref<128x256xbf16, #tpu.memory_space<vmem>>, vector<128x256xbf16>
    %c0_1 = arith.constant 0 : index
    %c0_2 = arith.constant 0 : index
    %1 = vector.load %arg3[%c0_1, %c0_2] : memref<256x128xbf16, #tpu.memory_space<vmem>>, vector<256x128xbf16>
    %cst = arith.constant dense<0.000000e+00> : vector<128x128xf32>
    %2 = tpu.matmul %0, %1, %cst {dimension_numbers = #tpu.dot_dimension_numbers<[1], [0], [0], [1], [0, 0, 1, 1], [], []>} : vector<128x256xbf16>, vector<256x128xbf16>, vector<128x128xf32> -> vector<128x128xf32>
    %c0_3 = arith.constant 0 : index
    %c0_4 = arith.constant 0 : index
    %3 = vector.load %arg4[%c0_3, %c0_4] : memref<1x128xf32, #tpu.memory_space<vmem>>, vector<1x128xf32>
    %4 = vector.broadcast %3 : vector<1x128xf32> to vector<128x128xf32>
    %5 = arith.addf %2, %4 : vector<128x128xf32>
    %6 = arith.truncf %5 : vector<128x128xf32> to vector<128x128xbf16>
    %c0_5 = arith.constant 0 : index
    %c0_6 = arith.constant 0 : index
    %7 = vector.load %arg5[%c0_5, %c0_6] : memref<128x128xbf16, #tpu.memory_space<vmem>>, vector<128x128xbf16>
    tpu.vector_store %arg5[%c0_5, %c0_6], %6 {strides = array<i32>} : memref<128x128xbf16, #tpu.memory_space<vmem>>, vector<128x128xbf16>,
    return
  }
  func.func @transform_0(%arg0: i32, %arg1: i32) -> (i32, i32) {
    %c0_i32 = arith.constant 0 : i32
    %c0_i32_0 = arith.constant 0 : i32
    return %arg0, %c0_i32 : i32, i32
  }
  func.func @transform_1(%arg0: i32, %arg1: i32) -> (i32, i32) {
    %c0_i32 = arith.constant 0 : i32
    %c0_i32_0 = arith.constant 0 : i32
    return %c0_i32, %arg1 : i32, i32
  }
  func.func @transform_2(%arg0: i32, %arg1: i32) -> (i32, i32) {
    %c0_i32 = arith.constant 0 : i32
    %c0_i32_0 = arith.constant 0 : i32
    return %c0_i32, %arg1 : i32, i32
  }
  func.func @transform_3(%arg0: i32, %arg1: i32) -> (i32, i32) {
    %c0_i32 = arith.constant 0 : i32
    return %arg0, %arg1 : i32, i32
  }
}

module attributes {stable_mosaic.version = 11 : i64} {
  func.func @_matmul_bias_1k_kernel(%arg0: i32, %arg1: i32, %arg2: memref<256x640xbf16, #tpu.memory_space<vmem>>, %arg3: memref<640x128xbf16, #tpu.memory_space<vmem>>, %arg4: memref<1x128xf32, #tpu.memory_space<vmem>>, %arg5: memref<256x128xbf16, #tpu.memory_space<vmem>>) attributes {dimension_semantics = [#tpu.dimension_semantics<parallel>, #tpu.dimension_semantics<parallel>], iteration_bounds = array<i64: 2, 1>, scalar_prefetch = 0 : i64, scratch_operands = 0 : i64, tpu.core_type = #tpu.core_type<tc>, window_params = [{transform_indices = @transform_0, window_bounds = array<i64: 256, 640>}, {transform_indices = @transform_1, window_bounds = array<i64: 640, 128>}, {transform_indices = @transform_2, window_bounds = array<i64: 1, 128>}, {transform_indices = @transform_3, window_bounds = array<i64: 256, 128>}]} {
    %c0 = arith.constant 0 : index
    %c0_0 = arith.constant 0 : index
    %0 = vector.load %arg2[%c0, %c0_0] : memref<256x640xbf16, #tpu.memory_space<vmem>>, vector<256x640xbf16>
    %c0_1 = arith.constant 0 : index
    %c0_2 = arith.constant 0 : index
    %1 = vector.load %arg3[%c0_1, %c0_2] : memref<640x128xbf16, #tpu.memory_space<vmem>>, vector<640x128xbf16>
    %cst = arith.constant dense<0.000000e+00> : vector<256x128xf32>
    %2 = tpu.matmul %0, %1, %cst {dimension_numbers = #tpu.dot_dimension_numbers<[1], [0], [0], [1], [0, 0, 1, 1], [], []>} : vector<256x640xbf16>, vector<640x128xbf16>, vector<256x128xf32> -> vector<256x128xf32>
    %c0_3 = arith.constant 0 : index
    %c0_4 = arith.constant 0 : index
    %3 = vector.load %arg4[%c0_3, %c0_4] : memref<1x128xf32, #tpu.memory_space<vmem>>, vector<1x128xf32>
    %4 = vector.broadcast %3 : vector<1x128xf32> to vector<256x128xf32>
    %5 = arith.addf %2, %4 : vector<256x128xf32>
    %6 = arith.truncf %5 : vector<256x128xf32> to vector<256x128xbf16>
    %c0_5 = arith.constant 0 : index
    %c0_6 = arith.constant 0 : index
    %7 = vector.load %arg5[%c0_5, %c0_6] : memref<256x128xbf16, #tpu.memory_space<vmem>>, vector<256x128xbf16>
    tpu.vector_store %arg5[%c0_5, %c0_6], %6 {strides = array<i32>} : memref<256x128xbf16, #tpu.memory_space<vmem>>, vector<256x128xbf16>,
    return
  }
  func.func @transform_0(%arg0: i32, %arg1: i32) -> (i32, i32) {
    %c0_i32 = arith.constant 0 : i32
    %c0_i32_0 = arith.constant 0 : i32
    return %arg0, %c0_i32 : i32, i32
  }
  func.func @transform_1(%arg0: i32, %arg1: i32) -> (i32, i32) {
    %c0_i32 = arith.constant 0 : i32
    %c0_i32_0 = arith.constant 0 : i32
    return %c0_i32, %arg1 : i32, i32
  }
  func.func @transform_2(%arg0: i32, %arg1: i32) -> (i32, i32) {
    %c0_i32 = arith.constant 0 : i32
    %c0_i32_0 = arith.constant 0 : i32
    return %c0_i32, %arg1 : i32, i32
  }
  func.func @transform_3(%arg0: i32, %arg1: i32) -> (i32, i32) {
    %c0_i32 = arith.constant 0 : i32
    return %arg0, %arg1 : i32, i32
  }
}

module attributes {stable_mosaic.version = 11 : i64} {
  func.func @_matmul_bias_1k_kernel(%arg0: i32, %arg1: i32, %arg2: memref<256x384xbf16, #tpu.memory_space<vmem>>, %arg3: memref<384x128xbf16, #tpu.memory_space<vmem>>, %arg4: memref<1x128xf32, #tpu.memory_space<vmem>>, %arg5: memref<256x128xf32, #tpu.memory_space<vmem>>) attributes {dimension_semantics = [#tpu.dimension_semantics<parallel>, #tpu.dimension_semantics<parallel>], iteration_bounds = array<i64: 2, 1>, scalar_prefetch = 0 : i64, scratch_operands = 0 : i64, tpu.core_type = #tpu.core_type<tc>, window_params = [{transform_indices = @transform_0, window_bounds = array<i64: 256, 384>}, {transform_indices = @transform_1, window_bounds = array<i64: 384, 128>}, {transform_indices = @transform_2, window_bounds = array<i64: 1, 128>}, {transform_indices = @transform_3, window_bounds = array<i64: 256, 128>}]} {
    %c0 = arith.constant 0 : index
    %c0_0 = arith.constant 0 : index
    %0 = vector.load %arg2[%c0, %c0_0] : memref<256x384xbf16, #tpu.memory_space<vmem>>, vector<256x384xbf16>
    %c0_1 = arith.constant 0 : index
    %c0_2 = arith.constant 0 : index
    %1 = vector.load %arg3[%c0_1, %c0_2] : memref<384x128xbf16, #tpu.memory_space<vmem>>, vector<384x128xbf16>
    %cst = arith.constant dense<0.000000e+00> : vector<256x128xf32>
    %2 = tpu.matmul %0, %1, %cst {dimension_numbers = #tpu.dot_dimension_numbers<[1], [0], [0], [1], [0, 0, 1, 1], [], []>} : vector<256x384xbf16>, vector<384x128xbf16>, vector<256x128xf32> -> vector<256x128xf32>
    %c0_3 = arith.constant 0 : index
    %c0_4 = arith.constant 0 : index
    %3 = vector.load %arg4[%c0_3, %c0_4] : memref<1x128xf32, #tpu.memory_space<vmem>>, vector<1x128xf32>
    %4 = vector.broadcast %3 : vector<1x128xf32> to vector<256x128xf32>
    %5 = arith.addf %2, %4 : vector<256x128xf32>
    %c0_5 = arith.constant 0 : index
    %c0_6 = arith.constant 0 : index
    %6 = vector.load %arg5[%c0_5, %c0_6] : memref<256x128xf32, #tpu.memory_space<vmem>>, vector<256x128xf32>
    tpu.vector_store %arg5[%c0_5, %c0_6], %5 {strides = array<i32>} : memref<256x128xf32, #tpu.memory_space<vmem>>, vector<256x128xf32>,
    return
  }
  func.func @transform_0(%arg0: i32, %arg1: i32) -> (i32, i32) {
    %c0_i32 = arith.constant 0 : i32
    %c0_i32_0 = arith.constant 0 : i32
    return %arg0, %c0_i32 : i32, i32
  }
  func.func @transform_1(%arg0: i32, %arg1: i32) -> (i32, i32) {
    %c0_i32 = arith.constant 0 : i32
    %c0_i32_0 = arith.constant 0 : i32
    return %c0_i32, %arg1 : i32, i32
  }
  func.func @transform_2(%arg0: i32, %arg1: i32) -> (i32, i32) {
    %c0_i32 = arith.constant 0 : i32
    %c0_i32_0 = arith.constant 0 : i32
    return %c0_i32, %arg1 : i32, i32
  }
  func.func @transform_3(%arg0: i32, %arg1: i32) -> (i32, i32) {
    %c0_i32 = arith.constant 0 : i32
    return %arg0, %arg1 : i32, i32
  }
}

</mosaic_0001>

<bundles_post_ra>
// kernel: skvqgan_forward.41
= control target key start
LH: loop header
LB: loop body
LE: loop exit
PB: predicated region body
PF: predicated region fallthrough
CT: control target
= control target key end

     0   :  { %s1225_s12 = smov 0   ;;  %s1227_s13 = smov 0   ;;  %s1362_s0 = inlined_call_operand.vmem [shape: bf16[512,128], index: 0, kind: input, shape index: {}]   ;;  %s1363_s1 = inlined_call_operand.vmem [shape: bf16[128,128], index: 1, kind: input, shape index: {}]   ;;  %s1364_s2 = inlined_call_operand.vmem [shape: f32[1,128], index: 2, kind: input, shape index: {}]   ;;  %s1365_s3 = inlined_call_operand.vmem [shape: bf16[512,128], index: 3, kind: output, shape index: {}]  }
   0x1   :  { %s1229_s14 = smov 0  }
   0x2 LB: > { %s25_s15 = sadd.s32 1, %s1199_s13  ;;  %p854_p0 = scmp.ge.s32.totalorder %s1203_s14, 1  ;;  %s1203_s14 = sphi %s1229_s14, %s13_s14   ;;  %s1199_s13 = sphi %s1227_s13, %s1367_s13   ;;  %s1195_s12 = sphi %s1225_s12, %s1366_s12  }
   0x3   : > { %p27_p1 = scmp.ge.s32.totalorder %s25_s15, 2  ;;  %p169_p2 = scmp.lt.s32.totalorder %s1203_s14, 3 }
   0x5   : > { %s1369_s15 = smov (%p27_p1, %s25_s15), 0  ;;  %p170_p3 = pnand %p854_p0, %p169_p2 }
   0x6   : > { %v1157_v0 = vld [vmem:[%s1363_s1] sm:$0xff] (!%p170_p3)   ;;  %s855_s18 = sshll.u32 (!%p170_p3), %s1195_s12, 5  ;;  %v1158_v1 = vld [vmem:[%s1363_s1 + $0x8] sm:$0xff] (!%p170_p3)   ;;  %v1159_v2 = vld [vmem:[%s1363_s1 + $0x10] sm:$0xff] (!%p170_p3)  }
   0x7   : > { %173 = sbr.rel (%p170_p3) target bundleno = 283 (0x11b), region = 32  ;;  %p204_p4 = scmp.lt.s32.totalorder (!%p170_p3), %s855_s18, 63  ;;  %1069 = vmatprep.subr.bf16.mxu0 (!%p170_p3), %v1157_v0  ;;  %1117 = vmatprep.subr.bf16.mxu1 (!%p170_p3), %v1157_v0  ;;  %v1160_v3 = vld [vmem:[%s1363_s1 + $0x18] sm:$0xff] (!%p170_p3)   ;;  %v1161_v6 = vld [vmem:[%s1363_s1 + $0x20] sm:$0xff] (!%p170_p3)   ;;  %v1162_v7 = vld [vmem:[%s1363_s1 + $0x28] sm:$0xff] (!%p170_p3)  }
   0x8   : > { %1070 = vmatpush3.bf16.msra.mxu0 (!%p170_p3), %v1157_v0  ;;  %1125 = vmatpush3.bf16.msra.mxu1 (!%p170_p3), %v1157_v0  ;;  %v1163_v8 = vld [vmem:[%s1363_s1 + $0x30] sm:$0xff] (!%p170_p3)   ;;  %v1164_v9 = vld [vmem:[%s1363_s1 + $0x38] sm:$0xff] (!%p170_p3)   ;;  %v1296_v25 = vld [vmem:[%s1364_s2] ss:$0 sm:$0xff] (!%p170_p3) }
   0x9   : > { %1071 = vmatprep.subr.bf16.mxu0 (!%p170_p3), %v1158_v1  ;;  %1118 = vmatprep.subr.bf16.mxu1 (!%p170_p3), %v1158_v1 }
   0xc   : > { %1072 = vmatpush3.bf16.msra.mxu0 (!%p170_p3), %v1158_v1  ;;  %1126 = vmatpush3.bf16.msra.mxu1 (!%p170_p3), %v1158_v1 }
   0xd   : > { %1073 = vmatprep.subr.bf16.mxu0 (!%p170_p3), %v1159_v2  ;;  %1119 = vmatprep.subr.bf16.mxu1 (!%p170_p3), %v1159_v2 }
   0xe   : > { %s1371_s18 = smov (!%p204_p4, %s855_s18), 63 }
   0xf   : > { %s856_s23 = sshll.u32 %s1371_s18, 2 }
  0x10   : > { %s1260_s26 = scalar_lea.vmem %s1362_s0, %s856_s23  ;;  %1074 = vmatpush3.bf16.msra.mxu0 %v1159_v2  ;;  %1127 = vmatpush3.bf16.msra.mxu1 %v1159_v2  ;;  %s1309_s17 = scalar_lea.vmem %s1365_s3, %s856_s23 }
  0x11   : > { %v1165_v4 = vld [vmem:[%s1260_s26] sm:$0xff]   ;;  %1075 = vmatprep.subr.bf16.mxu0 %v1160_v3  ;;  %1120 = vmatprep.subr.bf16.mxu1 %v1160_v3  ;;  %v1167_v10 = vld [vmem:[%s1260_s26 + $0x8] sm:$0xff]   ;;  %v1169_v12 = vld [vmem:[%s1260_s26 + $0x10] sm:$0xff]  }
  0x12   : > { %v1166_v5 = vld [vmem:[%s1260_s26 + $0x40] sm:$0xff]   ;;  %1085 = vmatprep.mubr.bf16.mxu0 %v1165_v4  ;;  %v1168_v11 = vld [vmem:[%s1260_s26 + $0x48] sm:$0xff]   ;;  %v1170_v13 = vld [vmem:[%s1260_s26 + $0x50] sm:$0xff]  }
  0x13   : > { %1101 = vmatprep.mubr.bf16.mxu1 %v1166_v5  ;;  %v1171_v14 = vld [vmem:[%s1260_s26 + $0x18] sm:$0xff]   ;;  %v1173_v16 = vld [vmem:[%s1260_s26 + $0x20] sm:$0xff]   ;;  %v1175_v18 = vld [vmem:[%s1260_s26 + $0x28] sm:$0xff]  }
  0x14   : > { %1076 = vmatpush3.bf16.msra.mxu0 %v1160_v3  ;;  %1128 = vmatpush3.bf16.msra.mxu1 %v1160_v3  ;;  %v1172_v15 = vld [vmem:[%s1260_s26 + $0x58] sm:$0xff]   ;;  %v1174_v17 = vld [vmem:[%s1260_s26 + $0x60] sm:$0xff]   ;;  %v1176_v19 = vld [vmem:[%s1260_s26 + $0x68] sm:$0xff]  }
  0x15   : > { %1077 = vmatprep.subr.bf16.mxu0 %v1161_v6  ;;  %1121 = vmatprep.subr.bf16.mxu1 %v1161_v6  ;;  %v1177_v20 = vld [vmem:[%s1260_s26 + $0x30] sm:$0xff]   ;;  %v1179_v22 = vld [vmem:[%s1260_s26 + $0x38] sm:$0xff]  }
  0x16   : > { %v1178_v21 = vld [vmem:[%s1260_s26 + $0x70] sm:$0xff]   ;;  %v1180_v23 = vld [vmem:[%s1260_s26 + $0x78] sm:$0xff]  }
  0x18   : > { %1078 = vmatpush3.bf16.msra.mxu0 %v1161_v6  ;;  %1129 = vmatpush3.bf16.msra.mxu1 %v1161_v6 }
  0x19   : > { %1079 = vmatprep.subr.bf16.mxu0 %v1162_v7  ;;  %1122 = vmatprep.subr.bf16.mxu1 %v1162_v7 }
  0x1c   : > { %1080 = vmatpush3.bf16.msra.mxu0 %v1162_v7  ;;  %1130 = vmatpush3.bf16.msra.mxu1 %v1162_v7 }
  0x1d   : > { %1081 = vmatprep.subr.bf16.mxu0 %v1163_v8  ;;  %1123 = vmatprep.subr.bf16.mxu1 %v1163_v8 }
  0x20   : > { %1082 = vmatpush3.bf16.msra.mxu0 %v1163_v8  ;;  %1131 = vmatpush3.bf16.msra.mxu1 %v1163_v8 }
  0x21   : > { %1083 = vmatprep.subr.bf16.mxu0 %v1164_v9  ;;  %1124 = vmatprep.subr.bf16.mxu1 %v1164_v9 }
  0x24   : > { %1084 = vmatpush3.bf16.msra.mxu0 %v1164_v9  ;;  %1132 = vmatpush3.bf16.msra.mxu1 %v1164_v9 }
  0x27   : > { %1086 = vmatmul.mubr.bf16.vlgmr.msra.gmra.mrb[0].mxu0 %v1167_v10  ;;  %1102 = vmatmul.mubr.bf16.vlgmr.msra.gmra.mrb[0].mxu1 %v1168_v11 }
  0x28   : > { %1089 = vmatprep.mubr.bf16.mxu0 %v1169_v12  ;;  %1105 = vmatprep.mubr.bf16.mxu1 %v1170_v13 }
  0x2f   : > { %1090 = vmatmul.mubr.bf16.gmra.mrb[4].mxu0 %v1171_v14  ;;  %1106 = vmatmul.mubr.bf16.gmra.mrb[4].mxu1 %v1172_v15 }
  0x30   : > { %1093 = vmatprep.mubr.bf16.mxu0 %v1173_v16  ;;  %1109 = vmatprep.mubr.bf16.mxu1 %v1174_v17 }
  0x37   : > { %1094 = vmatmul.mubr.bf16.gmra.mrb[8].mxu0 %v1175_v18  ;;  %1110 = vmatmul.mubr.bf16.gmra.mrb[8].mxu1 %v1176_v19 }
  0x38   : > { %1097 = vmatprep.mubr.bf16.mxu0 %v1177_v20  ;;  %1113 = vmatprep.mubr.bf16.mxu1 %v1178_v21 }
  0x3f   : > { %1098 = vmatmul.mubr.bf16.gmra.mrb[12].mxu0 %v1179_v22  ;;  %1114 = vmatmul.mubr.bf16.gmra.mrb[12].mxu1 %v1180_v23 }
  0xfa   : > { %v1087_v24 = vpop.f32.mrb[0].mxu0  ;;  %v1103_v26 = vpop.f32.mrb[0].mxu1 }
  0xfb   : > { %v459_v27 = vpop.f32.mrb[1].mxu0  ;;  %v523_v28 = vpop.f32.mrb[1].mxu1  ;;  %v468_v31 = vadd.f32 %v1087_v24, %v1296_v25  ;;  %v532_v32 = vadd.f32 %v1103_v26, %v1296_v25 }
  0xfc   : > { %v1088_v29 = vpop.f32.mrb[2].mxu0  ;;  %v1104_v30 = vpop.f32.mrb[2].mxu1  ;;  %v460_v37 = vadd.f32 %v1296_v25, %v459_v27  ;;  %v524_v38 = vadd.f32 %v1296_v25, %v523_v28 }
  0xfd   : > { %v471_v33 = vadd.f32 %v1088_v29, %v1296_v25  ;;  %v535_v34 = vadd.f32 %v1104_v30, %v1296_v25  ;;  %v462_v35 = vpop.f32.mrb[3].mxu0  ;;  %v526_v36 = vpop.f32.mrb[3].mxu1 }
  0xfe   : > { %v463_v39 = vadd.f32 %v1296_v25, %v462_v35  ;;  %v527_v40 = vadd.f32 %v1296_v25, %v526_v36 }
  0xff   : > { %v958_v41 = vpack.c.bf16 %v471_v33, %v468_v31  ;;  %v998_v42 = vpack.c.bf16 %v535_v34, %v532_v32 }
 0x100   : > { %v953_v43 = vpack.c.bf16 %v463_v39, %v460_v37  ;;  %v993_v44 = vpack.c.bf16 %v527_v40, %v524_v38 }
 0x101   : > { %1030 = vst [vmem:[%s1309_s17 + $0x8] sm:$0xff] %v958_v41   ;;  %1038 = vst [vmem:[%s1309_s17 + $0x48] sm:$0xff] %v998_v42  }
 0x102   : > { %954 = vst [vmem:[%s1309_s17] sm:$0xff] %v953_v43   ;;  %1037 = vst [vmem:[%s1309_s17 + $0x40] sm:$0xff] %v993_v44   ;;  %v1091_v45 = vpop.f32.mrb[4].mxu0  ;;  %v1107_v46 = vpop.f32.mrb[4].mxu1 }
 0x103   : > { %v475_v47 = vpop.f32.mrb[5].mxu0  ;;  %v539_v48 = vpop.f32.mrb[5].mxu1  ;;  %v484_v51 = vadd.f32 %v1091_v45, %v1296_v25  ;;  %v548_v52 = vadd.f32 %v1107_v46, %v1296_v25 }
 0x104   : > { %v1092_v49 = vpop.f32.mrb[6].mxu0  ;;  %v1108_v50 = vpop.f32.mrb[6].mxu1  ;;  %v476_v57 = vadd.f32 %v1296_v25, %v475_v47  ;;  %v540_v58 = vadd.f32 %v1296_v25, %v539_v48 }
 0x105   : > { %v487_v53 = vadd.f32 %v1092_v49, %v1296_v25  ;;  %v551_v54 = vadd.f32 %v1108_v50, %v1296_v25  ;;  %v478_v55 = vpop.f32.mrb[7].mxu0  ;;  %v542_v56 = vpop.f32.mrb[7].mxu1 }
 0x106   : > { %v479_v59 = vadd.f32 %v1296_v25, %v478_v55  ;;  %v543_v60 = vadd.f32 %v1296_v25, %v542_v56 }
 0x107   : > { %v968_v61 = vpack.c.bf16 %v487_v53, %v484_v51  ;;  %v1008_v62 = vpack.c.bf16 %v551_v54, %v548_v52 }
 0x108   : > { %v963_v63 = vpack.c.bf16 %v479_v59, %v476_v57  ;;  %v1003_v0 = vpack.c.bf16 %v543_v60, %v540_v58 }
 0x109   : > { %1032 = vst [vmem:[%s1309_s17 + $0x18] sm:$0xff] %v968_v61   ;;  %1040 = vst [vmem:[%s1309_s17 + $0x58] sm:$0xff] %v1008_v62  }
 0x10a   : > { %1031 = vst [vmem:[%s1309_s17 + $0x10] sm:$0xff] %v963_v63   ;;  %1039 = vst [vmem:[%s1309_s17 + $0x50] sm:$0xff] %v1003_v0   ;;  %v1095_v1 = vpop.f32.mrb[8].mxu0  ;;  %v1111_v2 = vpop.f32.mrb[8].mxu1 }
 0x10b   : > { %v491_v3 = vpop.f32.mrb[9].mxu0  ;;  %v555_v4 = vpop.f32.mrb[9].mxu1  ;;  %v500_v7 = vadd.f32 %v1095_v1, %v1296_v25  ;;  %v564_v8 = vadd.f32 %v1111_v2, %v1296_v25 }
 0x10c   : > { %v1096_v5 = vpop.f32.mrb[10].mxu0  ;;  %v1112_v6 = vpop.f32.mrb[10].mxu1  ;;  %v492_v13 = vadd.f32 %v1296_v25, %v491_v3  ;;  %v556_v14 = vadd.f32 %v1296_v25, %v555_v4 }
 0x10d   : > { %v503_v9 = vadd.f32 %v1096_v5, %v1296_v25  ;;  %v567_v10 = vadd.f32 %v1112_v6, %v1296_v25  ;;  %v494_v11 = vpop.f32.mrb[11].mxu0  ;;  %v558_v12 = vpop.f32.mrb[11].mxu1 }
 0x10e   : > { %v495_v15 = vadd.f32 %v1296_v25, %v494_v11  ;;  %v559_v16 = vadd.f32 %v1296_v25, %v558_v12 }
 0x10f   : > { %v978_v17 = vpack.c.bf16 %v503_v9, %v500_v7  ;;  %v1018_v18 = vpack.c.bf16 %v567_v10, %v564_v8 }
 0x110   : > { %v973_v19 = vpack.c.bf16 %v495_v15, %v492_v13  ;;  %v1013_v20 = vpack.c.bf16 %v559_v16, %v556_v14 }
 0x111   : > { %1034 = vst [vmem:[%s1309_s17 + $0x28] sm:$0xff] %v978_v17   ;;  %1042 = vst [vmem:[%s1309_s17 + $0x68] sm:$0xff] %v1018_v18  }
 0x112   : > { %1033 = vst [vmem:[%s1309_s17 + $0x20] sm:$0xff] %v973_v19   ;;  %1041 = vst [vmem:[%s1309_s17 + $0x60] sm:$0xff] %v1013_v20   ;;  %v1099_v21 = vpop.f32.mrb[12].mxu0  ;;  %v1115_v22 = vpop.f32.mrb[12].mxu1 }
 0x113   : > { %v507_v23 = vpop.f32.mrb[13].mxu0  ;;  %v571_v24 = vpop.f32.mrb[13].mxu1  ;;  %v516_v28 = vadd.f32 %v1099_v21, %v1296_v25  ;;  %v580_v29 = vadd.f32 %v1115_v22, %v1296_v25 }
 0x114   : > { %v1100_v26 = vpop.f32.mrb[14].mxu0  ;;  %v1116_v27 = vpop.f32.mrb[14].mxu1  ;;  %v508_v34 = vadd.f32 %v1296_v25, %v507_v23  ;;  %v572_v35 = vadd.f32 %v1296_v25, %v571_v24 }
 0x115   : > { %v519_v30 = vadd.f32 %v1100_v26, %v1296_v25  ;;  %v583_v31 = vadd.f32 %v1116_v27, %v1296_v25  ;;  %v510_v32 = vpop.f32.mrb[15].mxu0  ;;  %v574_v33 = vpop.f32.mrb[15].mxu1 }
 0x116   : > { %v511_v36 = vadd.f32 %v1296_v25, %v510_v32  ;;  %v575_v37 = vadd.f32 %v1296_v25, %v574_v33 }
 0x117   : > { %v988_v38 = vpack.c.bf16 %v519_v30, %v516_v28  ;;  %v1028_v39 = vpack.c.bf16 %v583_v31, %v580_v29 }
 0x118   : > { %v983_v40 = vpack.c.bf16 %v511_v36, %v508_v34  ;;  %v1023_v41 = vpack.c.bf16 %v575_v37, %v572_v35 }
 0x119   : > { %1036 = vst [vmem:[%s1309_s17 + $0x38] sm:$0xff] %v988_v38   ;;  %1044 = vst [vmem:[%s1309_s17 + $0x78] sm:$0xff] %v1028_v39  }
 0x11a   : > { %1035 = vst [vmem:[%s1309_s17 + $0x30] sm:$0xff] %v983_v40   ;;  %1043 = vst [vmem:[%s1309_s17 + $0x70] sm:$0xff] %v1023_v41  }
 0x11b PF: > { %s13_s14 = sadd.s32 1, %s1203_s14   ;;  %s1366_s12 = smov %s1199_s13 }
 0x11c   : > { %p10_p5 = scmp.ge.s32.totalorder %s13_s14, 4   ;;  %s1367_s13 = smov %s1369_s15 }
 0x11e   :  { %12 = sbr.rel (!%p10_p5) target bundleno = 2 (0x2), region = 68 }

// kernel: skvqgan_forward.44
= control target key start
LH: loop header
LB: loop body
LE: loop exit
PB: predicated region body
PF: predicated region fallthrough
CT: control target
= control target key end

     0   :  { %s1157_s1 = inlined_call_operand.vmem [shape: bf16[384,128], index: 1, kind: input, shape index: {}]   ;;  %s1158_s0 = inlined_call_operand.vmem [shape: bf16[128,384], index: 0, kind: input, shape index: {}]   ;;  %s1159_s2 = inlined_call_operand.vmem [shape: f32[1,128], index: 2, kind: input, shape index: {}]   ;;  %s1160_s3 = inlined_call_operand.vmem [shape: bf16[128,128], index: 3, kind: output, shape index: {}]  }
   0x1   :  { %v892_v0 = vld [vmem:[%s1157_s1 + $0x40] sm:$0xff]   ;;  %v894_v2 = vld [vmem:[%s1157_s1 + $0x48] sm:$0xff]   ;;  %v897_v5 = vld [vmem:[%s1157_s1 + $0x50] sm:$0xff]  }
   0x2   :  { %v893_v1 = vld [vmem:[%s1157_s1] sm:$0xff]   ;;  %780 = vmatprep.subr.bf16.mxu0 %v892_v0  ;;  %v896_v4 = vld [vmem:[%s1157_s1 + $0x8] sm:$0xff]   ;;  %v899_v7 = vld [vmem:[%s1157_s1 + $0x10] sm:$0xff]  }
   0x3   :  { %781 = vmatpush3.bf16.msra.mxu0 %v893_v1  ;;  %v895_v3 = vld [vmem:[%s1157_s1 + $0x80] sm:$0xff]   ;;  %v898_v6 = vld [vmem:[%s1157_s1 + $0x88] sm:$0xff]   ;;  %v900_v8 = vld [vmem:[%s1157_s1 + $0x58] sm:$0xff]  }
   0x4   :  { %782 = vmatprep.subr.bf16.mxu0 %v894_v2  ;;  %860 = vmatprep.subr.bf16.mxu1 %v895_v3  ;;  %v901_v9 = vld [vmem:[%s1157_s1 + $0x90] sm:$0xff]   ;;  %v902_v10 = vld [vmem:[%s1157_s1 + $0x18] sm:$0xff]   ;;  %v903_v11 = vld [vmem:[%s1157_s1 + $0x60] sm:$0xff]  }
   0x5   :  { %861 = vmatpush3.bf16.msra.mxu1 %v895_v3  ;;  %v904_v12 = vld [vmem:[%s1157_s1 + $0x98] sm:$0xff]   ;;  %v905_v13 = vld [vmem:[%s1157_s1 + $0x20] sm:$0xff]   ;;  %v906_v15 = vld [vmem:[%s1157_s1 + $0x68] sm:$0xff]  }
   0x6   :  { %862 = vmatprep.subr.bf16.mxu1 %v898_v6  ;;  %v907_v14 = vld [vmem:[%s1157_s1 + $0xa0] sm:$0xff]   ;;  %v908_v16 = vld [vmem:[%s1157_s1 + $0x28] sm:$0xff]   ;;  %v909_v18 = vld [vmem:[%s1157_s1 + $0x70] sm:$0xff]  }
   0x7   :  { %783 = vmatpush3.bf16.msra.mxu0 %v896_v4  ;;  %v910_v17 = vld [vmem:[%s1157_s1 + $0xa8] sm:$0xff]   ;;  %v911_v19 = vld [vmem:[%s1157_s1 + $0x30] sm:$0xff]   ;;  %v912_v20 = vld [vmem:[%s1157_s1 + $0x78] sm:$0xff]  }
   0x8   :  { %784 = vmatprep.subr.bf16.mxu0 %v897_v5  ;;  %v913_v21 = vld [vmem:[%s1157_s1 + $0xb0] sm:$0xff]   ;;  %v914_v23 = vld [vmem:[%s1157_s1 + $0x38] sm:$0xff]   ;;  %v915_v26 = vld [vmem:[%s1158_s0] ss:$12 sps:$4 sm:$0xff]  }
   0x9   :  { %863 = vmatpush3.bf16.msra.mxu1 %v898_v6  ;;  %v917_v22 = vld [vmem:[%s1158_s0 + $0x4] ss:$12 sps:$4 sm:$0xff]   ;;  %v919_v24 = vld [vmem:[%s1158_s0 + $0x8] ss:$12 sps:$4 sm:$0xff]   ;;  %v918_v25 = vld [vmem:[%s1157_s1 + $0xb8] sm:$0xff]  }
   0xa   :  { %864 = vmatprep.subr.bf16.mxu1 %v901_v9  ;;  %406 = vmatprep.mubr.bf16.mxu0 %v917_v22  ;;  %v921_v27 = vld [vmem:[%s1158_s0 + $0x1c] ss:$12 sps:$4 sm:$0xff]   ;;  %v920_v28 = vld [vmem:[%s1158_s0 + $0x20] ss:$12 sps:$4 sm:$0xff]   ;;  %v927_v29 = vld [vmem:[%s1158_s0 + $0x38] ss:$12 sps:$4 sm:$0xff]  }
   0xb   :  { %785 = vmatpush3.bf16.msra.mxu0 %v899_v7  ;;  %876 = vmatprep.mubr.bf16.mxu1 %v919_v24  ;;  %v923_v30 = vld [vmem:[%s1158_s0 + $0x18] ss:$12 sps:$4 sm:$0xff]   ;;  %v924_v31 = vld [vmem:[%s1158_s0 + $0x34] ss:$12 sps:$4 sm:$0xff]   ;;  %v928_v32 = vld [vmem:[%s1158_s0 + $0x50] ss:$12 sps:$4 sm:$0xff]  }
   0xc   :  { %786 = vmatprep.subr.bf16.mxu0 %v900_v8  ;;  %v935_v33 = vld [vmem:[%s1158_s0 + $0x68] ss:$12 sps:$4 sm:$0xff]   ;;  %v926_v34 = vld [vmem:[%s1158_s0 + $0x30] ss:$12 sps:$4 sm:$0xff]   ;;  %v929_v35 = vld [vmem:[%s1158_s0 + $0x4c] ss:$12 sps:$4 sm:$0xff]  }
   0xd   :  { %865 = vmatpush3.bf16.msra.mxu1 %v901_v9  ;;  %v936_v36 = vld [vmem:[%s1158_s0 + $0x80] ss:$12 sps:$4 sm:$0xff]   ;;  %v943_v37 = vld [vmem:[%s1158_s0 + $0x98] ss:$12 sps:$4 sm:$0xff]   ;;  %v931_v38 = vld [vmem:[%s1158_s0 + $0x48] ss:$12 sps:$4 sm:$0xff]  }
   0xe   :  { %866 = vmatprep.subr.bf16.mxu1 %v904_v12  ;;  %v932_v39 = vld [vmem:[%s1158_s0 + $0x64] ss:$12 sps:$4 sm:$0xff]   ;;  %v934_v41 = vld [vmem:[%s1158_s0 + $0x60] ss:$12 sps:$4 sm:$0xff]   ;;  %v937_v42 = vld [vmem:[%s1158_s0 + $0x7c] ss:$12 sps:$4 sm:$0xff]  }
   0xf   :  { %787 = vmatpush3.bf16.msra.mxu0 %v902_v10  ;;  %v944_v40 = vld [vmem:[%s1158_s0 + $0xb0] ss:$12 sps:$4 sm:$0xff]   ;;  %v939_v43 = vld [vmem:[%s1158_s0 + $0x78] ss:$12 sps:$4 sm:$0xff]   ;;  %v940_v44 = vld [vmem:[%s1158_s0 + $0x94] ss:$12 sps:$4 sm:$0xff]  }
  0x10   :  { %788 = vmatprep.subr.bf16.mxu0 %v903_v11  ;;  %v942_v45 = vld [vmem:[%s1158_s0 + $0x90] ss:$12 sps:$4 sm:$0xff]   ;;  %v945_v46 = vld [vmem:[%s1158_s0 + $0xac] ss:$12 sps:$4 sm:$0xff]   ;;  %v947_v47 = vld [vmem:[%s1158_s0 + $0xa8] ss:$12 sps:$4 sm:$0xff]  }
  0x11   :  { %867 = vmatpush3.bf16.msra.mxu1 %v904_v12  ;;  %v1115_v50 = vld [vmem:[%s1159_s2] ss:$0 sm:$0xff] }
  0x12   :  { %868 = vmatprep.subr.bf16.mxu1 %v907_v14 }
  0x13   :  { %789 = vmatpush3.bf16.msra.mxu0 %v905_v13 }
  0x14   :  { %790 = vmatprep.subr.bf16.mxu0 %v906_v15 }
  0x15   :  { %869 = vmatpush3.bf16.msra.mxu1 %v907_v14 }
  0x16   :  { %870 = vmatprep.subr.bf16.mxu1 %v910_v17 }
  0x17   :  { %791 = vmatpush3.bf16.msra.mxu0 %v908_v16 }
  0x18   :  { %792 = vmatprep.subr.bf16.mxu0 %v909_v18 }
  0x19   :  { %871 = vmatpush3.bf16.msra.mxu1 %v910_v17 }
  0x1a   :  { %872 = vmatprep.subr.bf16.mxu1 %v913_v21 }
  0x1b   :  { %793 = vmatpush3.bf16.msra.mxu0 %v911_v19 }
  0x1c   :  { %794 = vmatprep.subr.bf16.mxu0 %v912_v20 }
  0x1d   :  { %873 = vmatpush3.bf16.msra.mxu1 %v913_v21 }
  0x1e   :  { %874 = vmatprep.subr.bf16.mxu1 %v918_v25 }
  0x1f   :  { %795 = vmatpush3.bf16.msra.mxu0 %v914_v23 }
  0x21   :  { %875 = vmatpush3.bf16.msra.mxu1 %v918_v25 }
  0x22   :  { %407 = vmatmul.mubr.bf16.vlgmr.msra.gmra.mrb[0].mxu0 %v915_v26 }
  0x23   :  { %414 = vmatprep.mubr.bf16.mxu0 %v921_v27 }
  0x24   :  { %877 = vmatmul.mubr.bf16.vlgmr.msra.gmra.mrb[0].mxu1 %v920_v28 }
  0x25   :  { %880 = vmatprep.mubr.bf16.mxu1 %v927_v29 }
  0x2a   :  { %415 = vmatmul.mubr.bf16.gmra.mrb[4].mxu0 %v923_v30 }
  0x2b   :  { %422 = vmatprep.mubr.bf16.mxu0 %v924_v31 }
  0x2c   :  { %881 = vmatmul.mubr.bf16.gmra.mrb[4].mxu1 %v928_v32 }
  0x2d   :  { %884 = vmatprep.mubr.bf16.mxu1 %v935_v33 }
  0x32   :  { %423 = vmatmul.mubr.bf16.gmra.mrb[8].mxu0 %v926_v34 }
  0x33   :  { %430 = vmatprep.mubr.bf16.mxu0 %v929_v35 }
  0x34   :  { %885 = vmatmul.mubr.bf16.gmra.mrb[8].mxu1 %v936_v36 }
  0x35   :  { %888 = vmatprep.mubr.bf16.mxu1 %v943_v37 }
  0x3a   :  { %431 = vmatmul.mubr.bf16.gmra.mrb[12].mxu0 %v931_v38 }
  0x3b   :  { %438 = vmatprep.mubr.bf16.mxu0 %v932_v39 }
  0x3c   :  { %889 = vmatmul.mubr.bf16.gmra.mrb[12].mxu1 %v944_v40 }
  0x42   :  { %439 = vmatmul.mubr.bf16.gmra.mrb[16].mxu0 %v934_v41 }
  0x43   :  { %446 = vmatprep.mubr.bf16.mxu0 %v937_v42 }
  0x4a   :  { %447 = vmatmul.mubr.bf16.gmra.mrb[20].mxu0 %v939_v43 }
  0x4b   :  { %454 = vmatprep.mubr.bf16.mxu0 %v940_v44 }
  0x52   :  { %455 = vmatmul.mubr.bf16.gmra.mrb[24].mxu0 %v942_v45 }
  0x53   :  { %462 = vmatprep.mubr.bf16.mxu0 %v945_v46 }
  0x5a   :  { %463 = vmatmul.mubr.bf16.gmra.mrb[28].mxu0 %v947_v47 }
  0xf5   :  { %v796_v48 = vpop.f32.mrb[0].mxu0 }
  0xf6   :  { %v797_v49 = vpop.f32.mrb[1].mxu0 }
  0xf7   :  { %v798_v51 = vadd.f32 %v797_v49, %v796_v48  ;;  %v799_v52 = vpop.f32.mrb[2].mxu0  ;;  %v878_v54 = vpop.f32.mrb[0].mxu1 }
  0xf8   :  { %v800_v53 = vpop.f32.mrb[3].mxu0  ;;  %v505_v57 = vpop.f32.mrb[1].mxu1 }
  0xf9   :  { %v801_v55 = vadd.f32 %v800_v53, %v799_v52  ;;  %v409_v56 = vadd.f32 %v798_v51, %v1115_v50  ;;  %v879_v58 = vpop.f32.mrb[2].mxu1 }
  0xfa   :  { %v508_v61 = vpop.f32.mrb[3].mxu1 }
  0xfb   :  { %v506_v59 = vadd.f32 %v505_v57, %v409_v56  ;;  %v412_v60 = vadd.f32 %v801_v55, %v1115_v50 }
  0xfd   :  { %v509_v62 = vadd.f32 %v508_v61, %v412_v60  ;;  %v802_v63 = vpop.f32.mrb[4].mxu0 }
  0xfe   :  { %v803_v0 = vpop.f32.mrb[5].mxu0 }
  0xff   :  { %v736_v1 = vpack.c.bf16 %v509_v62, %v506_v59  ;;  %v804_v2 = vadd.f32 %v803_v0, %v802_v63  ;;  %v805_v3 = vpop.f32.mrb[6].mxu0  ;;  %v882_v5 = vpop.f32.mrb[4].mxu1 }
 0x100   :  { %v806_v4 = vpop.f32.mrb[7].mxu0  ;;  %v521_v8 = vpop.f32.mrb[5].mxu1 }
 0x101   :  { %737 = vst [vmem:[%s1160_s3] sm:$0xff] %v736_v1   ;;  %v417_v6 = vadd.f32 %v804_v2, %v1115_v50  ;;  %v807_v7 = vadd.f32 %v806_v4, %v805_v3  ;;  %v883_v9 = vpop.f32.mrb[6].mxu1 }
 0x102   :  { %v524_v12 = vpop.f32.mrb[7].mxu1 }
 0x103   :  { %v514_v10 = vadd.f32 %v878_v54, %v417_v6  ;;  %v420_v11 = vadd.f32 %v807_v7, %v1115_v50 }
 0x105   :  { %v517_v13 = vadd.f32 %v879_v58, %v420_v11  ;;  %v808_v14 = vpop.f32.mrb[8].mxu0 }
 0x106   :  { %v809_v15 = vpop.f32.mrb[9].mxu0 }
 0x107   :  { %v741_v16 = vpack.c.bf16 %v517_v13, %v514_v10  ;;  %v810_v17 = vadd.f32 %v809_v15, %v808_v14  ;;  %v811_v18 = vpop.f32.mrb[10].mxu0  ;;  %v886_v20 = vpop.f32.mrb[8].mxu1 }
 0x108   :  { %v812_v19 = vpop.f32.mrb[11].mxu0  ;;  %v537_v23 = vpop.f32.mrb[9].mxu1 }
 0x109   :  { %773 = vst [vmem:[%s1160_s3 + $0x8] sm:$0xff] %v741_v16   ;;  %v813_v21 = vadd.f32 %v812_v19, %v811_v18  ;;  %v425_v22 = vadd.f32 %v810_v17, %v1115_v50  ;;  %v887_v24 = vpop.f32.mrb[10].mxu1 }
 0x10a   :  { %v540_v27 = vpop.f32.mrb[11].mxu1 }
 0x10b   :  { %v522_v25 = vadd.f32 %v521_v8, %v425_v22  ;;  %v428_v26 = vadd.f32 %v813_v21, %v1115_v50 }
 0x10d   :  { %v525_v28 = vadd.f32 %v524_v12, %v428_v26  ;;  %v814_v29 = vpop.f32.mrb[12].mxu0 }
 0x10e   :  { %v815_v30 = vpop.f32.mrb[13].mxu0 }
 0x10f   :  { %v746_v31 = vpack.c.bf16 %v525_v28, %v522_v25  ;;  %v816_v32 = vadd.f32 %v815_v30, %v814_v29  ;;  %v817_v33 = vpop.f32.mrb[14].mxu0  ;;  %v890_v35 = vpop.f32.mrb[12].mxu1 }
 0x110   :  { %v818_v34 = vpop.f32.mrb[15].mxu0  ;;  %v553_v38 = vpop.f32.mrb[13].mxu1 }
 0x111   :  { %774 = vst [vmem:[%s1160_s3 + $0x10] sm:$0xff] %v746_v31   ;;  %v433_v36 = vadd.f32 %v816_v32, %v1115_v50  ;;  %v819_v37 = vadd.f32 %v818_v34, %v817_v33  ;;  %v891_v39 = vpop.f32.mrb[14].mxu1 }
 0x112   :  { %v556_v42 = vpop.f32.mrb[15].mxu1 }
 0x113   :  { %v530_v40 = vadd.f32 %v882_v5, %v433_v36  ;;  %v436_v41 = vadd.f32 %v819_v37, %v1115_v50 }
 0x115   :  { %v533_v43 = vadd.f32 %v883_v9, %v436_v41  ;;  %v820_v44 = vpop.f32.mrb[16].mxu0 }
 0x116   :  { %v821_v45 = vpop.f32.mrb[17].mxu0 }
 0x117   :  { %v751_v46 = vpack.c.bf16 %v533_v43, %v530_v40  ;;  %v822_v47 = vadd.f32 %v821_v45, %v820_v44  ;;  %v823_v48 = vpop.f32.mrb[18].mxu0 }
 0x118   :  { %v824_v49 = vpop.f32.mrb[19].mxu0 }
 0x119   :  { %775 = vst [vmem:[%s1160_s3 + $0x18] sm:$0xff] %v751_v46   ;;  %v825_v51 = vadd.f32 %v824_v49, %v823_v48  ;;  %v441_v52 = vadd.f32 %v822_v47, %v1115_v50 }
 0x11b   :  { %v538_v53 = vadd.f32 %v537_v23, %v441_v52  ;;  %v444_v54 = vadd.f32 %v825_v51, %v1115_v50 }
 0x11d   :  { %v541_v55 = vadd.f32 %v540_v27, %v444_v54  ;;  %v826_v56 = vpop.f32.mrb[20].mxu0 }
 0x11e   :  { %v827_v57 = vpop.f32.mrb[21].mxu0 }
 0x11f   :  { %v756_v58 = vpack.c.bf16 %v541_v55, %v538_v53  ;;  %v828_v59 = vadd.f32 %v827_v57, %v826_v56  ;;  %v829_v60 = vpop.f32.mrb[22].mxu0 }
 0x120   :  { %v830_v61 = vpop.f32.mrb[23].mxu0 }
 0x121   :  { %776 = vst [vmem:[%s1160_s3 + $0x20] sm:$0xff] %v756_v58   ;;  %v449_v62 = vadd.f32 %v828_v59, %v1115_v50  ;;  %v831_v63 = vadd.f32 %v830_v61, %v829_v60 }
 0x123   :  { %v546_v0 = vadd.f32 %v886_v20, %v449_v62  ;;  %v452_v1 = vadd.f32 %v831_v63, %v1115_v50 }
 0x125   :  { %v549_v2 = vadd.f32 %v887_v24, %v452_v1  ;;  %v832_v3 = vpop.f32.mrb[24].mxu0 }
 0x126   :  { %v833_v4 = vpop.f32.mrb[25].mxu0 }
 0x127   :  { %v761_v5 = vpack.c.bf16 %v549_v2, %v546_v0  ;;  %v834_v6 = vadd.f32 %v833_v4, %v832_v3  ;;  %v835_v7 = vpop.f32.mrb[26].mxu0 }
 0x128   :  { %v836_v8 = vpop.f32.mrb[27].mxu0 }
 0x129   :  { %777 = vst [vmem:[%s1160_s3 + $0x28] sm:$0xff] %v761_v5   ;;  %v837_v9 = vadd.f32 %v836_v8, %v835_v7  ;;  %v457_v10 = vadd.f32 %v834_v6, %v1115_v50 }
 0x12b   :  { %v554_v11 = vadd.f32 %v553_v38, %v457_v10  ;;  %v460_v12 = vadd.f32 %v837_v9, %v1115_v50 }
 0x12d   :  { %v557_v13 = vadd.f32 %v556_v42, %v460_v12  ;;  %v838_v14 = vpop.f32.mrb[28].mxu0 }
 0x12e   :  { %v839_v15 = vpop.f32.mrb[29].mxu0 }
 0x12f   :  { %v766_v16 = vpack.c.bf16 %v557_v13, %v554_v11  ;;  %v840_v17 = vadd.f32 %v839_v15, %v838_v14  ;;  %v841_v18 = vpop.f32.mrb[30].mxu0 }
 0x130   :  { %v842_v19 = vpop.f32.mrb[31].mxu0 }
 0x131   :  { %778 = vst [vmem:[%s1160_s3 + $0x30] sm:$0xff] %v766_v16   ;;  %v465_v20 = vadd.f32 %v840_v17, %v1115_v50  ;;  %v843_v21 = vadd.f32 %v842_v19, %v841_v18 }
 0x133   :  { %v562_v22 = vadd.f32 %v890_v35, %v465_v20  ;;  %v468_v23 = vadd.f32 %v843_v21, %v1115_v50 }
 0x135   :  { %v565_v24 = vadd.f32 %v891_v39, %v468_v23 }
 0x137   :  { %v771_v25 = vpack.c.bf16 %v565_v24, %v562_v22 }
 0x139   :  { %779 = vst [vmem:[%s1160_s3 + $0x38] sm:$0xff] %v771_v25  }

// kernel: skvqgan_forward.42
= control target key start
LH: loop header
LB: loop body
LE: loop exit
PB: predicated region body
PF: predicated region fallthrough
CT: control target
= control target key end

     0   :  { %s1934_s12 = smov 0   ;;  %s1936_s13 = smov 0   ;;  %s2178_s0 = inlined_call_operand.vmem [shape: bf16[512,384], index: 0, kind: input, shape index: {}]   ;;  %s2179_s1 = inlined_call_operand.vmem [shape: bf16[384,128], index: 1, kind: input, shape index: {}]   ;;  %s2180_s2 = inlined_call_operand.vmem [shape: f32[1,128], index: 2, kind: input, shape index: {}]   ;;  %s2181_s3 = inlined_call_operand.vmem [shape: bf16[512,128], index: 3, kind: output, shape index: {}]  }
   0x1   :  { %s1938_s14 = smov 0  }
   0x2 LB: > { %s25_s15 = sadd.s32 1, %s1908_s13  ;;  %p1338_p0 = scmp.ge.s32.totalorder %s1912_s14, 1  ;;  %s1912_s14 = sphi %s1938_s14, %s13_s14   ;;  %s1908_s13 = sphi %s1936_s13, %s2183_s13   ;;  %s1904_s12 = sphi %s1934_s12, %s2182_s12  }
   0x3   : > { %p27_p1 = scmp.ge.s32.totalorder %s25_s15, 2  ;;  %p170_p2 = scmp.lt.s32.totalorder %s1912_s14, 3 }
   0x5   : > { %s2185_s15 = smov (%p27_p1, %s25_s15), 0  ;;  %p171_p3 = pnand %p1338_p0, %p170_p2 }
   0x6   : > { %v1802_v0 = vld [vmem:[%s2179_s1 + $0x40] sm:$0xff] (!%p171_p3)   ;;  %s1339_s18 = sshll.u32 (!%p171_p3), %s1904_s12, 5  ;;  %v1804_v2 = vld [vmem:[%s2179_s1 + $0x48] sm:$0xff] (!%p171_p3)   ;;  %v1806_v4 = vld [vmem:[%s2179_s1 + $0x50] sm:$0xff] (!%p171_p3)  }
   0x7   : > { %174 = sbr.rel (%p171_p3) target bundleno = 351 (0x15f), region = 32  ;;  %v1803_v1 = vld [vmem:[%s2179_s1] sm:$0xff] (!%p171_p3)   ;;  %1577 = vmatprep.subr.bf16.mxu0 (!%p171_p3), %v1802_v0  ;;  %1761 = vmatprep.subr.bf16.mxu1 (!%p171_p3), %v1802_v0  ;;  %p206_p4 = scmp.lt.s32.totalorder (!%p171_p3), %s1339_s18, 63  ;;  %v1805_v3 = vld [vmem:[%s2179_s1 + $0x8] sm:$0xff] (!%p171_p3)   ;;  %v1807_v5 = vld [vmem:[%s2179_s1 + $0x10] sm:$0xff] (!%p171_p3)  }
   0x8   : > { %1578 = vmatpush3.bf16.msra.mxu0 (!%p171_p3), %v1803_v1  ;;  %1769 = vmatpush3.bf16.msra.mxu1 (!%p171_p3), %v1803_v1  ;;  %v1808_v6 = vld [vmem:[%s2179_s1 + $0x58] sm:$0xff] (!%p171_p3)   ;;  %v1810_v8 = vld [vmem:[%s2179_s1 + $0x60] sm:$0xff] (!%p171_p3)   ;;  %v1812_v10 = vld [vmem:[%s2179_s1 + $0x68] sm:$0xff] (!%p171_p3)  }
   0x9   : > { %1579 = vmatprep.subr.bf16.mxu0 (!%p171_p3), %v1804_v2  ;;  %1762 = vmatprep.subr.bf16.mxu1 (!%p171_p3), %v1804_v2  ;;  %v1809_v7 = vld [vmem:[%s2179_s1 + $0x18] sm:$0xff] (!%p171_p3)   ;;  %v1811_v9 = vld [vmem:[%s2179_s1 + $0x20] sm:$0xff] (!%p171_p3)   ;;  %v1813_v13 = vld [vmem:[%s2179_s1 + $0x28] sm:$0xff] (!%p171_p3)  }
   0xa   : > { %v1814_v14 = vld [vmem:[%s2179_s1 + $0x70] sm:$0xff] (!%p171_p3)   ;;  %v1816_v16 = vld [vmem:[%s2179_s1 + $0x78] sm:$0xff] (!%p171_p3)   ;;  %v1824_v18 = vld [vmem:[%s2179_s1 + $0x80] sm:$0xff] (!%p171_p3)  }
   0xb   : > { %v1815_v15 = vld [vmem:[%s2179_s1 + $0x30] sm:$0xff] (!%p171_p3)   ;;  %v1817_v17 = vld [vmem:[%s2179_s1 + $0x38] sm:$0xff] (!%p171_p3)   ;;  %v1825_v22 = vld [vmem:[%s2179_s1 + $0x88] sm:$0xff] (!%p171_p3)  }
   0xc   : > { %1580 = vmatpush3.bf16.msra.mxu0 (!%p171_p3), %v1805_v3  ;;  %1770 = vmatpush3.bf16.msra.mxu1 (!%p171_p3), %v1805_v3  ;;  %v1832_v25 = vld [vmem:[%s2179_s1 + $0x90] sm:$0xff] (!%p171_p3)   ;;  %v1833_v27 = vld [vmem:[%s2179_s1 + $0x98] sm:$0xff] (!%p171_p3)   ;;  %v1840_v30 = vld [vmem:[%s2179_s1 + $0xa0] sm:$0xff] (!%p171_p3)  }
   0xd   : > { %1581 = vmatprep.subr.bf16.mxu0 (!%p171_p3), %v1806_v4  ;;  %1763 = vmatprep.subr.bf16.mxu1 (!%p171_p3), %v1806_v4  ;;  %v1841_v33 = vld [vmem:[%s2179_s1 + $0xa8] sm:$0xff] (!%p171_p3)   ;;  %v1848_v36 = vld [vmem:[%s2179_s1 + $0xb0] sm:$0xff] (!%p171_p3)   ;;  %v1849_v40 = vld [vmem:[%s2179_s1 + $0xb8] sm:$0xff] (!%p171_p3)  }
   0xe   : > { %s2187_s18 = smov (!%p206_p4, %s1339_s18), 63 }
   0xf   : > { %s1777_s4 = smul.u32 12, %s2187_s18  ;;  %s1342_s25 = sshll.u32 %s2187_s18, 2 }
  0x10   : > { %1582 = vmatpush3.bf16.msra.mxu0 %v1807_v5  ;;  %1771 = vmatpush3.bf16.msra.mxu1 %v1807_v5  ;;  %s2109_s28 = scalar_lea.vmem %s2181_s3, %s1342_s25 }
  0x11   : > { %1583 = vmatprep.subr.bf16.mxu0 %v1808_v6  ;;  %1764 = vmatprep.subr.bf16.mxu1 %v1808_v6  ;;  %s1985_s11 = scalar_lea.vmem %s2178_s0, %s1777_s4 }
  0x12   : > { %v1820_v11 = vld [vmem:[%s1985_s11 + $0x4] ss:$12 sps:$4 sm:$0xff]   ;;  %v1818_v19 = vld [vmem:[%s1985_s11] ss:$12 sps:$4 sm:$0xff]   ;;  %v1826_v21 = vld [vmem:[%s1985_s11 + $0x1c] ss:$12 sps:$4 sm:$0xff]  }
  0x13   : > { %v1823_v12 = vld [vmem:[%s1985_s11 + $0x124] ss:$12 sps:$4 sm:$0xff]   ;;  %780 = vmatprep.mubr.bf16.mxu0 %v1820_v11  ;;  %v1821_v20 = vld [vmem:[%s1985_s11 + $0x120] ss:$12 sps:$4 sm:$0xff]   ;;  %v1828_v23 = vld [vmem:[%s1985_s11 + $0x13c] ss:$12 sps:$4 sm:$0xff]  }
  0x14   : > { %1584 = vmatpush3.bf16.msra.mxu0 %v1809_v7  ;;  %1772 = vmatpush3.bf16.msra.mxu1 %v1809_v7  ;;  %v1830_v24 = vld [vmem:[%s1985_s11 + $0x18] ss:$12 sps:$4 sm:$0xff]   ;;  %v1834_v28 = vld [vmem:[%s1985_s11 + $0x34] ss:$12 sps:$4 sm:$0xff]   ;;  %v1838_v31 = vld [vmem:[%s1985_s11 + $0x30] ss:$12 sps:$4 sm:$0xff]  }
  0x15   : > { %1585 = vmatprep.subr.bf16.mxu0 %v1810_v8  ;;  %1765 = vmatprep.subr.bf16.mxu1 %v1810_v8  ;;  %v1831_v26 = vld [vmem:[%s1985_s11 + $0x138] ss:$12 sps:$4 sm:$0xff]   ;;  %v1836_v29 = vld [vmem:[%s1985_s11 + $0x154] ss:$12 sps:$4 sm:$0xff]   ;;  %v1839_v32 = vld [vmem:[%s1985_s11 + $0x150] ss:$12 sps:$4 sm:$0xff]  }
  0x16   : > { %876 = vmatprep.mubr.bf16.mxu1 %v1823_v12  ;;  %v1842_v34 = vld [vmem:[%s1985_s11 + $0x4c] ss:$12 sps:$4 sm:$0xff]   ;;  %v1846_v37 = vld [vmem:[%s1985_s11 + $0x48] ss:$12 sps:$4 sm:$0xff]   ;;  %v1850_v39 = vld [vmem:[%s1985_s11 + $0x64] ss:$12 sps:$4 sm:$0xff]  }
  0x17   : > { %v1844_v35 = vld [vmem:[%s1985_s11 + $0x16c] ss:$12 sps:$4 sm:$0xff]   ;;  %v1847_v38 = vld [vmem:[%s1985_s11 + $0x168] ss:$12 sps:$4 sm:$0xff]   ;;  %v1859_v47 = vld [vmem:[%s1985_s11 + $0x50] ss:$12 sps:$4 sm:$0xff]  }
  0x18   : > { %1586 = vmatpush3.bf16.msra.mxu0 %v1811_v9  ;;  %1773 = vmatpush3.bf16.msra.mxu1 %v1811_v9  ;;  %v1852_v41 = vld [vmem:[%s1985_s11 + $0x8] ss:$12 sps:$4 sm:$0xff]   ;;  %v1853_v42 = vld [vmem:[%s1985_s11 + $0x60] ss:$12 sps:$4 sm:$0xff]   ;;  %v1857_v45 = vld [vmem:[%s1985_s11 + $0x38] ss:$12 sps:$4 sm:$0xff]  }
  0x19   : > { %1587 = vmatprep.subr.bf16.mxu0 %v1812_v10  ;;  %1766 = vmatprep.subr.bf16.mxu1 %v1812_v10  ;;  %v1854_v43 = vld [vmem:[%s1985_s11 + $0x20] ss:$12 sps:$4 sm:$0xff]   ;;  %v1855_v44 = vld [vmem:[%s1985_s11 + $0x7c] ss:$12 sps:$4 sm:$0xff]   ;;  %v1858_v46 = vld [vmem:[%s1985_s11 + $0x78] ss:$12 sps:$4 sm:$0xff]  }
  0x1a   : > { %v1860_v48 = vld [vmem:[%s1985_s11 + $0x94] ss:$12 sps:$4 sm:$0xff]   ;;  %v1863_v50 = vld [vmem:[%s1985_s11 + $0x90] ss:$12 sps:$4 sm:$0xff]   ;;  %v1865_v52 = vld [vmem:[%s1985_s11 + $0xac] ss:$12 sps:$4 sm:$0xff]  }
  0x1b   : > { %v1862_v49 = vld [vmem:[%s1985_s11 + $0x68] ss:$12 sps:$4 sm:$0xff]   ;;  %v1864_v51 = vld [vmem:[%s1985_s11 + $0x80] ss:$12 sps:$4 sm:$0xff]   ;;  %v1867_v53 = vld [vmem:[%s1985_s11 + $0x98] ss:$12 sps:$4 sm:$0xff]  }
  0x1c   : > { %1588 = vmatpush3.bf16.msra.mxu0 %v1813_v13  ;;  %1774 = vmatpush3.bf16.msra.mxu1 %v1813_v13  ;;  %v1868_v54 = vld [vmem:[%s1985_s11 + $0xa8] ss:$12 sps:$4 sm:$0xff]   ;;  %v1869_v55 = vld [vmem:[%s1985_s11 + $0xb0] ss:$12 sps:$4 sm:$0xff]   ;;  %v1873_v58 = vld [vmem:[%s1985_s11 + $0xc0] ss:$12 sps:$4 sm:$0xff]  }
  0x1d   : > { %1589 = vmatprep.subr.bf16.mxu0 %v1814_v14  ;;  %1767 = vmatprep.subr.bf16.mxu1 %v1814_v14  ;;  %v1870_v56 = vld [vmem:[%s1985_s11 + $0xc4] ss:$12 sps:$4 sm:$0xff]   ;;  %v1872_v57 = vld [vmem:[%s1985_s11 + $0xc8] ss:$12 sps:$4 sm:$0xff]   ;;  %v1874_v59 = vld [vmem:[%s1985_s11 + $0xe0] ss:$12 sps:$4 sm:$0xff]  }
  0x1e   : > { %v1875_v60 = vld [vmem:[%s1985_s11 + $0xdc] ss:$12 sps:$4 sm:$0xff]   ;;  %v1877_v61 = vld [vmem:[%s1985_s11 + $0xf8] ss:$12 sps:$4 sm:$0xff]   ;;  %v1880_v0 = vld [vmem:[%s1985_s11 + $0xf4] ss:$12 sps:$4 sm:$0xff]  }
  0x1f   : > { %v1878_v62 = vld [vmem:[%s1985_s11 + $0xd8] ss:$12 sps:$4 sm:$0xff]   ;;  %v1879_v63 = vld [vmem:[%s1985_s11 + $0x110] ss:$12 sps:$4 sm:$0xff]   ;;  %v1882_v1 = vld [vmem:[%s1985_s11 + $0x128] ss:$12 sps:$4 sm:$0xff]  }
  0x20   : > { %1590 = vmatpush3.bf16.msra.mxu0 %v1815_v15  ;;  %1775 = vmatpush3.bf16.msra.mxu1 %v1815_v15  ;;  %v1883_v2 = vld [vmem:[%s1985_s11 + $0xf0] ss:$12 sps:$4 sm:$0xff]   ;;  %v1884_v3 = vld [vmem:[%s1985_s11 + $0x140] ss:$12 sps:$4 sm:$0xff]   ;;  %v1887_v5 = vld [vmem:[%s1985_s11 + $0x158] ss:$12 sps:$4 sm:$0xff]  }
  0x21   : > { %1591 = vmatprep.subr.bf16.mxu0 %v1816_v16  ;;  %1768 = vmatprep.subr.bf16.mxu1 %v1816_v16  ;;  %v1885_v4 = vld [vmem:[%s1985_s11 + $0x10c] ss:$12 sps:$4 sm:$0xff]   ;;  %v1888_v6 = vld [vmem:[%s1985_s11 + $0x108] ss:$12 sps:$4 sm:$0xff]   ;;  %v1889_v7 = vld [vmem:[%s1985_s11 + $0x170] ss:$12 sps:$4 sm:$0xff]  }
  0x24   : > { %1592 = vmatpush3.bf16.msra.mxu0 %v1817_v17  ;;  %1776 = vmatpush3.bf16.msra.mxu1 %v1817_v17 }
  0x25   : > { %1713 = vmatprep.subr.bf16.mxu1 %v1824_v18 }
  0x27   : > { %781 = vmatmul.mubr.bf16.vlgmr.msra.gmra.mrb[0].mxu0 %v1818_v19  ;;  %877 = vmatmul.mubr.bf16.vlgmr.msra.gmra.mrb[0].mxu1 %v1821_v20 }
  0x28   : > { %1714 = vmatpush3.bf16.msra.mxu1 %v1824_v18  ;;  %788 = vmatprep.mubr.bf16.mxu0 %v1826_v21 }
  0x29   : > { %1715 = vmatprep.subr.bf16.mxu1 %v1825_v22  ;;  %884 = vmatprep.mubr.bf16.mxu1 %v1828_v23 }
  0x2c   : > { %1716 = vmatpush3.bf16.msra.mxu1 %v1825_v22 }
  0x2d   : > { %1717 = vmatprep.subr.bf16.mxu1 %v1832_v25 }
  0x2f   : > { %789 = vmatmul.mubr.bf16.gmra.mrb[4].mxu0 %v1830_v24  ;;  %885 = vmatmul.mubr.bf16.gmra.mrb[4].mxu1 %v1831_v26 }
  0x30   : > { %1718 = vmatpush3.bf16.msra.mxu1 %v1832_v25  ;;  %796 = vmatprep.mubr.bf16.mxu0 %v1834_v28 }
  0x31   : > { %1719 = vmatprep.subr.bf16.mxu1 %v1833_v27  ;;  %892 = vmatprep.mubr.bf16.mxu1 %v1836_v29 }
  0x34   : > { %1720 = vmatpush3.bf16.msra.mxu1 %v1833_v27 }
  0x35   : > { %1721 = vmatprep.subr.bf16.mxu1 %v1840_v30 }
  0x37   : > { %797 = vmatmul.mubr.bf16.gmra.mrb[8].mxu0 %v1838_v31  ;;  %893 = vmatmul.mubr.bf16.gmra.mrb[8].mxu1 %v1839_v32 }
  0x38   : > { %1722 = vmatpush3.bf16.msra.mxu1 %v1840_v30  ;;  %804 = vmatprep.mubr.bf16.mxu0 %v1842_v34 }
  0x39   : > { %1723 = vmatprep.subr.bf16.mxu1 %v1841_v33  ;;  %900 = vmatprep.mubr.bf16.mxu1 %v1844_v35 }
  0x3c   : > { %1724 = vmatpush3.bf16.msra.mxu1 %v1841_v33 }
  0x3d   : > { %1725 = vmatprep.subr.bf16.mxu1 %v1848_v36 }
  0x3f   : > { %805 = vmatmul.mubr.bf16.gmra.mrb[12].mxu0 %v1846_v37  ;;  %901 = vmatmul.mubr.bf16.gmra.mrb[12].mxu1 %v1847_v38 }
  0x40   : > { %1726 = vmatpush3.bf16.msra.mxu1 %v1848_v36  ;;  %812 = vmatprep.mubr.bf16.mxu0 %v1850_v39 }
  0x41   : > { %1727 = vmatprep.subr.bf16.mxu1 %v1849_v40  ;;  %1729 = vmatprep.mubr.bf16.mxu1 %v1852_v41 }
  0x44   : > { %1728 = vmatpush3.bf16.msra.mxu1 %v1849_v40 }
  0x47   : > { %813 = vmatmul.mubr.bf16.gmra.mrb[16].mxu0 %v1853_v42  ;;  %1730 = vmatmul.mubr.bf16.vlgmr.msra.gmra.mrb[16].mxu1 %v1854_v43 }
  0x48   : > { %820 = vmatprep.mubr.bf16.mxu0 %v1855_v44  ;;  %1733 = vmatprep.mubr.bf16.mxu1 %v1857_v45 }
  0x4f   : > { %821 = vmatmul.mubr.bf16.gmra.mrb[20].mxu0 %v1858_v46  ;;  %1734 = vmatmul.mubr.bf16.gmra.mrb[20].mxu1 %v1859_v47 }
  0x50   : > { %828 = vmatprep.mubr.bf16.mxu0 %v1860_v48  ;;  %1737 = vmatprep.mubr.bf16.mxu1 %v1862_v49 }
  0x57   : > { %829 = vmatmul.mubr.bf16.gmra.mrb[24].mxu0 %v1863_v50  ;;  %1738 = vmatmul.mubr.bf16.gmra.mrb[24].mxu1 %v1864_v51 }
  0x58   : > { %836 = vmatprep.mubr.bf16.mxu0 %v1865_v52  ;;  %1741 = vmatprep.mubr.bf16.mxu1 %v1867_v53 }
  0x5f   : > { %837 = vmatmul.mubr.bf16.gmra.mrb[28].mxu0 %v1868_v54  ;;  %1742 = vmatmul.mubr.bf16.gmra.mrb[28].mxu1 %v1869_v55 }
  0x60   : > { %844 = vmatprep.mubr.bf16.mxu0 %v1870_v56  ;;  %1745 = vmatprep.mubr.bf16.mxu1 %v1872_v57  ;;  %v2099_v56 = vld [vmem:[%s2180_s2] ss:$0 sm:$0xff] }
  0x67   : > { %845 = vmatmul.mubr.bf16.gmra.mrb[32].mxu0 %v1873_v58  ;;  %1746 = vmatmul.mubr.bf16.gmra.mrb[32].mxu1 %v1874_v59 }
  0x68   : > { %852 = vmatprep.mubr.bf16.mxu0 %v1875_v60  ;;  %1749 = vmatprep.mubr.bf16.mxu1 %v1877_v61 }
  0x6f   : > { %853 = vmatmul.mubr.bf16.gmra.mrb[36].mxu0 %v1878_v62  ;;  %1750 = vmatmul.mubr.bf16.gmra.mrb[36].mxu1 %v1879_v63 }
  0x70   : > { %860 = vmatprep.mubr.bf16.mxu0 %v1880_v0  ;;  %1753 = vmatprep.mubr.bf16.mxu1 %v1882_v1 }
  0x77   : > { %861 = vmatmul.mubr.bf16.gmra.mrb[40].mxu0 %v1883_v2  ;;  %1754 = vmatmul.mubr.bf16.gmra.mrb[40].mxu1 %v1884_v3 }
  0x78   : > { %868 = vmatprep.mubr.bf16.mxu0 %v1885_v4  ;;  %1757 = vmatprep.mubr.bf16.mxu1 %v1887_v5 }
  0x7f   : > { %869 = vmatmul.mubr.bf16.gmra.mrb[44].mxu0 %v1888_v6  ;;  %1758 = vmatmul.mubr.bf16.gmra.mrb[44].mxu1 %v1889_v7 }
  0xfa   : > { %v1593_v8 = vpop.f32.mrb[0].mxu0  ;;  %v1665_v9 = vpop.f32.mrb[0].mxu1 }
  0xfb   : > { %v1594_v10 = vpop.f32.mrb[1].mxu0  ;;  %v1666_v11 = vpop.f32.mrb[1].mxu1 }
  0xfc   : > { %v1595_v12 = vadd.f32 %v1594_v10, %v1593_v8  ;;  %v1596_v13 = vpop.f32.mrb[2].mxu0  ;;  %v2080_v14 = vadd.f32 %v1666_v11, %v1665_v9  ;;  %v1668_v15 = vpop.f32.mrb[2].mxu1 }
  0xfd   : > { %v1597_v16 = vpop.f32.mrb[3].mxu0  ;;  %v1669_v17 = vpop.f32.mrb[3].mxu1 }
  0xfe   : > { %v1598_v18 = vadd.f32 %v1597_v16, %v1596_v13  ;;  %v2082_v19 = vadd.f32 %v1669_v17, %v1668_v15  ;;  %v783_v60 = vadd.f32 %v1595_v12, %v2099_v56 }
 0x100   : > { %v786_v5 = vadd.f32 %v1598_v18, %v2099_v56 }
 0x102   : > { %v1599_v20 = vpop.f32.mrb[4].mxu0  ;;  %v1671_v21 = vpop.f32.mrb[4].mxu1 }
 0x103   : > { %v1600_v22 = vpop.f32.mrb[5].mxu0  ;;  %v1672_v23 = vpop.f32.mrb[5].mxu1 }
 0x104   : > { %v1601_v24 = vadd.f32 %v1600_v22, %v1599_v20  ;;  %v1602_v25 = vpop.f32.mrb[6].mxu0  ;;  %v2084_v26 = vadd.f32 %v1672_v23, %v1671_v21  ;;  %v1674_v27 = vpop.f32.mrb[6].mxu1 }
 0x105   : > { %v1603_v28 = vpop.f32.mrb[7].mxu0  ;;  %v1675_v29 = vpop.f32.mrb[7].mxu1 }
 0x106   : > { %v1604_v30 = vadd.f32 %v1603_v28, %v1602_v25  ;;  %v2086_v31 = vadd.f32 %v1675_v29, %v1674_v27  ;;  %v791_v57 = vadd.f32 %v1601_v24, %v2099_v56 }
 0x108   : > { %v794_v0 = vadd.f32 %v1604_v30, %v2099_v56 }
 0x10a   : > { %v1605_v32 = vpop.f32.mrb[8].mxu0  ;;  %v1677_v33 = vpop.f32.mrb[8].mxu1 }
 0x10b   : > { %v1606_v34 = vpop.f32.mrb[9].mxu0  ;;  %v1678_v35 = vpop.f32.mrb[9].mxu1 }
 0x10c   : > { %v1607_v36 = vadd.f32 %v1606_v34, %v1605_v32  ;;  %v1608_v37 = vpop.f32.mrb[10].mxu0  ;;  %v2088_v38 = vadd.f32 %v1678_v35, %v1677_v33  ;;  %v1680_v39 = vpop.f32.mrb[10].mxu1 }
 0x10d   : > { %v1609_v40 = vpop.f32.mrb[11].mxu0  ;;  %v1681_v41 = vpop.f32.mrb[11].mxu1 }
 0x10e   : > { %v1610_v42 = vadd.f32 %v1609_v40, %v1608_v37  ;;  %v2090_v43 = vadd.f32 %v1681_v41, %v1680_v39  ;;  %v799_v17 = vadd.f32 %v1607_v36, %v2099_v56 }
 0x110   : > { %v802_v28 = vadd.f32 %v1610_v42, %v2099_v56 }
 0x112   : > { %v1611_v44 = vpop.f32.mrb[12].mxu0  ;;  %v1683_v45 = vpop.f32.mrb[12].mxu1 }
 0x113   : > { %v1612_v46 = vpop.f32.mrb[13].mxu0  ;;  %v1684_v47 = vpop.f32.mrb[13].mxu1 }
 0x114   : > { %v1613_v48 = vadd.f32 %v1612_v46, %v1611_v44  ;;  %v1614_v49 = vpop.f32.mrb[14].mxu0  ;;  %v2092_v50 = vadd.f32 %v1684_v47, %v1683_v45  ;;  %v1686_v51 = vpop.f32.mrb[14].mxu1 }
 0x115   : > { %v1615_v52 = vpop.f32.mrb[15].mxu0  ;;  %v1687_v53 = vpop.f32.mrb[15].mxu1 }
 0x116   : > { %v1616_v54 = vadd.f32 %v1615_v52, %v1614_v49  ;;  %v2094_v55 = vadd.f32 %v1687_v53, %v1686_v51  ;;  %v807_v13 = vadd.f32 %v1613_v48, %v2099_v56 }
 0x118   : > { %v810_v22 = vadd.f32 %v1616_v54, %v2099_v56 }
 0x11a   : > { %v1617_v58 = vpop.f32.mrb[16].mxu0  ;;  %v1731_v59 = vpop.f32.mrb[16].mxu1 }
 0x11b   : > { %v952_v61 = vadd.f32 %v1731_v59, %v791_v57  ;;  %v1618_v62 = vpop.f32.mrb[17].mxu0  ;;  %v943_v63 = vpop.f32.mrb[17].mxu1 }
 0x11c   : > { %v1619_v1 = vadd.f32 %v1618_v62, %v1617_v58  ;;  %v944_v2 = vadd.f32 %v943_v63, %v783_v60  ;;  %v1620_v3 = vpop.f32.mrb[18].mxu0  ;;  %v1732_v4 = vpop.f32.mrb[18].mxu1 }
 0x11d   : > { %v955_v6 = vadd.f32 %v1732_v4, %v794_v0  ;;  %v1621_v7 = vpop.f32.mrb[19].mxu0  ;;  %v946_v8 = vpop.f32.mrb[19].mxu1 }
 0x11e   : > { %v1622_v9 = vadd.f32 %v1621_v7, %v1620_v3  ;;  %v947_v10 = vadd.f32 %v946_v8, %v786_v5  ;;  %v815_v41 = vadd.f32 %v1619_v1, %v2099_v56 }
 0x11f   : > { %v1490_v11 = vpack.c.bf16 %v955_v6, %v952_v61 }
 0x120   : > { %v1485_v12 = vpack.c.bf16 %v947_v10, %v944_v2  ;;  %v818_v52 = vadd.f32 %v1622_v9, %v2099_v56 }
 0x121   : > { %1562 = vst [vmem:[%s2109_s28 + $0x8] sm:$0xff] %v1490_v11  }
 0x122   : > { %1486 = vst [vmem:[%s2109_s28] sm:$0xff] %v1485_v12   ;;  %v1623_v15 = vpop.f32.mrb[20].mxu0  ;;  %v1735_v16 = vpop.f32.mrb[20].mxu1 }
 0x123   : > { %v968_v18 = vadd.f32 %v1735_v16, %v807_v13  ;;  %v1624_v20 = vpop.f32.mrb[21].mxu0  ;;  %v959_v21 = vpop.f32.mrb[21].mxu1 }
 0x124   : > { %v1625_v23 = vadd.f32 %v1624_v20, %v1623_v15  ;;  %v960_v24 = vadd.f32 %v959_v21, %v799_v17  ;;  %v1626_v25 = vpop.f32.mrb[22].mxu0  ;;  %v1736_v27 = vpop.f32.mrb[22].mxu1 }
 0x125   : > { %v971_v29 = vadd.f32 %v1736_v27, %v810_v22  ;;  %v1627_v30 = vpop.f32.mrb[23].mxu0  ;;  %v962_v32 = vpop.f32.mrb[23].mxu1 }
 0x126   : > { %v1628_v33 = vadd.f32 %v1627_v30, %v1626_v25  ;;  %v963_v34 = vadd.f32 %v962_v32, %v802_v28  ;;  %v823_v37 = vadd.f32 %v1625_v23, %v2099_v56 }
 0x127   : > { %v1500_v35 = vpack.c.bf16 %v971_v29, %v968_v18 }
 0x128   : > { %v1495_v36 = vpack.c.bf16 %v963_v34, %v960_v24  ;;  %v826_v46 = vadd.f32 %v1628_v33, %v2099_v56 }
 0x129   : > { %1564 = vst [vmem:[%s2109_s28 + $0x18] sm:$0xff] %v1500_v35  }
 0x12a   : > { %1563 = vst [vmem:[%s2109_s28 + $0x10] sm:$0xff] %v1495_v36   ;;  %v1629_v39 = vpop.f32.mrb[24].mxu0  ;;  %v1739_v40 = vpop.f32.mrb[24].mxu1 }
 0x12b   : > { %v984_v44 = vadd.f32 %v1739_v40, %v823_v37  ;;  %v1630_v45 = vpop.f32.mrb[25].mxu0  ;;  %v975_v42 = vpop.f32.mrb[25].mxu1 }
 0x12c   : > { %v1631_v47 = vadd.f32 %v1630_v45, %v1629_v39  ;;  %v976_v48 = vadd.f32 %v975_v42, %v815_v41  ;;  %v1632_v49 = vpop.f32.mrb[26].mxu0  ;;  %v1740_v51 = vpop.f32.mrb[26].mxu1 }
 0x12d   : > { %v987_v53 = vadd.f32 %v1740_v51, %v826_v46  ;;  %v1633_v54 = vpop.f32.mrb[27].mxu0  ;;  %v978_v57 = vpop.f32.mrb[27].mxu1 }
 0x12e   : > { %v1634_v58 = vadd.f32 %v1633_v54, %v1632_v49  ;;  %v979_v59 = vadd.f32 %v978_v57, %v818_v52  ;;  %v831_v0 = vadd.f32 %v1631_v47, %v2099_v56 }
 0x12f   : > { %v1510_v60 = vpack.c.bf16 %v987_v53, %v984_v44  ;;  %v887_v53 = vadd.f32 %v2084_v26, %v2099_v56  ;;  %v882_v26 = vadd.f32 %v2082_v19, %v2099_v56 }
 0x130   : > { %v1505_v61 = vpack.c.bf16 %v979_v59, %v976_v48  ;;  %v834_v7 = vadd.f32 %v1634_v58, %v2099_v56  ;;  %v879_v59 = vadd.f32 %v2080_v14, %v2099_v56 }
 0x131   : > { %1566 = vst [vmem:[%s2109_s28 + $0x28] sm:$0xff] %v1510_v60  }
 0x132   : > { %1565 = vst [vmem:[%s2109_s28 + $0x20] sm:$0xff] %v1505_v61   ;;  %v1635_v62 = vpop.f32.mrb[28].mxu0  ;;  %v1743_v63 = vpop.f32.mrb[28].mxu1 }
 0x133   : > { %v1636_v1 = vpop.f32.mrb[29].mxu0  ;;  %v991_v2 = vpop.f32.mrb[29].mxu1 }
 0x134   : > { %v1637_v3 = vadd.f32 %v1636_v1, %v1635_v62  ;;  %v992_v4 = vadd.f32 %v991_v2, %v831_v0  ;;  %v1638_v5 = vpop.f32.mrb[30].mxu0  ;;  %v1744_v6 = vpop.f32.mrb[30].mxu1 }
 0x135   : > { %v1639_v8 = vpop.f32.mrb[31].mxu0  ;;  %v994_v9 = vpop.f32.mrb[31].mxu1 }
 0x136   : > { %v839_v10 = vadd.f32 %v1637_v3, %v2099_v56  ;;  %v1640_v11 = vadd.f32 %v1639_v8, %v1638_v5  ;;  %v995_v12 = vadd.f32 %v994_v9, %v834_v7 }
 0x138   : > { %v1000_v13 = vadd.f32 %v1743_v63, %v839_v10  ;;  %v842_v15 = vadd.f32 %v1640_v11, %v2099_v56  ;;  %v1515_v16 = vpack.c.bf16 %v995_v12, %v992_v4  ;;  %v890_v63 = vadd.f32 %v2086_v31, %v2099_v56 }
 0x13a   : > { %v1003_v17 = vadd.f32 %v1744_v6, %v842_v15  ;;  %1567 = vst [vmem:[%s2109_s28 + $0x30] sm:$0xff] %v1515_v16   ;;  %v1641_v18 = vpop.f32.mrb[32].mxu0  ;;  %v1747_v20 = vpop.f32.mrb[32].mxu1 }
 0x13b   : > { %v1642_v21 = vpop.f32.mrb[33].mxu0  ;;  %v1007_v22 = vpop.f32.mrb[33].mxu1 }
 0x13c   : > { %v1520_v23 = vpack.c.bf16 %v1003_v17, %v1000_v13  ;;  %v1643_v24 = vadd.f32 %v1642_v21, %v1641_v18  ;;  %v1644_v25 = vpop.f32.mrb[34].mxu0  ;;  %v1748_v27 = vpop.f32.mrb[34].mxu1  ;;  %v903_v13 = vadd.f32 %v2092_v50, %v2099_v56  ;;  %v895_v17 = vadd.f32 %v2088_v38, %v2099_v56 }
 0x13d   : > { %v1645_v28 = vpop.f32.mrb[35].mxu0  ;;  %v1010_v29 = vpop.f32.mrb[35].mxu1 }
 0x13e   : > { %1568 = vst [vmem:[%s2109_s28 + $0x38] sm:$0xff] %v1520_v23   ;;  %v847_v30 = vadd.f32 %v1643_v24, %v2099_v56  ;;  %v1646_v32 = vadd.f32 %v1645_v28, %v1644_v25  ;;  %v898_v28 = vadd.f32 %v2090_v43, %v2099_v56 }
 0x140   : > { %v1008_v33 = vadd.f32 %v1007_v22, %v847_v30  ;;  %v850_v34 = vadd.f32 %v1646_v32, %v2099_v56  ;;  %v906_v22 = vadd.f32 %v2094_v55, %v2099_v56 }
 0x142   : > { %v1011_v35 = vadd.f32 %v1010_v29, %v850_v34  ;;  %v1647_v36 = vpop.f32.mrb[36].mxu0  ;;  %v2133_v37 = vpop.f32.mrb[36].mxu1 }
 0x143   : > { %v1648_v39 = vpop.f32.mrb[37].mxu0  ;;  %v1023_v40 = vpop.f32.mrb[37].mxu1 }
 0x144   : > { %v1525_v41 = vpack.c.bf16 %v1011_v35, %v1008_v33  ;;  %v1649_v44 = vadd.f32 %v1648_v39, %v1647_v36  ;;  %v1650_v45 = vpop.f32.mrb[38].mxu0  ;;  %v2135_v42 = vpop.f32.mrb[38].mxu1 }
 0x145   : > { %v1651_v46 = vpop.f32.mrb[39].mxu0  ;;  %v1026_v47 = vpop.f32.mrb[39].mxu1 }
 0x146   : > { %1569 = vst [vmem:[%s2109_s28 + $0x40] sm:$0xff] %v1525_v41   ;;  %v855_v48 = vadd.f32 %v1649_v44, %v2099_v56  ;;  %v1652_v49 = vadd.f32 %v1651_v46, %v1650_v45 }
 0x148   : > { %v1016_v51 = vadd.f32 %v1747_v20, %v855_v48  ;;  %v858_v52 = vadd.f32 %v1652_v49, %v2099_v56 }
 0x14a   : > { %v1019_v54 = vadd.f32 %v1748_v27, %v858_v52  ;;  %v1653_v57 = vpop.f32.mrb[40].mxu0  ;;  %v1755_v58 = vpop.f32.mrb[40].mxu1 }
 0x14b   : > { %v1048_v60 = vadd.f32 %v1755_v58, %v887_v53  ;;  %v1654_v61 = vpop.f32.mrb[41].mxu0  ;;  %v1039_v62 = vpop.f32.mrb[41].mxu1 }
 0x14c   : > { %v1530_v0 = vpack.c.bf16 %v1019_v54, %v1016_v51  ;;  %v1655_v1 = vadd.f32 %v1654_v61, %v1653_v57  ;;  %v1040_v2 = vadd.f32 %v1039_v62, %v879_v59  ;;  %v1656_v3 = vpop.f32.mrb[42].mxu0  ;;  %v1756_v4 = vpop.f32.mrb[42].mxu1 }
 0x14d   : > { %v1051_v5 = vadd.f32 %v1756_v4, %v890_v63  ;;  %v1657_v6 = vpop.f32.mrb[43].mxu0  ;;  %v1042_v7 = vpop.f32.mrb[43].mxu1 }
 0x14e   : > { %1570 = vst [vmem:[%s2109_s28 + $0x48] sm:$0xff] %v1530_v0   ;;  %v863_v14 = vadd.f32 %v1655_v1, %v2099_v56  ;;  %v1658_v8 = vadd.f32 %v1657_v6, %v1656_v3  ;;  %v1043_v9 = vadd.f32 %v1042_v7, %v882_v26 }
 0x14f   : > { %v1550_v10 = vpack.c.bf16 %v1051_v5, %v1048_v60 }
 0x150   : > { %v1024_v31 = vadd.f32 %v1023_v40, %v863_v14  ;;  %v866_v11 = vadd.f32 %v1658_v8, %v2099_v56  ;;  %v1545_v12 = vpack.c.bf16 %v1043_v9, %v1040_v2 }
 0x151   : > { %1574 = vst [vmem:[%s2109_s28 + $0x68] sm:$0xff] %v1550_v10  }
 0x152   : > { %v1027_v15 = vadd.f32 %v1026_v47, %v866_v11  ;;  %1573 = vst [vmem:[%s2109_s28 + $0x60] sm:$0xff] %v1545_v12   ;;  %v1659_v19 = vpop.f32.mrb[44].mxu0  ;;  %v1759_v16 = vpop.f32.mrb[44].mxu1 }
 0x153   : > { %v1064_v18 = vadd.f32 %v1759_v16, %v903_v13  ;;  %v1660_v20 = vpop.f32.mrb[45].mxu0  ;;  %v1055_v21 = vpop.f32.mrb[45].mxu1 }
 0x154   : > { %v1535_v23 = vpack.c.bf16 %v1027_v15, %v1024_v31  ;;  %v1661_v24 = vadd.f32 %v1660_v20, %v1659_v19  ;;  %v1056_v25 = vadd.f32 %v1055_v21, %v895_v17  ;;  %v1662_v27 = vpop.f32.mrb[46].mxu0  ;;  %v1760_v50 = vpop.f32.mrb[46].mxu1 }
 0x155   : > { %v1067_v29 = vadd.f32 %v1760_v50, %v906_v22  ;;  %v1663_v30 = vpop.f32.mrb[47].mxu0  ;;  %v1058_v38 = vpop.f32.mrb[47].mxu1 }
 0x156   : > { %1571 = vst [vmem:[%s2109_s28 + $0x50] sm:$0xff] %v1535_v23   ;;  %v871_v32 = vadd.f32 %v1661_v24, %v2099_v56  ;;  %v1664_v33 = vadd.f32 %v1663_v30, %v1662_v27  ;;  %v1059_v34 = vadd.f32 %v1058_v38, %v898_v28 }
 0x157   : > { %v1560_v55 = vpack.c.bf16 %v1067_v29, %v1064_v18 }
 0x158   : > { %v1032_v35 = vadd.f32 %v2133_v37, %v871_v32  ;;  %v874_v36 = vadd.f32 %v1664_v33, %v2099_v56  ;;  %v1555_v39 = vpack.c.bf16 %v1059_v34, %v1056_v25 }
 0x159   : > { %1576 = vst [vmem:[%s2109_s28 + $0x78] sm:$0xff] %v1560_v55  }
 0x15a   : > { %v1035_v40 = vadd.f32 %v2135_v42, %v874_v36  ;;  %1575 = vst [vmem:[%s2109_s28 + $0x70] sm:$0xff] %v1555_v39  }
 0x15c   : > { %v1540_v43 = vpack.c.bf16 %v1035_v40, %v1032_v35 }
 0x15e   : > { %1572 = vst [vmem:[%s2109_s28 + $0x58] sm:$0xff] %v1540_v43  }
 0x15f PF: > { %s13_s14 = sadd.s32 1, %s1912_s14   ;;  %s2182_s12 = smov %s1908_s13 }
 0x160   : > { %p10_p5 = scmp.ge.s32.totalorder %s13_s14, 4   ;;  %s2183_s13 = smov %s2185_s15 }
 0x162   :  { %12 = sbr.rel (!%p10_p5) target bundleno = 2 (0x2), region = 68 }

// kernel: skvqgan_forward.47
= control target key start
LH: loop header
LB: loop body
LE: loop exit
PB: predicated region body
PF: predicated region fallthrough
CT: control target
= control target key end

     0   :  { %s602_s1 = inlined_call_operand.vmem [shape: bf16[128,128], index: 1, kind: input, shape index: {}]   ;;  %s603_s0 = inlined_call_operand.vmem [shape: bf16[128,128], index: 0, kind: input, shape index: {}]   ;;  %s604_s2 = inlined_call_operand.vmem [shape: f32[1,128], index: 2, kind: input, shape index: {}]   ;;  %s605_s3 = inlined_call_operand.vmem [shape: bf16[128,128], index: 3, kind: output, shape index: {}]  }
   0x1   :  { %v491_v0 = vld [vmem:[%s602_s1] sm:$0xff]   ;;  %v492_v1 = vld [vmem:[%s602_s1 + $0x8] sm:$0xff]   ;;  %v493_v2 = vld [vmem:[%s602_s1 + $0x10] sm:$0xff]  }
   0x2   :  { %443 = vmatprep.subr.bf16.mxu0 %v491_v0  ;;  %475 = vmatprep.subr.bf16.mxu1 %v491_v0  ;;  %v494_v3 = vld [vmem:[%s602_s1 + $0x18] sm:$0xff]   ;;  %v499_v4 = vld [vmem:[%s603_s0] sm:$0xff]   ;;  %v496_v7 = vld [vmem:[%s602_s1 + $0x28] sm:$0xff]  }
   0x3   :  { %444 = vmatpush3.bf16.msra.mxu0 %v491_v0  ;;  %483 = vmatpush3.bf16.msra.mxu1 %v491_v0  ;;  %v500_v5 = vld [vmem:[%s603_s0 + $0x20] sm:$0xff]   ;;  %v497_v8 = vld [vmem:[%s602_s1 + $0x30] sm:$0xff]   ;;  %v498_v9 = vld [vmem:[%s602_s1 + $0x38] sm:$0xff]  }
   0x4   :  { %445 = vmatprep.subr.bf16.mxu0 %v492_v1  ;;  %476 = vmatprep.subr.bf16.mxu1 %v492_v1  ;;  %v495_v6 = vld [vmem:[%s602_s1 + $0x20] sm:$0xff]   ;;  %v501_v10 = vld [vmem:[%s603_s0 + $0x8] sm:$0xff]   ;;  %v503_v12 = vld [vmem:[%s603_s0 + $0x10] sm:$0xff]  }
   0x5   :  { %459 = vmatprep.mubr.bf16.mxu0 %v499_v4  ;;  %467 = vmatprep.mubr.bf16.mxu1 %v500_v5  ;;  %v502_v11 = vld [vmem:[%s603_s0 + $0x28] sm:$0xff]   ;;  %v504_v13 = vld [vmem:[%s603_s0 + $0x30] sm:$0xff]   ;;  %v505_v14 = vld [vmem:[%s603_s0 + $0x18] sm:$0xff]  }
   0x6   :  { %v506_v15 = vld [vmem:[%s603_s0 + $0x38] sm:$0xff]   ;;  %v331_v17 = vld [vmem:[%s604_s2] ss:$0 sm:$0xff] }
   0x7   :  { %446 = vmatpush3.bf16.msra.mxu0 %v492_v1  ;;  %484 = vmatpush3.bf16.msra.mxu1 %v492_v1 }
   0x8   :  { %447 = vmatprep.subr.bf16.mxu0 %v493_v2  ;;  %477 = vmatprep.subr.bf16.mxu1 %v493_v2 }
   0xb   :  { %448 = vmatpush3.bf16.msra.mxu0 %v493_v2  ;;  %485 = vmatpush3.bf16.msra.mxu1 %v493_v2 }
   0xc   :  { %449 = vmatprep.subr.bf16.mxu0 %v494_v3  ;;  %478 = vmatprep.subr.bf16.mxu1 %v494_v3 }
   0xf   :  { %450 = vmatpush3.bf16.msra.mxu0 %v494_v3  ;;  %486 = vmatpush3.bf16.msra.mxu1 %v494_v3 }
  0x10   :  { %451 = vmatprep.subr.bf16.mxu0 %v495_v6  ;;  %479 = vmatprep.subr.bf16.mxu1 %v495_v6 }
  0x13   :  { %452 = vmatpush3.bf16.msra.mxu0 %v495_v6  ;;  %487 = vmatpush3.bf16.msra.mxu1 %v495_v6 }
  0x14   :  { %453 = vmatprep.subr.bf16.mxu0 %v496_v7  ;;  %480 = vmatprep.subr.bf16.mxu1 %v496_v7 }
  0x17   :  { %454 = vmatpush3.bf16.msra.mxu0 %v496_v7  ;;  %488 = vmatpush3.bf16.msra.mxu1 %v496_v7 }
  0x18   :  { %455 = vmatprep.subr.bf16.mxu0 %v497_v8  ;;  %481 = vmatprep.subr.bf16.mxu1 %v497_v8 }
  0x1b   :  { %456 = vmatpush3.bf16.msra.mxu0 %v497_v8  ;;  %489 = vmatpush3.bf16.msra.mxu1 %v497_v8 }
  0x1c   :  { %457 = vmatprep.subr.bf16.mxu0 %v498_v9  ;;  %482 = vmatprep.subr.bf16.mxu1 %v498_v9 }
  0x1f   :  { %458 = vmatpush3.bf16.msra.mxu0 %v498_v9  ;;  %490 = vmatpush3.bf16.msra.mxu1 %v498_v9 }
  0x22   :  { %460 = vmatmul.mubr.bf16.vlgmr.msra.gmra.mrb[0].mxu0 %v501_v10  ;;  %468 = vmatmul.mubr.bf16.vlgmr.msra.gmra.mrb[0].mxu1 %v502_v11 }
  0x23   :  { %463 = vmatprep.mubr.bf16.mxu0 %v503_v12  ;;  %471 = vmatprep.mubr.bf16.mxu1 %v504_v13 }
  0x2a   :  { %464 = vmatmul.mubr.bf16.gmra.mrb[4].mxu0 %v505_v14  ;;  %472 = vmatmul.mubr.bf16.gmra.mrb[4].mxu1 %v506_v15 }
  0xf5   :  { %v461_v16 = vpop.f32.mrb[0].mxu0  ;;  %v469_v18 = vpop.f32.mrb[0].mxu1 }
  0xf6   :  { %v184_v19 = vpop.f32.mrb[1].mxu0  ;;  %v216_v20 = vpop.f32.mrb[1].mxu1  ;;  %v193_v23 = vadd.f32 %v461_v16, %v331_v17  ;;  %v225_v24 = vadd.f32 %v469_v18, %v331_v17 }
  0xf7   :  { %v462_v21 = vpop.f32.mrb[2].mxu0  ;;  %v470_v22 = vpop.f32.mrb[2].mxu1  ;;  %v185_v29 = vadd.f32 %v331_v17, %v184_v19  ;;  %v217_v30 = vadd.f32 %v331_v17, %v216_v20 }
  0xf8   :  { %v196_v25 = vadd.f32 %v462_v21, %v331_v17  ;;  %v228_v26 = vadd.f32 %v470_v22, %v331_v17  ;;  %v187_v27 = vpop.f32.mrb[3].mxu0  ;;  %v219_v28 = vpop.f32.mrb[3].mxu1 }
  0xf9   :  { %v188_v31 = vadd.f32 %v331_v17, %v187_v27  ;;  %v220_v32 = vadd.f32 %v331_v17, %v219_v28 }
  0xfa   :  { %v388_v33 = vpack.c.bf16 %v196_v25, %v193_v23  ;;  %v408_v34 = vpack.c.bf16 %v228_v26, %v225_v24 }
  0xfb   :  { %v383_v35 = vpack.c.bf16 %v188_v31, %v185_v29  ;;  %v403_v36 = vpack.c.bf16 %v220_v32, %v217_v30 }
  0xfc   :  { %420 = vst [vmem:[%s605_s3 + $0x8] sm:$0xff] %v388_v33   ;;  %424 = vst [vmem:[%s605_s3 + $0x28] sm:$0xff] %v408_v34  }
  0xfd   :  { %384 = vst [vmem:[%s605_s3] sm:$0xff] %v383_v35   ;;  %423 = vst [vmem:[%s605_s3 + $0x20] sm:$0xff] %v403_v36   ;;  %v465_v37 = vpop.f32.mrb[4].mxu0  ;;  %v473_v38 = vpop.f32.mrb[4].mxu1 }
  0xfe   :  { %v200_v39 = vpop.f32.mrb[5].mxu0  ;;  %v232_v40 = vpop.f32.mrb[5].mxu1  ;;  %v209_v43 = vadd.f32 %v465_v37, %v331_v17  ;;  %v241_v44 = vadd.f32 %v473_v38, %v331_v17 }
  0xff   :  { %v466_v41 = vpop.f32.mrb[6].mxu0  ;;  %v474_v42 = vpop.f32.mrb[6].mxu1  ;;  %v201_v49 = vadd.f32 %v331_v17, %v200_v39  ;;  %v233_v50 = vadd.f32 %v331_v17, %v232_v40 }
 0x100   :  { %v212_v45 = vadd.f32 %v466_v41, %v331_v17  ;;  %v244_v46 = vadd.f32 %v474_v42, %v331_v17  ;;  %v203_v47 = vpop.f32.mrb[7].mxu0  ;;  %v235_v48 = vpop.f32.mrb[7].mxu1 }
 0x101   :  { %v204_v51 = vadd.f32 %v331_v17, %v203_v47  ;;  %v236_v52 = vadd.f32 %v331_v17, %v235_v48 }
 0x102   :  { %v398_v53 = vpack.c.bf16 %v212_v45, %v209_v43  ;;  %v418_v54 = vpack.c.bf16 %v244_v46, %v241_v44 }
 0x103   :  { %v393_v55 = vpack.c.bf16 %v204_v51, %v201_v49  ;;  %v413_v56 = vpack.c.bf16 %v236_v52, %v233_v50 }
 0x104   :  { %422 = vst [vmem:[%s605_s3 + $0x18] sm:$0xff] %v398_v53   ;;  %426 = vst [vmem:[%s605_s3 + $0x38] sm:$0xff] %v418_v54  }
 0x105   :  { %421 = vst [vmem:[%s605_s3 + $0x10] sm:$0xff] %v393_v55   ;;  %425 = vst [vmem:[%s605_s3 + $0x30] sm:$0xff] %v413_v56  }

// kernel: skvqgan_forward.46
= control target key start
LH: loop header
LB: loop body
LE: loop exit
PB: predicated region body
PF: predicated region fallthrough
CT: control target
= control target key end

     0   :  { %s1753_s1 = inlined_call_operand.vmem [shape: bf16[640,128], index: 1, kind: input, shape index: {}]   ;;  %s1754_s0 = inlined_call_operand.vmem [shape: bf16[128,640], index: 0, kind: input, shape index: {}]   ;;  %s1755_s2 = inlined_call_operand.vmem [shape: f32[1,128], index: 2, kind: input, shape index: {}]   ;;  %s1756_s3 = inlined_call_operand.vmem [shape: bf16[128,128], index: 3, kind: output, shape index: {}]  }
   0x1   :  { %v1325_v0 = vld [vmem:[%s1753_s1 + $0x40] sm:$0xff]   ;;  %v1329_v4 = vld [vmem:[%s1753_s1 + $0x48] sm:$0xff]   ;;  %v1333_v8 = vld [vmem:[%s1753_s1 + $0x50] sm:$0xff]  }
   0x2   :  { %v1326_v1 = vld [vmem:[%s1753_s1 + $0xc0] sm:$0xff]   ;;  %1133 = vmatprep.subr.bf16.mxu0 %v1325_v0  ;;  %v1330_v5 = vld [vmem:[%s1753_s1 + $0xc8] sm:$0xff]   ;;  %v1334_v9 = vld [vmem:[%s1753_s1 + $0xd0] sm:$0xff]  }
   0x3   :  { %v1327_v2 = vld [vmem:[%s1753_s1] sm:$0xff]   ;;  %1197 = vmatprep.subr.bf16.mxu1 %v1326_v1  ;;  %v1331_v6 = vld [vmem:[%s1753_s1 + $0x8] sm:$0xff]   ;;  %v1335_v10 = vld [vmem:[%s1753_s1 + $0x10] sm:$0xff]  }
   0x4   :  { %v1328_v3 = vld [vmem:[%s1753_s1 + $0x80] sm:$0xff]   ;;  %1134 = vmatpush3.bf16.msra.mxu0 %v1327_v2  ;;  %v1332_v7 = vld [vmem:[%s1753_s1 + $0x88] sm:$0xff]   ;;  %v1336_v11 = vld [vmem:[%s1753_s1 + $0x90] sm:$0xff]  }
   0x5   :  { %1198 = vmatpush3.bf16.msra.mxu1 %v1328_v3  ;;  %1135 = vmatprep.subr.bf16.mxu0 %v1329_v4  ;;  %v1337_v12 = vld [vmem:[%s1753_s1 + $0x58] sm:$0xff]   ;;  %v1341_v16 = vld [vmem:[%s1753_s1 + $0x60] sm:$0xff]   ;;  %v1345_v20 = vld [vmem:[%s1753_s1 + $0x68] sm:$0xff]  }
   0x6   :  { %1199 = vmatprep.subr.bf16.mxu1 %v1330_v5  ;;  %v1338_v13 = vld [vmem:[%s1753_s1 + $0xd8] sm:$0xff]   ;;  %v1342_v17 = vld [vmem:[%s1753_s1 + $0xe0] sm:$0xff]   ;;  %v1346_v21 = vld [vmem:[%s1753_s1 + $0xe8] sm:$0xff]  }
   0x7   :  { %v1339_v14 = vld [vmem:[%s1753_s1 + $0x18] sm:$0xff]   ;;  %v1343_v18 = vld [vmem:[%s1753_s1 + $0x20] sm:$0xff]   ;;  %v1347_v22 = vld [vmem:[%s1753_s1 + $0x28] sm:$0xff]  }
   0x8   :  { %1136 = vmatpush3.bf16.msra.mxu0 %v1331_v6  ;;  %v1340_v15 = vld [vmem:[%s1753_s1 + $0x98] sm:$0xff]   ;;  %v1344_v19 = vld [vmem:[%s1753_s1 + $0xa0] sm:$0xff]   ;;  %v1348_v23 = vld [vmem:[%s1753_s1 + $0xa8] sm:$0xff]  }
   0x9   :  { %1200 = vmatpush3.bf16.msra.mxu1 %v1332_v7  ;;  %1137 = vmatprep.subr.bf16.mxu0 %v1333_v8  ;;  %v1349_v24 = vld [vmem:[%s1753_s1 + $0x70] sm:$0xff]   ;;  %v1353_v28 = vld [vmem:[%s1753_s1 + $0x78] sm:$0xff]   ;;  %v1362_v35 = vld [vmem:[%s1754_s0 + $0xc] ss:$20 sps:$4 sm:$0xff]  }
   0xa   :  { %1201 = vmatprep.subr.bf16.mxu1 %v1334_v9  ;;  %v1350_v25 = vld [vmem:[%s1753_s1 + $0xf0] sm:$0xff]   ;;  %v1354_v29 = vld [vmem:[%s1753_s1 + $0xf8] sm:$0xff]   ;;  %v1363_v36 = vld [vmem:[%s1753_s1 + $0x100] sm:$0xff]   ;;  %727 = vmatprep.mubr.bf16.mxu1 %v1362_v35 }
   0xb   :  { %v1351_v26 = vld [vmem:[%s1753_s1 + $0x30] sm:$0xff]   ;;  %v1355_v30 = vld [vmem:[%s1753_s1 + $0x38] sm:$0xff]   ;;  %v1364_v37 = vld [vmem:[%s1754_s0 + $0x2c] ss:$20 sps:$4 sm:$0xff]  }
   0xc   :  { %1138 = vmatpush3.bf16.msra.mxu0 %v1335_v10  ;;  %v1352_v27 = vld [vmem:[%s1753_s1 + $0xb0] sm:$0xff]   ;;  %v1356_v31 = vld [vmem:[%s1753_s1 + $0xb8] sm:$0xff]   ;;  %v1370_v39 = vld [vmem:[%s1753_s1 + $0x108] sm:$0xff]  }
   0xd   :  { %1202 = vmatpush3.bf16.msra.mxu1 %v1336_v11  ;;  %1139 = vmatprep.subr.bf16.mxu0 %v1337_v12  ;;  %v1357_v32 = vld [vmem:[%s1754_s0] ss:$20 sps:$4 sm:$0xff]   ;;  %v1359_v33 = vld [vmem:[%s1754_s0 + $0x4] ss:$20 sps:$4 sm:$0xff]   ;;  %v1360_v34 = vld [vmem:[%s1754_s0 + $0x8] ss:$20 sps:$4 sm:$0xff]  }
   0xe   :  { %1203 = vmatprep.subr.bf16.mxu1 %v1338_v13  ;;  %630 = vmatprep.mubr.bf16.mxu0 %v1359_v33  ;;  %v1366_v38 = vld [vmem:[%s1754_s0 + $0x34] ss:$20 sps:$4 sm:$0xff]   ;;  %v1369_v41 = vld [vmem:[%s1754_s0 + $0x30] ss:$20 sps:$4 sm:$0xff]   ;;  %v1384_v45 = vld [vmem:[%s1753_s1 + $0x118] sm:$0xff]  }
   0xf   :  { %v1368_v40 = vld [vmem:[%s1754_s0 + $0x28] ss:$20 sps:$4 sm:$0xff]   ;;  %v1377_v44 = vld [vmem:[%s1753_s1 + $0x110] sm:$0xff]   ;;  %v1376_v47 = vld [vmem:[%s1754_s0 + $0x58] ss:$20 sps:$4 sm:$0xff]  }
  0x10   :  { %1140 = vmatpush3.bf16.msra.mxu0 %v1339_v14  ;;  %v1371_v42 = vld [vmem:[%s1754_s0 + $0x54] ss:$20 sps:$4 sm:$0xff]   ;;  %v1373_v43 = vld [vmem:[%s1754_s0 + $0x5c] ss:$20 sps:$4 sm:$0xff]   ;;  %v1380_v49 = vld [vmem:[%s1754_s0 + $0x84] ss:$20 sps:$4 sm:$0xff]  }
  0x11   :  { %1204 = vmatpush3.bf16.msra.mxu1 %v1340_v15  ;;  %1141 = vmatprep.subr.bf16.mxu0 %v1341_v16  ;;  %v1375_v46 = vld [vmem:[%s1754_s0 + $0x50] ss:$20 sps:$4 sm:$0xff]   ;;  %v1398_v51 = vld [vmem:[%s1753_s1 + $0x128] sm:$0xff]   ;;  %v1383_v53 = vld [vmem:[%s1754_s0 + $0x80] ss:$20 sps:$4 sm:$0xff]  }
  0x12   :  { %1205 = vmatprep.subr.bf16.mxu1 %v1342_v17  ;;  %v1378_v48 = vld [vmem:[%s1754_s0 + $0x7c] ss:$20 sps:$4 sm:$0xff]   ;;  %v1391_v50 = vld [vmem:[%s1753_s1 + $0x120] sm:$0xff]   ;;  %v1382_v52 = vld [vmem:[%s1754_s0 + $0x78] ss:$20 sps:$4 sm:$0xff]  }
  0x13   :  { %v1385_v54 = vld [vmem:[%s1754_s0 + $0xa4] ss:$20 sps:$4 sm:$0xff]   ;;  %v1405_v55 = vld [vmem:[%s1753_s1 + $0x130] sm:$0xff]   ;;  %v1387_v56 = vld [vmem:[%s1754_s0 + $0xac] ss:$20 sps:$4 sm:$0xff]  }
  0x14   :  { %1142 = vmatpush3.bf16.msra.mxu0 %v1343_v18  ;;  %v1412_v57 = vld [vmem:[%s1753_s1 + $0x138] sm:$0xff]   ;;  %v1389_v58 = vld [vmem:[%s1754_s0 + $0xa0] ss:$20 sps:$4 sm:$0xff]   ;;  %v1397_v63 = vld [vmem:[%s1754_s0 + $0xd0] ss:$20 sps:$4 sm:$0xff]  }
  0x15   :  { %1206 = vmatpush3.bf16.msra.mxu1 %v1344_v19  ;;  %1143 = vmatprep.subr.bf16.mxu0 %v1345_v20  ;;  %v1390_v59 = vld [vmem:[%s1754_s0 + $0xa8] ss:$20 sps:$4 sm:$0xff]   ;;  %v1392_v60 = vld [vmem:[%s1754_s0 + $0xcc] ss:$20 sps:$4 sm:$0xff]   ;;  %v1403_v2 = vld [vmem:[%s1754_s0 + $0xf0] ss:$20 sps:$4 sm:$0xff]  }
  0x16   :  { %1207 = vmatprep.subr.bf16.mxu1 %v1346_v21  ;;  %v1394_v61 = vld [vmem:[%s1754_s0 + $0xd4] ss:$20 sps:$4 sm:$0xff]   ;;  %v1401_v1 = vld [vmem:[%s1754_s0 + $0xfc] ss:$20 sps:$4 sm:$0xff]   ;;  %v1404_v3 = vld [vmem:[%s1754_s0 + $0xf8] ss:$20 sps:$4 sm:$0xff]  }
  0x17   :  { %v1396_v62 = vld [vmem:[%s1754_s0 + $0xc8] ss:$20 sps:$4 sm:$0xff]   ;;  %v1408_v5 = vld [vmem:[%s1754_s0 + $0x124] ss:$20 sps:$4 sm:$0xff]   ;;  %v1411_v7 = vld [vmem:[%s1754_s0 + $0x120] ss:$20 sps:$4 sm:$0xff]  }
  0x18   :  { %1144 = vmatpush3.bf16.msra.mxu0 %v1347_v22  ;;  %v1399_v0 = vld [vmem:[%s1754_s0 + $0xf4] ss:$20 sps:$4 sm:$0xff]   ;;  %v1406_v4 = vld [vmem:[%s1754_s0 + $0x11c] ss:$20 sps:$4 sm:$0xff]   ;;  %v1410_v6 = vld [vmem:[%s1754_s0 + $0x118] ss:$20 sps:$4 sm:$0xff]  }
  0x19   :  { %1208 = vmatpush3.bf16.msra.mxu1 %v1348_v23  ;;  %1145 = vmatprep.subr.bf16.mxu0 %v1349_v24  ;;  %v1413_v8 = vld [vmem:[%s1754_s0 + $0x10] ss:$20 sps:$4 sm:$0xff]   ;;  %v1415_v10 = vld [vmem:[%s1754_s0 + $0x38] ss:$20 sps:$4 sm:$0xff]   ;;  %v1417_v12 = vld [vmem:[%s1754_s0 + $0x60] ss:$20 sps:$4 sm:$0xff]  }
  0x1a   :  { %1209 = vmatprep.subr.bf16.mxu1 %v1350_v25  ;;  %v1414_v9 = vld [vmem:[%s1754_s0 + $0xb0] ss:$20 sps:$4 sm:$0xff]   ;;  %v1416_v11 = vld [vmem:[%s1754_s0 + $0xd8] ss:$20 sps:$4 sm:$0xff]   ;;  %v1418_v13 = vld [vmem:[%s1754_s0 + $0x100] ss:$20 sps:$4 sm:$0xff]  }
  0x1b   :  { %v1419_v14 = vld [vmem:[%s1754_s0 + $0x88] ss:$20 sps:$4 sm:$0xff]   ;;  %v1684_v18 = vld [vmem:[%s1755_s2] ss:$0 sm:$0xff] }
  0x1c   :  { %1146 = vmatpush3.bf16.msra.mxu0 %v1351_v26  ;;  %v1420_v15 = vld [vmem:[%s1754_s0 + $0x128] ss:$20 sps:$4 sm:$0xff]  }
  0x1d   :  { %1210 = vmatpush3.bf16.msra.mxu1 %v1352_v27  ;;  %1147 = vmatprep.subr.bf16.mxu0 %v1353_v28 }
  0x1e   :  { %1211 = vmatprep.subr.bf16.mxu1 %v1354_v29 }
  0x20   :  { %1148 = vmatpush3.bf16.msra.mxu0 %v1355_v30 }
  0x21   :  { %1212 = vmatpush3.bf16.msra.mxu1 %v1356_v31  ;;  %1277 = vmatprep.subr.bf16.mxu0 %v1363_v36 }
  0x22   :  { %1309 = vmatprep.subr.bf16.mxu1 %v1363_v36 }
  0x23   :  { %631 = vmatmul.mubr.bf16.vlgmr.msra.gmra.mrb[0].mxu0 %v1357_v32 }
  0x24   :  { %728 = vmatmul.mubr.bf16.vlgmr.msra.gmra.mrb[0].mxu1 %v1360_v34  ;;  %1278 = vmatpush3.bf16.msra.mxu0 %v1363_v36 }
  0x25   :  { %1317 = vmatpush3.bf16.msra.mxu1 %v1363_v36  ;;  %638 = vmatprep.mubr.bf16.mxu0 %v1364_v37 }
  0x26   :  { %735 = vmatprep.mubr.bf16.mxu1 %v1366_v38  ;;  %1279 = vmatprep.subr.bf16.mxu0 %v1370_v39 }
  0x27   :  { %1310 = vmatprep.subr.bf16.mxu1 %v1370_v39 }
  0x28   :  { %1280 = vmatpush3.bf16.msra.mxu0 %v1370_v39 }
  0x29   :  { %1318 = vmatpush3.bf16.msra.mxu1 %v1370_v39  ;;  %1281 = vmatprep.subr.bf16.mxu0 %v1377_v44 }
  0x2a   :  { %1311 = vmatprep.subr.bf16.mxu1 %v1377_v44 }
  0x2b   :  { %639 = vmatmul.mubr.bf16.gmra.mrb[4].mxu0 %v1368_v40 }
  0x2c   :  { %736 = vmatmul.mubr.bf16.gmra.mrb[4].mxu1 %v1369_v41  ;;  %646 = vmatprep.mubr.bf16.mxu0 %v1371_v42 }
  0x2d   :  { %743 = vmatprep.mubr.bf16.mxu1 %v1373_v43  ;;  %1282 = vmatpush3.bf16.msra.mxu0 %v1377_v44 }
  0x2e   :  { %1319 = vmatpush3.bf16.msra.mxu1 %v1377_v44  ;;  %1283 = vmatprep.subr.bf16.mxu0 %v1384_v45 }
  0x2f   :  { %1312 = vmatprep.subr.bf16.mxu1 %v1384_v45 }
  0x31   :  { %1284 = vmatpush3.bf16.msra.mxu0 %v1384_v45 }
  0x32   :  { %1320 = vmatpush3.bf16.msra.mxu1 %v1384_v45  ;;  %1285 = vmatprep.subr.bf16.mxu0 %v1391_v50 }
  0x33   :  { %647 = vmatmul.mubr.bf16.gmra.mrb[8].mxu0 %v1375_v46  ;;  %1313 = vmatprep.subr.bf16.mxu1 %v1391_v50 }
  0x34   :  { %744 = vmatmul.mubr.bf16.gmra.mrb[8].mxu1 %v1376_v47  ;;  %654 = vmatprep.mubr.bf16.mxu0 %v1378_v48 }
  0x35   :  { %751 = vmatprep.mubr.bf16.mxu1 %v1380_v49  ;;  %1286 = vmatpush3.bf16.msra.mxu0 %v1391_v50 }
  0x36   :  { %1321 = vmatpush3.bf16.msra.mxu1 %v1391_v50  ;;  %1287 = vmatprep.subr.bf16.mxu0 %v1398_v51 }
  0x37   :  { %1314 = vmatprep.subr.bf16.mxu1 %v1398_v51 }
  0x39   :  { %1288 = vmatpush3.bf16.msra.mxu0 %v1398_v51 }
  0x3a   :  { %1322 = vmatpush3.bf16.msra.mxu1 %v1398_v51  ;;  %1289 = vmatprep.subr.bf16.mxu0 %v1405_v55 }
  0x3b   :  { %655 = vmatmul.mubr.bf16.gmra.mrb[12].mxu0 %v1382_v52  ;;  %1315 = vmatprep.subr.bf16.mxu1 %v1405_v55 }
  0x3c   :  { %752 = vmatmul.mubr.bf16.gmra.mrb[12].mxu1 %v1383_v53  ;;  %662 = vmatprep.mubr.bf16.mxu0 %v1385_v54 }
  0x3d   :  { %759 = vmatprep.mubr.bf16.mxu1 %v1387_v56  ;;  %1290 = vmatpush3.bf16.msra.mxu0 %v1405_v55 }
  0x3e   :  { %1323 = vmatpush3.bf16.msra.mxu1 %v1405_v55  ;;  %1291 = vmatprep.subr.bf16.mxu0 %v1412_v57 }
  0x3f   :  { %1316 = vmatprep.subr.bf16.mxu1 %v1412_v57 }
  0x41   :  { %1292 = vmatpush3.bf16.msra.mxu0 %v1412_v57 }
  0x42   :  { %1324 = vmatpush3.bf16.msra.mxu1 %v1412_v57 }
  0x43   :  { %663 = vmatmul.mubr.bf16.gmra.mrb[16].mxu0 %v1389_v58 }
  0x44   :  { %760 = vmatmul.mubr.bf16.gmra.mrb[16].mxu1 %v1390_v59  ;;  %670 = vmatprep.mubr.bf16.mxu0 %v1392_v60 }
  0x45   :  { %767 = vmatprep.mubr.bf16.mxu1 %v1394_v61 }
  0x4b   :  { %671 = vmatmul.mubr.bf16.gmra.mrb[20].mxu0 %v1396_v62 }
  0x4c   :  { %768 = vmatmul.mubr.bf16.gmra.mrb[20].mxu1 %v1397_v63  ;;  %678 = vmatprep.mubr.bf16.mxu0 %v1399_v0 }
  0x4d   :  { %775 = vmatprep.mubr.bf16.mxu1 %v1401_v1 }
  0x53   :  { %679 = vmatmul.mubr.bf16.gmra.mrb[24].mxu0 %v1403_v2 }
  0x54   :  { %776 = vmatmul.mubr.bf16.gmra.mrb[24].mxu1 %v1404_v3  ;;  %686 = vmatprep.mubr.bf16.mxu0 %v1406_v4 }
  0x55   :  { %783 = vmatprep.mubr.bf16.mxu1 %v1408_v5 }
  0x5b   :  { %687 = vmatmul.mubr.bf16.gmra.mrb[28].mxu0 %v1410_v6 }
  0x5c   :  { %784 = vmatmul.mubr.bf16.gmra.mrb[28].mxu1 %v1411_v7  ;;  %1293 = vmatprep.mubr.bf16.mxu0 %v1413_v8 }
  0x5d   :  { %1301 = vmatprep.mubr.bf16.mxu1 %v1414_v9 }
  0x63   :  { %1294 = vmatmul.mubr.bf16.vlgmr.msra.gmra.mrb[32].mxu0 %v1415_v10 }
  0x64   :  { %1302 = vmatmul.mubr.bf16.vlgmr.msra.gmra.mrb[32].mxu1 %v1416_v11  ;;  %1297 = vmatprep.mubr.bf16.mxu0 %v1417_v12 }
  0x65   :  { %1305 = vmatprep.mubr.bf16.mxu1 %v1418_v13 }
  0x6b   :  { %1298 = vmatmul.mubr.bf16.gmra.mrb[36].mxu0 %v1419_v14 }
  0x6c   :  { %1306 = vmatmul.mubr.bf16.gmra.mrb[36].mxu1 %v1420_v15 }
  0xf6   :  { %v1149_v16 = vpop.f32.mrb[0].mxu0 }
  0xf7   :  { %v1213_v17 = vpop.f32.mrb[0].mxu1  ;;  %v1150_v19 = vpop.f32.mrb[1].mxu0 }
  0xf8   :  { %v1151_v20 = vadd.f32 %v1150_v19, %v1149_v16  ;;  %v1214_v21 = vpop.f32.mrb[1].mxu1  ;;  %v1152_v22 = vpop.f32.mrb[2].mxu0 }
  0xf9   :  { %v1215_v23 = vadd.f32 %v1214_v21, %v1213_v17  ;;  %v1216_v24 = vpop.f32.mrb[2].mxu1  ;;  %v1153_v25 = vpop.f32.mrb[3].mxu0 }
  0xfa   :  { %v633_v26 = vadd.f32 %v1151_v20, %v1684_v18  ;;  %v1154_v27 = vadd.f32 %v1153_v25, %v1152_v22  ;;  %v1217_v28 = vpop.f32.mrb[3].mxu1 }
  0xfb   :  { %v1218_v29 = vadd.f32 %v1217_v28, %v1216_v24 }
  0xfc   :  { %v636_v30 = vadd.f32 %v1154_v27, %v1684_v18  ;;  %v1688_v31 = vadd.f32 %v1215_v23, %v633_v26 }
  0xfe   :  { %v1155_v32 = vpop.f32.mrb[4].mxu0  ;;  %v1690_v33 = vadd.f32 %v1218_v29, %v636_v30 }
  0xff   :  { %v1219_v34 = vpop.f32.mrb[4].mxu1  ;;  %v1156_v35 = vpop.f32.mrb[5].mxu0 }
 0x100   :  { %v1157_v36 = vadd.f32 %v1156_v35, %v1155_v32  ;;  %v1220_v37 = vpop.f32.mrb[5].mxu1  ;;  %v1158_v38 = vpop.f32.mrb[6].mxu0 }
 0x101   :  { %v1221_v39 = vadd.f32 %v1220_v37, %v1219_v34  ;;  %v1222_v40 = vpop.f32.mrb[6].mxu1  ;;  %v1159_v41 = vpop.f32.mrb[7].mxu0 }
 0x102   :  { %v641_v42 = vadd.f32 %v1157_v36, %v1684_v18  ;;  %v1160_v43 = vadd.f32 %v1159_v41, %v1158_v38  ;;  %v1223_v44 = vpop.f32.mrb[7].mxu1 }
 0x103   :  { %v1224_v45 = vadd.f32 %v1223_v44, %v1222_v40 }
 0x104   :  { %v644_v46 = vadd.f32 %v1160_v43, %v1684_v18  ;;  %v1694_v47 = vadd.f32 %v1221_v39, %v641_v42 }
 0x106   :  { %v1161_v48 = vpop.f32.mrb[8].mxu0  ;;  %v1696_v49 = vadd.f32 %v1224_v45, %v644_v46 }
 0x107   :  { %v1225_v50 = vpop.f32.mrb[8].mxu1  ;;  %v1162_v51 = vpop.f32.mrb[9].mxu0 }
 0x108   :  { %v1163_v52 = vadd.f32 %v1162_v51, %v1161_v48  ;;  %v1226_v53 = vpop.f32.mrb[9].mxu1  ;;  %v1164_v54 = vpop.f32.mrb[10].mxu0 }
 0x109   :  { %v1227_v55 = vadd.f32 %v1226_v53, %v1225_v50  ;;  %v1228_v56 = vpop.f32.mrb[10].mxu1  ;;  %v1165_v57 = vpop.f32.mrb[11].mxu0 }
 0x10a   :  { %v649_v58 = vadd.f32 %v1163_v52, %v1684_v18  ;;  %v1166_v59 = vadd.f32 %v1165_v57, %v1164_v54  ;;  %v1229_v60 = vpop.f32.mrb[11].mxu1 }
 0x10b   :  { %v1230_v61 = vadd.f32 %v1229_v60, %v1228_v56 }
 0x10c   :  { %v652_v62 = vadd.f32 %v1166_v59, %v1684_v18  ;;  %v1700_v63 = vadd.f32 %v1227_v55, %v649_v58 }
 0x10e   :  { %v1167_v0 = vpop.f32.mrb[12].mxu0  ;;  %v1702_v1 = vadd.f32 %v1230_v61, %v652_v62 }
 0x10f   :  { %v1231_v2 = vpop.f32.mrb[12].mxu1  ;;  %v1168_v3 = vpop.f32.mrb[13].mxu0 }
 0x110   :  { %v1169_v4 = vadd.f32 %v1168_v3, %v1167_v0  ;;  %v1232_v5 = vpop.f32.mrb[13].mxu1  ;;  %v1170_v6 = vpop.f32.mrb[14].mxu0 }
 0x111   :  { %v1233_v7 = vadd.f32 %v1232_v5, %v1231_v2  ;;  %v1234_v8 = vpop.f32.mrb[14].mxu1  ;;  %v1171_v9 = vpop.f32.mrb[15].mxu0 }
 0x112   :  { %v657_v10 = vadd.f32 %v1169_v4, %v1684_v18  ;;  %v1172_v11 = vadd.f32 %v1171_v9, %v1170_v6  ;;  %v1235_v12 = vpop.f32.mrb[15].mxu1 }
 0x113   :  { %v1236_v13 = vadd.f32 %v1235_v12, %v1234_v8 }
 0x114   :  { %v660_v14 = vadd.f32 %v1172_v11, %v1684_v18  ;;  %v1706_v15 = vadd.f32 %v1233_v7, %v657_v10 }
 0x116   :  { %v1173_v16 = vpop.f32.mrb[16].mxu0  ;;  %v1708_v17 = vadd.f32 %v1236_v13, %v660_v14 }
 0x117   :  { %v1237_v19 = vpop.f32.mrb[16].mxu1  ;;  %v1174_v20 = vpop.f32.mrb[17].mxu0 }
 0x118   :  { %v1175_v21 = vadd.f32 %v1174_v20, %v1173_v16  ;;  %v1238_v22 = vpop.f32.mrb[17].mxu1  ;;  %v1176_v23 = vpop.f32.mrb[18].mxu0 }
 0x119   :  { %v1239_v24 = vadd.f32 %v1238_v22, %v1237_v19  ;;  %v1240_v25 = vpop.f32.mrb[18].mxu1  ;;  %v1177_v26 = vpop.f32.mrb[19].mxu0 }
 0x11a   :  { %v665_v27 = vadd.f32 %v1175_v21, %v1684_v18  ;;  %v1178_v28 = vadd.f32 %v1177_v26, %v1176_v23  ;;  %v1241_v29 = vpop.f32.mrb[19].mxu1 }
 0x11b   :  { %v1242_v30 = vadd.f32 %v1241_v29, %v1240_v25 }
 0x11c   :  { %v668_v32 = vadd.f32 %v1178_v28, %v1684_v18  ;;  %v762_v34 = vadd.f32 %v1239_v24, %v665_v27 }
 0x11e   :  { %v1179_v35 = vpop.f32.mrb[20].mxu0  ;;  %v1712_v36 = vadd.f32 %v1242_v30, %v668_v32 }
 0x11f   :  { %v1243_v37 = vpop.f32.mrb[20].mxu1  ;;  %v1180_v38 = vpop.f32.mrb[21].mxu0 }
 0x120   :  { %v1181_v39 = vadd.f32 %v1180_v38, %v1179_v35  ;;  %v1244_v40 = vpop.f32.mrb[21].mxu1  ;;  %v1182_v41 = vpop.f32.mrb[22].mxu0 }
 0x121   :  { %v1245_v42 = vadd.f32 %v1244_v40, %v1243_v37  ;;  %v1246_v43 = vpop.f32.mrb[22].mxu1  ;;  %v1183_v44 = vpop.f32.mrb[23].mxu0 }
 0x122   :  { %v673_v45 = vadd.f32 %v1181_v39, %v1684_v18  ;;  %v1184_v46 = vadd.f32 %v1183_v44, %v1182_v41  ;;  %v1247_v48 = vpop.f32.mrb[23].mxu1 }
 0x123   :  { %v1248_v50 = vadd.f32 %v1247_v48, %v1246_v43 }
 0x124   :  { %v676_v51 = vadd.f32 %v1184_v46, %v1684_v18  ;;  %v770_v52 = vadd.f32 %v1245_v42, %v673_v45 }
 0x126   :  { %v1185_v53 = vpop.f32.mrb[24].mxu0  ;;  %v773_v54 = vadd.f32 %v1248_v50, %v676_v51 }
 0x127   :  { %v1249_v55 = vpop.f32.mrb[24].mxu1  ;;  %v1186_v56 = vpop.f32.mrb[25].mxu0 }
 0x128   :  { %v1187_v57 = vadd.f32 %v1186_v56, %v1185_v53  ;;  %v1250_v58 = vpop.f32.mrb[25].mxu1  ;;  %v1188_v59 = vpop.f32.mrb[26].mxu0 }
 0x129   :  { %v1251_v60 = vadd.f32 %v1250_v58, %v1249_v55  ;;  %v1252_v61 = vpop.f32.mrb[26].mxu1  ;;  %v1189_v62 = vpop.f32.mrb[27].mxu0 }
 0x12a   :  { %v681_v0 = vadd.f32 %v1187_v57, %v1684_v18  ;;  %v1190_v2 = vadd.f32 %v1189_v62, %v1188_v59  ;;  %v1253_v3 = vpop.f32.mrb[27].mxu1 }
 0x12b   :  { %v1254_v4 = vadd.f32 %v1253_v3, %v1252_v61 }
 0x12c   :  { %v684_v5 = vadd.f32 %v1190_v2, %v1684_v18  ;;  %v778_v6 = vadd.f32 %v1251_v60, %v681_v0 }
 0x12e   :  { %v1191_v7 = vpop.f32.mrb[28].mxu0  ;;  %v781_v8 = vadd.f32 %v1254_v4, %v684_v5 }
 0x12f   :  { %v1255_v9 = vpop.f32.mrb[28].mxu1  ;;  %v1192_v10 = vpop.f32.mrb[29].mxu0 }
 0x130   :  { %v1193_v11 = vadd.f32 %v1192_v10, %v1191_v7  ;;  %v1256_v12 = vpop.f32.mrb[29].mxu1  ;;  %v1194_v13 = vpop.f32.mrb[30].mxu0 }
 0x131   :  { %v1257_v14 = vadd.f32 %v1256_v12, %v1255_v9  ;;  %v1258_v16 = vpop.f32.mrb[30].mxu1  ;;  %v1195_v19 = vpop.f32.mrb[31].mxu0 }
 0x132   :  { %v689_v20 = vadd.f32 %v1193_v11, %v1684_v18  ;;  %v1196_v21 = vadd.f32 %v1195_v19, %v1194_v13  ;;  %v1259_v22 = vpop.f32.mrb[31].mxu1 }
 0x133   :  { %v1260_v23 = vadd.f32 %v1259_v22, %v1258_v16 }
 0x134   :  { %v692_v24 = vadd.f32 %v1196_v21, %v1684_v18  ;;  %v786_v25 = vadd.f32 %v1257_v14, %v689_v20 }
 0x136   :  { %v1295_v26 = vpop.f32.mrb[32].mxu0  ;;  %v789_v27 = vadd.f32 %v1260_v23, %v692_v24 }
 0x137   :  { %v835_v28 = vadd.f32 %v1295_v26, %v1694_v47  ;;  %v1303_v29 = vpop.f32.mrb[32].mxu1  ;;  %v826_v30 = vpop.f32.mrb[33].mxu0 }
 0x138   :  { %v867_v32 = vadd.f32 %v1303_v29, %v770_v52  ;;  %v827_v35 = vadd.f32 %v826_v30, %v1688_v31  ;;  %v858_v37 = vpop.f32.mrb[33].mxu1  ;;  %v1296_v38 = vpop.f32.mrb[34].mxu0 }
 0x139   :  { %v859_v39 = vadd.f32 %v858_v37, %v762_v34  ;;  %v838_v40 = vadd.f32 %v1296_v38, %v1696_v49  ;;  %v1304_v41 = vpop.f32.mrb[34].mxu1  ;;  %v829_v42 = vpop.f32.mrb[35].mxu0 }
 0x13a   :  { %v870_v43 = vadd.f32 %v1304_v41, %v773_v54  ;;  %v830_v18 = vadd.f32 %v829_v42, %v1690_v33  ;;  %v861_v44 = vpop.f32.mrb[35].mxu1 }
 0x13b   :  { %v1094_v45 = vpack.c.bf16 %v838_v40, %v835_v28  ;;  %v862_v46 = vadd.f32 %v861_v44, %v1712_v36 }
 0x13c   :  { %v1114_v47 = vpack.c.bf16 %v870_v43, %v867_v32  ;;  %v1089_v48 = vpack.c.bf16 %v830_v18, %v827_v35 }
 0x13d   :  { %1126 = vst [vmem:[%s1756_s3 + $0x8] sm:$0xff] %v1094_v45   ;;  %v1109_v31 = vpack.c.bf16 %v862_v46, %v859_v39 }
 0x13e   :  { %1130 = vst [vmem:[%s1756_s3 + $0x28] sm:$0xff] %v1114_v47   ;;  %1090 = vst [vmem:[%s1756_s3] sm:$0xff] %v1089_v48   ;;  %v1299_v33 = vpop.f32.mrb[36].mxu0 }
 0x13f   :  { %1129 = vst [vmem:[%s1756_s3 + $0x20] sm:$0xff] %v1109_v31   ;;  %v851_v49 = vadd.f32 %v1299_v33, %v1706_v15  ;;  %v1307_v34 = vpop.f32.mrb[36].mxu1  ;;  %v842_v36 = vpop.f32.mrb[37].mxu0 }
 0x140   :  { %v883_v50 = vadd.f32 %v1307_v34, %v786_v25  ;;  %v843_v51 = vadd.f32 %v842_v36, %v1700_v63  ;;  %v874_v52 = vpop.f32.mrb[37].mxu1  ;;  %v1300_v53 = vpop.f32.mrb[38].mxu0 }
 0x141   :  { %v875_v54 = vadd.f32 %v874_v52, %v778_v6  ;;  %v854_v55 = vadd.f32 %v1300_v53, %v1708_v17  ;;  %v1308_v56 = vpop.f32.mrb[38].mxu1  ;;  %v845_v57 = vpop.f32.mrb[39].mxu0 }
 0x142   :  { %v886_v58 = vadd.f32 %v1308_v56, %v789_v27  ;;  %v846_v59 = vadd.f32 %v845_v57, %v1702_v1  ;;  %v877_v60 = vpop.f32.mrb[39].mxu1 }
 0x143   :  { %v1104_v61 = vpack.c.bf16 %v854_v55, %v851_v49  ;;  %v878_v62 = vadd.f32 %v877_v60, %v781_v8 }
 0x144   :  { %v1124_v0 = vpack.c.bf16 %v886_v58, %v883_v50  ;;  %v1099_v15 = vpack.c.bf16 %v846_v59, %v843_v51 }
 0x145   :  { %1128 = vst [vmem:[%s1756_s3 + $0x18] sm:$0xff] %v1104_v61   ;;  %v1119_v63 = vpack.c.bf16 %v878_v62, %v875_v54 }
 0x146   :  { %1132 = vst [vmem:[%s1756_s3 + $0x38] sm:$0xff] %v1124_v0   ;;  %1127 = vst [vmem:[%s1756_s3 + $0x10] sm:$0xff] %v1099_v15  }
 0x147   :  { %1131 = vst [vmem:[%s1756_s3 + $0x30] sm:$0xff] %v1119_v63  }

// kernel: skvqgan_forward.53
= control target key start
LH: loop header
LB: loop body
LE: loop exit
PB: predicated region body
PF: predicated region fallthrough
CT: control target
= control target key end

     0   :  { %s874_s12 = smov 0   ;;  %s943_s0 = inlined_call_operand.vmem [shape: bf16[2,64,64], index: 0, kind: input, shape index: {}]   ;;  %s944_s1 = inlined_call_operand.vmem [shape: bf16[2,64,64], index: 1, kind: input, shape index: {}]   ;;  %s945_s2 = inlined_call_operand.vmem [shape: bf16[2,64,64], index: 2, kind: input, shape index: {}]   ;;  %s946_s3 = inlined_call_operand.vmem [shape: bf16[2,64,64], index: 3, kind: output, shape index: {}]  }
   0x1 LB: > { %s687_s13 = sadd.s32 4294967295, %s852_s12   ;;  %p691_p0 = scmp.ge.s32.totalorder %s852_s12, 1  ;;  %s852_s12 = sphi %s874_s12, %s13_s12  }
   0x2   : > { %p157_p1 = scmp.lt.s32.totalorder %s852_s12, 3 }
   0x4   : > { %p158_p2 = pnand %p691_p0, %p157_p1 }
   0x5   : > { %p191_p3 = scmp.lt.s32.totalorder (!%p158_p2), %s687_s13, 1  ;;  %vm276_vm0 = vcmask (!%p158_p2), 523264   ;;  %vm599_vm1 = vcmask (!%p158_p2), 519168  }
   0x6   : > { %161 = sbr.rel (%p158_p2) target bundleno = 814 (0x32e), region = 32 }
   0xd   : > { %s948_s13 = smov (!%p191_p3, %s687_s13), 1 }
   0xe   : > { %s882_s14 = sshll.u32 %s948_s13, 5 }
   0xf   : > { %s200_s17 = scalar_lea.vmem %s944_s1, %s882_s14  ;;  %s195_s20 = scalar_lea.vmem %s943_s0, %s882_s14 }
  0x10   : > { %v802_v0 = vld [vmem:[%s200_s17] sm:$0xff]   ;;  %v803_v1 = vld [vmem:[%s200_s17 + $0x8] sm:$0xff]   ;;  %v804_v5 = vld [vmem:[%s200_s17 + $0x10] sm:$0xff]   ;;  %s205_s23 = scalar_lea.vmem %s945_s2, %s882_s14  ;;  %s210_s26 = scalar_lea.vmem %s946_s3, %s882_s14 }
  0x11   : > { %790 = vmatprep.subr.msk.bf16.mxu0 %vm276_vm0, %v802_v0  ;;  %v290_v2 = vsel %vm276_vm0, %v802_v0, 0  ;;  %v806_v3 = vld [vmem:[%s195_s20] sm:$0xff]   ;;  %v293_v4 = vsel %vm276_vm0, %v803_v1, 0  ;;  %v296_v6 = vsel %vm276_vm0, %v804_v5, 0  ;;  %v805_v7 = vld [vmem:[%s200_s17 + $0x18] sm:$0xff]   ;;  %v807_v9 = vld [vmem:[%s195_s20 + $0x8] sm:$0xff]  }
  0x12   : > { %759 = vmatpush3.bf16.xpose.msra.mxu0 %v290_v2  ;;  %766 = vmatprep.mubr.msk.bf16.mxu0 %vm276_vm0, %v806_v3  ;;  %v299_v8 = vsel %vm276_vm0, %v805_v7, 0  ;;  %v808_v10 = vld [vmem:[%s195_s20 + $0x10] sm:$0xff]   ;;  %v809_v11 = vld [vmem:[%s195_s20 + $0x18] sm:$0xff]  }
  0x13   : > { %791 = vmatprep.subr.msk.bf16.mxu0 %vm276_vm0, %v803_v1 }
  0x1a   : > { %761 = vmatpush3.bf16.xpose.msra.mxu0 %v293_v4 }
  0x1b   : > { %792 = vmatprep.subr.msk.bf16.mxu0 %vm276_vm0, %v804_v5 }
  0x22   : > { %763 = vmatpush3.bf16.xpose.msra.mxu0 %v296_v6 }
  0x23   : > { %793 = vmatprep.subr.msk.bf16.mxu0 %vm276_vm0, %v805_v7 }
  0x2a   : > { %765 = vmatpush3.bf16.xpose.msra.mxu0 %v299_v8 }
  0x31   : > { %767 = vmatmul.mubr.msk.bf16.vlgmr.msra.gmra.mrb[0].mxu0 %vm276_vm0, %v807_v9 }
  0x32   : > { %770 = vmatprep.mubr.msk.bf16.mxu0 %vm276_vm0, %v808_v10 }
  0x39   : > { %771 = vmatmul.mubr.msk.bf16.gmra.mrb[4].mxu0 %vm276_vm0, %v809_v11 }
 0x104   : > { %v768_v12 = vpop.f32.mrb[0].mxu0 }
 0x105   : > { %v368_v13 = vmul.f32 0.125, %v768_v12  ;;  %v335_v14 = vpop.f32.mrb[1].mxu0  ;;  %v810_v12 = vld [vmem:[%s205_s23] sm:$0xff]  }
 0x106   : > { %v366_v15 = vmul.f32 0.125, %v335_v14  ;;  %v769_v16 = vpop.f32.mrb[2].mxu0  ;;  %774 = vmatprep.subr.bf16.mxu1 %v810_v12  ;;  %v812_v14 = vld [vmem:[%s205_s23 + $0x10] sm:$0xff]  }
 0x107   : > { %v369_v17 = vmul.f32 0.125, %v769_v16  ;;  %v338_v18 = vpop.f32.mrb[3].mxu0  ;;  %v380_v19 = vsel %vm276_vm0, %v368_v13, -inf  ;;  %775 = vmatpush3.bf16.msra.mxu1 %v810_v12 }
 0x108   : > { %v367_v20 = vmul.f32 0.125, %v338_v18  ;;  %381 = vmax.xlane.f32.xlu1 %v380_v19  ;;  %v374_v21 = vsel %vm276_vm0, %v366_v15, -inf }
 0x109   : > { %375 = vmax.xlane.f32.xlu0 %v374_v21  ;;  %v383_v22 = vsel %vm276_vm0, %v369_v17, -inf }
 0x10a   : > { %v377_v24 = vsel %vm276_vm0, %v367_v20, -inf }
 0x10c   : > { %384 = vmax.xlane.f32.xlu1 %v383_v22  ;;  %v772_v23 = vpop.f32.mrb[4].mxu0 }
 0x10d   : > { %378 = vmax.xlane.f32.xlu0 %v377_v24  ;;  %v351_v25 = vpop.f32.mrb[5].mxu0  ;;  %v372_v29 = vmul.f32 0.125, %v772_v23 }
 0x10e   : > { %v370_v26 = vmul.f32 0.125, %v351_v25  ;;  %v773_v27 = vpop.f32.mrb[6].mxu0 }
 0x10f   : > { %v354_v28 = vpop.f32.mrb[7].mxu0  ;;  %v373_v32 = vmul.f32 0.125, %v773_v27  ;;  %v392_v34 = vsel %vm276_vm0, %v372_v29, -inf }
 0x110   : > { %v371_v30 = vmul.f32 0.125, %v354_v28  ;;  %v386_v31 = vsel %vm276_vm0, %v370_v26, -inf }
 0x111   : > { %387 = vmax.xlane.f32.xlu0 %v386_v31  ;;  %v395_v35 = vsel %vm276_vm0, %v373_v32, -inf }
 0x112   : > { %v389_v33 = vsel %vm276_vm0, %v371_v30, -inf }
 0x113   : > { %390 = vmax.xlane.f32.xlu1 %v389_v33 }
 0x115   : > { %393 = vmax.xlane.f32.xlu0 %v392_v34 }
 0x117   : > { %396 = vmax.xlane.f32.xlu1 %v395_v35 }
 0x195   : > { %v382_v36 = vpop.xlane.xlu1 %381 }
 0x196   : > { %v400_v37 = vsub.f32 %v368_v13, %v382_v36  ;;  %v376_v38 = vpop.xlane.xlu0 %375  ;;  %v811_v13 = vld [vmem:[%s205_s23 + $0x8] sm:$0xff]  }
 0x197   : > { %v398_v39 = vsub.f32 %v366_v15, %v376_v38  ;;  %776 = vmatprep.subr.bf16.mxu1 %v811_v13  ;;  %v813_v15 = vld [vmem:[%s205_s23 + $0x18] sm:$0xff]  }
 0x198   : > { %v410_v40 = vmul.f32 1.442695, %v400_v37  ;;  %777 = vmatpush3.bf16.msra.mxu1 %v811_v13 }
 0x199   : > { %v406_v41 = vmul.f32 1.442695, %v398_v39  ;;  %v385_v42 = vpop.xlane.xlu1 %384  ;;  %778 = vmatprep.subr.bf16.mxu1 %v812_v14 }
 0x19a   : > { %v401_v43 = vsub.f32 %v369_v17, %v385_v42  ;;  %v379_v44 = vpop.xlane.xlu0 %378 }
 0x19b   : > { %814 = vpow2.f32 %v406_v41  ;;  %v399_v45 = vsub.f32 %v367_v20, %v379_v44 }
 0x19c   : > { %816 = vpow2.f32 %v410_v40  ;;  %v412_v46 = vmul.f32 1.442695, %v401_v43  ;;  %779 = vmatpush3.bf16.msra.mxu1 %v812_v14 }
 0x19d   : > { %v408_v47 = vmul.f32 1.442695, %v399_v45  ;;  %780 = vmatprep.subr.bf16.mxu1 %v813_v15 }
 0x19e   : > { %v388_v48 = vpop.xlane.xlu0 %387 }
 0x19f   : > { %818 = vpow2.f32 %v408_v47  ;;  %v402_v49 = vsub.f32 %v370_v26, %v388_v48 }
 0x1a0   : > { %v391_v50 = vpop.xlane.xlu1 %390  ;;  %820 = vpow2.f32 %v412_v46  ;;  %781 = vmatpush3.bf16.msra.mxu1 %v813_v15 }
 0x1a1   : > { %v414_v51 = vmul.f32 1.442695, %v402_v49  ;;  %v403_v52 = vsub.f32 %v371_v30, %v391_v50 }
 0x1a2   : > { %v394_v53 = vpop.xlane.xlu0 %393 }
 0x1a3   : > { %822 = vpow2.f32 %v414_v51  ;;  %v416_v54 = vmul.f32 1.442695, %v403_v52  ;;  %v404_v55 = vsub.f32 %v372_v29, %v394_v53 }
 0x1a4   : > { %v397_v56 = vpop.xlane.xlu1 %396 }
 0x1a5   : > { %v815_v57 = vpop.eup %814  ;;  %824 = vpow2.f32 %v416_v54  ;;  %v418_v58 = vmul.f32 1.442695, %v404_v55  ;;  %v405_v59 = vsub.f32 %v373_v32, %v397_v56 }
 0x1a6   : > { %v422_v60 = vsel %vm276_vm0, %v815_v57, 0.0  ;;  %v817_v61 = vpop.eup %816 }
 0x1a7   : > { %826 = vpow2.f32 %v418_v58  ;;  %v420_v62 = vmul.f32 1.442695, %v405_v59  ;;  %423 = vadd.xlane.f32.xlu0 %v422_v60  ;;  %v428_v0 = vsel %vm276_vm0, %v817_v61, 0.0 }
 0x1a9   : > { %v819_v63 = vpop.eup %818  ;;  %828 = vpow2.f32 %v420_v62 }
 0x1aa   : > { %v425_v1 = vsel %vm276_vm0, %v819_v63, 0.0  ;;  %v821_v2 = vpop.eup %820 }
 0x1ab   : > { %429 = vadd.xlane.f32.xlu0 %v428_v0  ;;  %426 = vadd.xlane.f32.xlu1 %v425_v1  ;;  %v431_v5 = vsel %vm276_vm0, %v821_v2, 0.0 }
 0x1ad   : > { %v823_v3 = vpop.eup %822 }
 0x1ae   : > { %v434_v4 = vsel %vm276_vm0, %v823_v3, 0.0 }
 0x1af   : > { %v825_v6 = vpop.eup %824  ;;  %435 = vadd.xlane.f32.xlu0 %v434_v4  ;;  %432 = vadd.xlane.f32.xlu1 %v431_v5 }
 0x1b0   : > { %v437_v9 = vsel %vm276_vm0, %v825_v6, 0.0 }
 0x1b1   : > { %v827_v7 = vpop.eup %826 }
 0x1b2   : > { %v440_v8 = vsel %vm276_vm0, %v827_v7, 0.0 }
 0x1b3   : > { %v829_v10 = vpop.eup %828  ;;  %441 = vadd.xlane.f32.xlu0 %v440_v8  ;;  %438 = vadd.xlane.f32.xlu1 %v437_v9 }
 0x1b4   : > { %v443_v11 = vsel %vm276_vm0, %v829_v10, 0.0 }
 0x1b7   : > { %444 = vadd.xlane.f32.xlu1 %v443_v11 }
 0x234   : > { %v424_v16 = vpop.xlane.xlu0 %423 }
 0x235   : > { %830 = vrcp.f32 %v424_v16 }
 0x238   : > { %v430_v17 = vpop.xlane.xlu0 %429  ;;  %v427_v18 = vpop.xlane.xlu1 %426 }
 0x239   : > { %832 = vrcp.f32 %v427_v18 }
 0x23a   : > { %834 = vrcp.f32 %v430_v17 }
 0x23c   : > { %v436_v19 = vpop.xlane.xlu0 %435  ;;  %v433_v20 = vpop.xlane.xlu1 %432 }
 0x23d   : > { %836 = vrcp.f32 %v433_v20 }
 0x23e   : > { %838 = vrcp.f32 %v436_v19 }
 0x23f   : > { %v831_v23 = vpop.eup %830 }
 0x240   : > { %v442_v21 = vpop.xlane.xlu0 %441  ;;  %v439_v22 = vpop.xlane.xlu1 %438  ;;  %v454_v26 = vmul.f32 %v831_v23, %v815_v57 }
 0x241   : > { %840 = vrcp.f32 %v439_v22 }
 0x242   : > { %842 = vrcp.f32 %v442_v21 }
 0x243   : > { %v833_v24 = vpop.eup %832 }
 0x244   : > { %v445_v25 = vpop.xlane.xlu1 %444  ;;  %v455_v27 = vmul.f32 %v833_v24, %v819_v63  ;;  %v835_v28 = vpop.eup %834 }
 0x245   : > { %844 = vrcp.f32 %v445_v25  ;;  %v456_v31 = vmul.f32 %v835_v28, %v817_v61 }
 0x246   : > { %v462_v29 = vpack.c.bf16 %v455_v27, %v454_v26 }
 0x247   : > { %v837_v30 = vpop.eup %836 }
 0x248   : > { %782 = vmatprep.mubr.msk.bf16.mxu1 %vm276_vm0, %v462_v29  ;;  %v457_v32 = vmul.f32 %v837_v30, %v821_v2  ;;  %v839_v33 = vpop.eup %838 }
 0x249   : > { %v458_v37 = vmul.f32 %v839_v33, %v823_v3 }
 0x24a   : > { %v463_v34 = vpack.c.bf16 %v457_v32, %v456_v31 }
 0x24b   : > { %v841_v35 = vpop.eup %840 }
 0x24c   : > { %v843_v36 = vpop.eup %842  ;;  %783 = vmatmul.mubr.msk.bf16.vlgmr.msra.gmra.mrb[0].mxu1 %vm276_vm0, %v463_v34  ;;  %v459_v38 = vmul.f32 %v841_v35, %v825_v6 }
 0x24d   : > { %v460_v41 = vmul.f32 %v843_v36, %v827_v7 }
 0x24e   : > { %v464_v40 = vpack.c.bf16 %v459_v38, %v458_v37 }
 0x24f   : > { %v845_v39 = vpop.eup %844 }
 0x250   : > { %v461_v42 = vmul.f32 %v845_v39, %v829_v10  ;;  %786 = vmatprep.mubr.msk.bf16.mxu1 %vm276_vm0, %v464_v40 }
 0x252   : > { %v465_v43 = vpack.c.bf16 %v461_v42, %v460_v41 }
 0x254   : > { %787 = vmatmul.mubr.msk.bf16.gmra.mrb[4].mxu1 %vm276_vm0, %v465_v43 }
 0x31f   : > { %v784_v44 = vpop.f32.mrb[0].mxu1 }
 0x320   : > { %v736_v45 = vpack.c.bf16 %v784_v44, %v784_v44  ;;  %v536_v46 = vpop.f32.mrb[1].mxu1 }
 0x321   : > { %v734_v47 = vpack.c.bf16 %v536_v46, %v536_v46  ;;  %v785_v48 = vpop.f32.mrb[2].mxu1 }
 0x322   : > { %602 = vst.msk [vmem:[%s210_s26 + $0x8] sm:$0xf] %vm599_vm1, %v736_v45  ;;  %v737_v49 = vpack.c.bf16 %v785_v48, %v785_v48  ;;  %v539_v50 = vpop.f32.mrb[3].mxu1 }
 0x323   : > { %600 = vst.msk [vmem:[%s210_s26] sm:$0xf] %vm599_vm1, %v734_v47  ;;  %v735_v51 = vpack.c.bf16 %v539_v50, %v539_v50 }
 0x324   : > { %603 = vst.msk [vmem:[%s210_s26 + $0xc] sm:$0xf] %vm599_vm1, %v737_v49 }
 0x325   : > { %601 = vst.msk [vmem:[%s210_s26 + $0x4] sm:$0xf] %vm599_vm1, %v735_v51 }
 0x327   : > { %v788_v52 = vpop.f32.mrb[4].mxu1 }
 0x328   : > { %v740_v53 = vpack.c.bf16 %v788_v52, %v788_v52  ;;  %v552_v54 = vpop.f32.mrb[5].mxu1 }
 0x329   : > { %v738_v55 = vpack.c.bf16 %v552_v54, %v552_v54  ;;  %v789_v56 = vpop.f32.mrb[6].mxu1 }
 0x32a   : > { %606 = vst.msk [vmem:[%s210_s26 + $0x18] sm:$0xf] %vm599_vm1, %v740_v53  ;;  %v741_v57 = vpack.c.bf16 %v789_v56, %v789_v56  ;;  %v555_v58 = vpop.f32.mrb[7].mxu1 }
 0x32b   : > { %604 = vst.msk [vmem:[%s210_s26 + $0x10] sm:$0xf] %vm599_vm1, %v738_v55  ;;  %v739_v59 = vpack.c.bf16 %v555_v58, %v555_v58 }
 0x32c   : > { %607 = vst.msk [vmem:[%s210_s26 + $0x1c] sm:$0xf] %vm599_vm1, %v741_v57 }
 0x32d   : > { %605 = vst.msk [vmem:[%s210_s26 + $0x14] sm:$0xf] %vm599_vm1, %v739_v59 }
 0x32e PF: > { %s13_s12 = sadd.s32 1, %s852_s12  }
 0x32f   : > { %p10_p4 = scmp.ge.s32.totalorder %s13_s12, 4  }
 0x331   :  { %12 = sbr.rel (!%p10_p4) target bundleno = 1 (0x1), region = 68 }

// kernel: skvqgan_forward.59
= control target key start
LH: loop header
LB: loop body
LE: loop exit
PB: predicated region body
PF: predicated region fallthrough
CT: control target
= control target key end

     0   :  { %s1436_s0 = inlined_call_operand.vmem [shape: bf16[128,128], index: 0, kind: input, shape index: {}]   ;;  %s1437_s1 = inlined_call_operand.vmem [shape: f32[128,128], index: 1, kind: input, shape index: {}]   ;;  %s1438_s2 = inlined_call_operand.vmem [shape: f32[1,128], index: 2, kind: input, shape index: {}]   ;;  %s1439_s3 = inlined_call_operand.vmem [shape: bf16[128,128], index: 3, kind: output, shape index: {0}]   ;;  %s1440_s4 = inlined_call_operand.hbm [shape: f32[1,1], index: 4, kind: output, shape index: {1}]  }
   0x1   :  { %v56_v0 = vld [vmem:[%s1437_s1] sm:$0xff]  ;;  %v57_v1 = vld [vmem:[%s1437_s1 + $0x8] sm:$0xff]  ;;  %v58_v2 = vld [vmem:[%s1437_s1 + $0x10] sm:$0xff] }
   0x2   :  { %v121_v3 = vpack.c.bf16 %v57_v1, %v56_v0  ;;  %v59_v4 = vld [vmem:[%s1437_s1 + $0x18] sm:$0xff]  ;;  %v60_v6 = vld [vmem:[%s1437_s1 + $0x20] sm:$0xff]  ;;  %v61_v7 = vld [vmem:[%s1437_s1 + $0x28] sm:$0xff] }
   0x3   :  { %v122_v5 = vpack.c.bf16 %v59_v4, %v58_v2  ;;  %v24_v8 = vld [vmem:[%s1436_s0] sm:$0xff]   ;;  %v123_v9 = vpack.c.bf16 %v61_v7, %v60_v6  ;;  %v1185_v11 = vld [vmem:[%s1436_s0 + $0x8] sm:$0xff]  }
   0x4   :  { %966 = vmatprep.subr.bf16.mxu0 %v121_v3  ;;  %1055 = vmatprep.subr.bf16.mxu1 %v121_v3  ;;  %v1180_v10 = vunpack.c.h.bf16 %v24_v8  ;;  %v1187_v12 = vunpack.c.l.bf16 %v24_v8  ;;  %v1190_v13 = vunpack.c.l.bf16 %v1185_v11 }
   0x5   :  { %967 = vmatpush3.bf16.xpose.msra.mxu0 %v121_v3  ;;  %1057 = vmatpush3.bf16.msra.mxu1 %v121_v3 }
   0x6   :  { %968 = vmatprep.subr.bf16.mxu0 %v122_v5  ;;  %1059 = vmatprep.subr.bf16.mxu1 %v122_v5 }
   0x7   :  { %982 = vmatprep.mubr.bf16.mxu0 %v24_v8 }
   0x9   :  { %1061 = vmatpush3.bf16.msra.mxu1 %v122_v5 }
   0xa   :  { %10 = vsyncpa [#allocation3], 0  ;;  %v62_v14 = vld [vmem:[%s1437_s1 + $0x30] sm:$0xff]  ;;  %v63_v15 = vld [vmem:[%s1437_s1 + $0x38] sm:$0xff]  ;;  %v73_v16 = vmul.f32 %v1187_v12, %v1187_v12  ;;  %v1201_v17 = vunpack.c.h.bf16 %v1185_v11  ;;  %1063 = vmatprep.subr.bf16.mxu1 %v123_v9  ;;  %v75_v19 = vmul.f32 %v1190_v13, %v1190_v13  ;;  %v74_v20 = vmul.f32 %v1180_v10, %v1180_v10 }
   0xb   :  { %v1206_v18 = vld [vmem:[%s1436_s0 + $0x10] sm:$0xff]   ;;  %v124_v22 = vpack.c.bf16 %v63_v15, %v62_v14  ;;  %v64_v25 = vld [vmem:[%s1437_s1 + $0x40] sm:$0xff]  ;;  %v65_v26 = vld [vmem:[%s1437_s1 + $0x48] sm:$0xff]  ;;  %v328_v6 = vlaneseq }
   0xc   :  { %89 = vadd.xlane.f32.xlu0 %v73_v16  ;;  %v1213_v21 = vunpack.c.l.bf16 %v1206_v18  ;;  %93 = vadd.xlane.f32.xlu1 %v75_v19  ;;  %v76_v23 = vmul.f32 %v1201_v17, %v1201_v17  ;;  %v1218_v24 = vunpack.c.h.bf16 %v1206_v18  ;;  %v1229_v27 = vld [vmem:[%s1436_s0 + $0x18] sm:$0xff]   ;;  %v125_v30 = vpack.c.bf16 %v65_v26, %v64_v25  ;;  %v66_v33 = vld [vmem:[%s1437_s1 + $0x50] sm:$0xff]  ;;  %v32_v35 = vld [vmem:[%s1436_s0 + $0x20] sm:$0xff]  }
   0xd   :  { %969 = vmatpush3.bf16.xpose.msra.mxu0 %v122_v5  ;;  %1065 = vmatpush3.bf16.msra.mxu1 %v123_v9  ;;  %v1234_v29 = vunpack.c.l.bf16 %v1229_v27  ;;  %v1239_v32 = vunpack.c.h.bf16 %v1229_v27  ;;  %v67_v34 = vld [vmem:[%s1437_s1 + $0x58] sm:$0xff]  ;;  %v1252_v37 = vunpack.c.l.bf16 %v32_v35  ;;  %v1256_v40 = vunpack.c.h.bf16 %v32_v35  ;;  %v68_v41 = vld [vmem:[%s1437_s1 + $0x60] sm:$0xff]  ;;  %v69_v42 = vld [vmem:[%s1437_s1 + $0x68] sm:$0xff] }
   0xe   :  { %970 = vmatprep.subr.bf16.mxu0 %v123_v9  ;;  %1067 = vmatprep.subr.bf16.mxu1 %v124_v22  ;;  %v77_v28 = vmul.f32 %v1213_v21, %v1213_v21  ;;  %v78_v31 = vmul.f32 %v1218_v24, %v1218_v24  ;;  %v126_v38 = vpack.c.bf16 %v67_v34, %v66_v33  ;;  %v34_v43 = vld [vmem:[%s1436_s0 + $0x28] sm:$0xff]   ;;  %v70_v49 = vld [vmem:[%s1437_s1 + $0x70] sm:$0xff]  ;;  %v71_v50 = vld [vmem:[%s1437_s1 + $0x78] sm:$0xff]  ;;  %v1310_v14 = vand.u32 127, %v328_v6 }
   0xf   :  { %v79_v36 = vmul.f32 %v1234_v29, %v1234_v29  ;;  %v80_v39 = vmul.f32 %v1239_v32, %v1239_v32  ;;  %v81_v44 = vmul.f32 %v1252_v37, %v1252_v37  ;;  %v1269_v45 = vunpack.c.l.bf16 %v34_v43  ;;  %v36_v51 = vld [vmem:[%s1436_s0 + $0x30] sm:$0xff]   ;;  %v38_v57 = vld [vmem:[%s1436_s0 + $0x38] sm:$0xff]  }
  0x10   :  { %91 = vadd.xlane.f32.xlu0 %v74_v20  ;;  %95 = vadd.xlane.f32.xlu1 %v76_v23  ;;  %v127_v46 = vpack.c.bf16 %v69_v42, %v68_v41  ;;  %v82_v47 = vmul.f32 %v1256_v40, %v1256_v40  ;;  %v1273_v48 = vunpack.c.h.bf16 %v34_v43  ;;  %v1286_v53 = vunpack.c.l.bf16 %v36_v51  ;;  %v1315_v20 = vld [vmem:[%s1438_s2] ss:$0 sm:$0xff] }
  0x11   :  { %1069 = vmatpush3.bf16.msra.mxu1 %v124_v22  ;;  %v83_v52 = vmul.f32 %v1269_v45, %v1269_v45  ;;  %v128_v54 = vpack.c.bf16 %v71_v50, %v70_v49  ;;  %v1290_v56 = vunpack.c.h.bf16 %v36_v51  ;;  %v1297_v59 = vunpack.c.l.bf16 %v38_v57 }
  0x12   :  { %1071 = vmatprep.subr.bf16.mxu1 %v125_v30  ;;  %v84_v55 = vmul.f32 %v1273_v48, %v1273_v48  ;;  %v85_v58 = vmul.f32 %v1286_v53, %v1286_v53  ;;  %v1301_v61 = vunpack.c.h.bf16 %v38_v57  ;;  %vm330_vm0 = vcmp.lt.s32.totalorder %v1310_v14, 32 }
  0x13   :  { %v86_v60 = vmul.f32 %v1290_v56, %v1290_v56  ;;  %v87_v62 = vmul.f32 %v1297_v59, %v1297_v59 }
  0x14   :  { %97 = vadd.xlane.f32.xlu0 %v77_v28  ;;  %99 = vadd.xlane.f32.xlu1 %v78_v31  ;;  %v88_v63 = vmul.f32 %v1301_v61, %v1301_v61 }
  0x15   :  { %971 = vmatpush3.bf16.xpose.msra.mxu0 %v123_v9  ;;  %1073 = vmatpush3.bf16.msra.mxu1 %v125_v30 }
  0x16   :  { %972 = vmatprep.subr.bf16.mxu0 %v124_v22  ;;  %1075 = vmatprep.subr.bf16.mxu1 %v126_v38 }
  0x18   :  { %101 = vadd.xlane.f32.xlu0 %v79_v36  ;;  %103 = vadd.xlane.f32.xlu1 %v80_v39 }
  0x19   :  { %1077 = vmatpush3.bf16.msra.mxu1 %v126_v38 }
  0x1a   :  { %1079 = vmatprep.subr.bf16.mxu1 %v127_v46 }
  0x1c   :  { %105 = vadd.xlane.f32.xlu0 %v81_v44  ;;  %107 = vadd.xlane.f32.xlu1 %v82_v47 }
  0x1d   :  { %973 = vmatpush3.bf16.xpose.msra.mxu0 %v124_v22  ;;  %1081 = vmatpush3.bf16.msra.mxu1 %v127_v46 }
  0x1e   :  { %974 = vmatprep.subr.bf16.mxu0 %v125_v30  ;;  %1083 = vmatprep.subr.bf16.mxu1 %v128_v54 }
  0x20   :  { %109 = vadd.xlane.f32.xlu0 %v83_v52  ;;  %111 = vadd.xlane.f32.xlu1 %v84_v55 }
  0x21   :  { %1085 = vmatpush3.bf16.msra.mxu1 %v128_v54 }
  0x24   :  { %113 = vadd.xlane.f32.xlu0 %v85_v58  ;;  %115 = vadd.xlane.f32.xlu1 %v86_v60 }
  0x25   :  { %975 = vmatpush3.bf16.xpose.msra.mxu0 %v125_v30 }
  0x26   :  { %976 = vmatprep.subr.bf16.mxu0 %v126_v38 }
  0x28   :  { %117 = vadd.xlane.f32.xlu0 %v87_v62  ;;  %119 = vadd.xlane.f32.xlu1 %v88_v63 }
  0x2d   :  { %977 = vmatpush3.bf16.xpose.msra.mxu0 %v126_v38 }
  0x2e   :  { %978 = vmatprep.subr.bf16.mxu0 %v127_v46 }
  0x35   :  { %979 = vmatpush3.bf16.xpose.msra.mxu0 %v127_v46 }
  0x36   :  { %980 = vmatprep.subr.bf16.mxu0 %v128_v54 }
  0x3d   :  { %981 = vmatpush3.bf16.xpose.msra.mxu0 %v128_v54 }
  0x44   :  { %983 = vmatmul.mubr.bf16.vlgmr.msra.gmra.mrb[0].mxu0 %v1185_v11 }
  0x45   :  { %986 = vmatprep.mubr.bf16.mxu0 %v1206_v18 }
  0x4c   :  { %987 = vmatmul.mubr.bf16.gmra.mrb[4].mxu0 %v1229_v27 }
  0x4d   :  { %990 = vmatprep.mubr.bf16.mxu0 %v32_v35 }
  0x54   :  { %991 = vmatmul.mubr.bf16.gmra.mrb[8].mxu0 %v34_v43 }
  0x55   :  { %994 = vmatprep.mubr.bf16.mxu0 %v36_v51 }
  0x5c   :  { %995 = vmatmul.mubr.bf16.gmra.mrb[12].mxu0 %v38_v57 }
  0x99   :  { %v90_v0 = vpop.xlane.xlu0 %89  ;;  %v94_v1 = vpop.xlane.xlu1 %93 }
  0x9d   :  { %v92_v2 = vpop.xlane.xlu0 %91  ;;  %v96_v3 = vpop.xlane.xlu1 %95 }
  0xa1   :  { %v98_v4 = vpop.xlane.xlu0 %97  ;;  %v100_v5 = vpop.xlane.xlu1 %99 }
  0xa5   :  { %v102_v11 = vpop.xlane.xlu0 %101  ;;  %v104_v22 = vpop.xlane.xlu1 %103 }
  0xa9   :  { %v106_v31 = vpop.xlane.xlu0 %105  ;;  %v108_v41 = vpop.xlane.xlu1 %107 }
  0xad   :  { %v110_v55 = vpop.xlane.xlu0 %109  ;;  %v112_v63 = vpop.xlane.xlu1 %111 }
 0x117   :  { %v984_v7 = vpop.f32.mrb[0].mxu0 }
 0x118   :  { %v276_v8 = vmul.f32 2.0, %v984_v7  ;;  %v211_v9 = vpop.f32.mrb[1].mxu0 }
 0x119   :  { %v274_v15 = vmul.f32 2.0, %v211_v9  ;;  %v985_v16 = vpop.f32.mrb[2].mxu0 }
 0x11a   :  { %v277_v18 = vmul.f32 2.0, %v985_v16  ;;  %v214_v19 = vpop.f32.mrb[3].mxu0  ;;  %v292_v23 = vsub.f32 %v94_v1, %v276_v8  ;;  %v114_v16 = vpop.xlane.xlu0 %113 }
 0x11b   :  { %v290_v25 = vsub.f32 %v90_v0, %v274_v15  ;;  %v275_v26 = vmul.f32 2.0, %v214_v19 }
 0x11c   :  { %v293_v28 = vsub.f32 %v96_v3, %v277_v18  ;;  %v314_v36 = vadd.f32 %v1315_v20, %v292_v23 }
 0x11d   :  { %v291_v27 = vsub.f32 %v92_v2, %v275_v26  ;;  %v312_v30 = vadd.f32 %v1315_v20, %v290_v25  ;;  %v116_v25 = vpop.xlane.xlu1 %115 }
 0x11e   :  { %v315_v46 = vadd.f32 %v1315_v20, %v293_v28  ;;  %v333_v54 = vsel %vm330_vm0, %v314_v36, inf }
 0x11f   :  { %v988_v33 = vpop.f32.mrb[4].mxu0  ;;  %v331_v34 = vsel %vm330_vm0, %v312_v30, inf  ;;  %v313_v35 = vadd.f32 %v1315_v20, %v291_v27 }
 0x120   :  { %v280_v38 = vmul.f32 2.0, %v988_v33  ;;  %v227_v39 = vpop.f32.mrb[5].mxu0  ;;  %347 = vmin.index.xlane.f32.xlu0 %v331_v34  ;;  %v334_v60 = vsel %vm330_vm0, %v315_v46, inf }
 0x121   :  { %v278_v42 = vmul.f32 2.0, %v227_v39  ;;  %v989_v43 = vpop.f32.mrb[6].mxu0  ;;  %v332_v44 = vsel %vm330_vm0, %v313_v35, inf  ;;  %v118_v39 = vpop.xlane.xlu0 %117 }
 0x122   :  { %v281_v47 = vmul.f32 2.0, %v989_v43  ;;  %v230_v49 = vpop.f32.mrb[7].mxu0  ;;  %349 = vmin.index.xlane.f32.xlu1 %v332_v44  ;;  %v296_v51 = vsub.f32 %v102_v11, %v280_v38 }
 0x123   :  { %v294_v50 = vsub.f32 %v98_v4, %v278_v42  ;;  %v279_v52 = vmul.f32 2.0, %v230_v49  ;;  %v120_v49 = vpop.xlane.xlu1 %119 }
 0x124   :  { %351 = vmin.index.xlane.f32.xlu0 %v333_v54  ;;  %v297_v58 = vsub.f32 %v104_v22, %v281_v47  ;;  %v318_v3 = vadd.f32 %v1315_v20, %v296_v51 }
 0x125   :  { %v295_v57 = vsub.f32 %v100_v5, %v279_v52  ;;  %v316_v62 = vadd.f32 %v1315_v20, %v294_v50 }
 0x126   :  { %353 = vmin.index.xlane.f32.xlu1 %v334_v60  ;;  %v319_v9 = vadd.f32 %v1315_v20, %v297_v58  ;;  %v337_v23 = vsel %vm330_vm0, %v318_v3, inf }
 0x127   :  { %v992_v0 = vpop.f32.mrb[8].mxu0  ;;  %v335_v1 = vsel %vm330_vm0, %v316_v62, inf  ;;  %v317_v2 = vadd.f32 %v1315_v20, %v295_v57 }
 0x128   :  { %v284_v4 = vmul.f32 2.0, %v992_v0  ;;  %v243_v6 = vpop.f32.mrb[9].mxu0  ;;  %355 = vmin.index.xlane.f32.xlu0 %v335_v1  ;;  %v338_v28 = vsel %vm330_vm0, %v319_v9, inf }
 0x129   :  { %v282_v5 = vmul.f32 2.0, %v243_v6  ;;  %v993_v7 = vpop.f32.mrb[10].mxu0  ;;  %v336_v8 = vsel %vm330_vm0, %v317_v2, inf }
 0x12a   :  { %v285_v11 = vmul.f32 2.0, %v993_v7  ;;  %v246_v15 = vpop.f32.mrb[11].mxu0  ;;  %357 = vmin.index.xlane.f32.xlu1 %v336_v8  ;;  %v300_v19 = vsub.f32 %v110_v55, %v284_v4  ;;  %v1131_v7 = vmov 1.0  }
 0x12b   :  { %v298_v18 = vsub.f32 %v106_v31, %v282_v5  ;;  %v283_v22 = vmul.f32 2.0, %v246_v15 }
 0x12c   :  { %359 = vmin.index.xlane.f32.xlu0 %v337_v23  ;;  %v301_v27 = vsub.f32 %v112_v63, %v285_v11  ;;  %v322_v35 = vadd.f32 %v1315_v20, %v300_v19 }
 0x12d   :  { %v299_v26 = vsub.f32 %v108_v41, %v283_v22  ;;  %v320_v30 = vadd.f32 %v1315_v20, %v298_v18 }
 0x12e   :  { %361 = vmin.index.xlane.f32.xlu1 %v338_v28  ;;  %v323_v44 = vadd.f32 %v1315_v20, %v301_v27  ;;  %v341_v54 = vsel %vm330_vm0, %v322_v35, inf }
 0x12f   :  { %v996_v33 = vpop.f32.mrb[12].mxu0  ;;  %v339_v34 = vsel %vm330_vm0, %v320_v30, inf  ;;  %v321_v31 = vadd.f32 %v1315_v20, %v299_v26 }
 0x130   :  { %v288_v36 = vmul.f32 2.0, %v996_v33  ;;  %v259_v38 = vpop.f32.mrb[13].mxu0  ;;  %363 = vmin.index.xlane.f32.xlu0 %v339_v34  ;;  %v342_v58 = vsel %vm330_vm0, %v323_v44, inf }
 0x131   :  { %v286_v41 = vmul.f32 2.0, %v259_v38  ;;  %v997_v42 = vpop.f32.mrb[14].mxu0  ;;  %v340_v43 = vsel %vm330_vm0, %v321_v31, inf }
 0x132   :  { %v289_v46 = vmul.f32 2.0, %v997_v42  ;;  %v262_v47 = vpop.f32.mrb[15].mxu0  ;;  %365 = vmin.index.xlane.f32.xlu1 %v340_v43  ;;  %v304_v51 = vsub.f32 %v118_v39, %v288_v36 }
 0x133   :  { %v302_v50 = vsub.f32 %v114_v16, %v286_v41  ;;  %v287_v52 = vmul.f32 2.0, %v262_v47 }
 0x134   :  { %367 = vmin.index.xlane.f32.xlu0 %v341_v54  ;;  %v305_v57 = vsub.f32 %v120_v49, %v289_v46  ;;  %v326_v0 = vadd.f32 %v1315_v20, %v304_v51 }
 0x135   :  { %v303_v55 = vsub.f32 %v116_v25, %v287_v52  ;;  %v324_v60 = vadd.f32 %v1315_v20, %v302_v50 }
 0x136   :  { %369 = vmin.index.xlane.f32.xlu1 %v342_v58  ;;  %v327_v2 = vadd.f32 %v1315_v20, %v305_v57  ;;  %v345_v3 = vsel %vm330_vm0, %v326_v0, inf }
 0x137   :  { %v343_v62 = vsel %vm330_vm0, %v324_v60, inf  ;;  %v325_v63 = vadd.f32 %v1315_v20, %v303_v55 }
 0x138   :  { %371 = vmin.index.xlane.f32.xlu0 %v343_v62  ;;  %v346_v4 = vsel %vm330_vm0, %v327_v2, inf }
 0x139   :  { %v344_v1 = vsel %vm330_vm0, %v325_v63, inf }
 0x13a   :  { %373 = vmin.index.xlane.f32.xlu1 %v344_v1 }
 0x13c   :  { %375 = vmin.index.xlane.f32.xlu0 %v345_v3 }
 0x13e   :  { %377 = vmin.index.xlane.f32.xlu1 %v346_v4 }
 0x1ad   :  { %v348_v6 = vpop.xlane.xlu0 %347 }
 0x1ae   :  { %vm379_vm1 = vcmp.eq.s32.totalorder %v1310_v14, %v348_v6 }
 0x1af   :  { %v350_v5 = vpop.xlane.xlu1 %349  ;;  %1030 = vmatprep.mubr.msk.f32.mxu1 %vm379_vm1, %v1131_v7  ;;  %vm22_vm1 = vcmask 0  }
 0x1b0   :  { %vm380_vm2 = vcmp.eq.s32.totalorder %v1310_v14, %v350_v5 }
 0x1b1   :  { %1031 = vmatmul.mubr.msk.f32.vlgmr.msra.gmra.mrb[0].mxu1 %vm380_vm2, %v1131_v7  ;;  %v352_v8 = vpop.xlane.xlu0 %351 }
 0x1b2   :  { %vm381_vm3 = vcmp.eq.s32.totalorder %v1310_v14, %v352_v8 }
 0x1b3   :  { %v354_v20 = vpop.xlane.xlu1 %353  ;;  %1033 = vmatprep.mubr.msk.f32.mxu1 %vm381_vm3, %v1131_v7 }
 0x1b4   :  { %vm382_vm4 = vcmp.eq.s32.totalorder %v1310_v14, %v354_v20 }
 0x1b5   :  { %1034 = vmatmul.mubr.msk.f32.gmra.mrb[2].mxu1 %vm382_vm4, %v1131_v7  ;;  %v356_v9 = vpop.xlane.xlu0 %355 }
 0x1b6   :  { %vm383_vm5 = vcmp.eq.s32.totalorder %v1310_v14, %v356_v9 }
 0x1b7   :  { %v358_v11 = vpop.xlane.xlu1 %357  ;;  %1036 = vmatprep.mubr.msk.f32.mxu1 %vm383_vm5, %v1131_v7 }
 0x1b8   :  { %vm384_vm6 = vcmp.eq.s32.totalorder %v1310_v14, %v358_v11 }
 0x1b9   :  { %1037 = vmatmul.mubr.msk.f32.gmra.mrb[4].mxu1 %vm384_vm6, %v1131_v7  ;;  %v360_v15 = vpop.xlane.xlu0 %359 }
 0x1ba   :  { %vm385_vm7 = vcmp.eq.s32.totalorder %v1310_v14, %v360_v15 }
 0x1bb   :  { %v362_v16 = vpop.xlane.xlu1 %361  ;;  %1039 = vmatprep.mubr.msk.f32.mxu1 %vm385_vm7, %v1131_v7 }
 0x1bc   :  { %vm386_vm8 = vcmp.eq.s32.totalorder %v1310_v14, %v362_v16 }
 0x1bd   :  { %1040 = vmatmul.mubr.msk.f32.gmra.mrb[6].mxu1 %vm386_vm8, %v1131_v7  ;;  %v364_v18 = vpop.xlane.xlu0 %363 }
 0x1be   :  { %vm387_vm9 = vcmp.eq.s32.totalorder %v1310_v14, %v364_v18 }
 0x1bf   :  { %v366_v19 = vpop.xlane.xlu1 %365  ;;  %1042 = vmatprep.mubr.msk.f32.mxu1 %vm387_vm9, %v1131_v7 }
 0x1c0   :  { %vm388_vm10 = vcmp.eq.s32.totalorder %v1310_v14, %v366_v19 }
 0x1c1   :  { %1043 = vmatmul.mubr.msk.f32.gmra.mrb[8].mxu1 %vm388_vm10, %v1131_v7  ;;  %v368_v22 = vpop.xlane.xlu0 %367 }
 0x1c2   :  { %vm389_vm11 = vcmp.eq.s32.totalorder %v1310_v14, %v368_v22 }
 0x1c3   :  { %v370_v23 = vpop.xlane.xlu1 %369  ;;  %1045 = vmatprep.mubr.msk.f32.mxu1 %vm389_vm11, %v1131_v7 }
 0x1c4   :  { %vm390_vm12 = vcmp.eq.s32.totalorder %v1310_v14, %v370_v23 }
 0x1c5   :  { %1046 = vmatmul.mubr.msk.f32.gmra.mrb[10].mxu1 %vm390_vm12, %v1131_v7  ;;  %v372_v25 = vpop.xlane.xlu0 %371 }
 0x1c6   :  { %vm391_vm13 = vcmp.eq.s32.totalorder %v1310_v14, %v372_v25 }
 0x1c7   :  { %v374_v26 = vpop.xlane.xlu1 %373  ;;  %1048 = vmatprep.mubr.msk.f32.mxu1 %vm391_vm13, %v1131_v7 }
 0x1c8   :  { %vm392_vm14 = vcmp.eq.s32.totalorder %v1310_v14, %v374_v26 }
 0x1c9   :  { %1049 = vmatmul.mubr.msk.f32.gmra.mrb[12].mxu1 %vm392_vm14, %v1131_v7  ;;  %v376_v27 = vpop.xlane.xlu0 %375 }
 0x1ca   :  { %vm393_vm15 = vcmp.eq.s32.totalorder %v1310_v14, %v376_v27 }
 0x1cb   :  { %v378_v28 = vpop.xlane.xlu1 %377  ;;  %1051 = vmatprep.mubr.msk.f32.mxu1 %vm393_vm15, %v1131_v7 }
 0x1cc   :  { %vm394_vm0 = vcmp.eq.s32.totalorder %v1310_v14, %v378_v28 }
 0x1cd   :  { %1052 = vmatmul.mubr.msk.f32.gmra.mrb[14].mxu1 %vm394_vm0, %v1131_v7 }
 0x284   :  { %v1032_v30 = vpop.f32.mrb[0].mxu1 }
 0x285   :  { %v653_v33 = vsub.f32 %v1032_v30, %v1180_v10  ;;  %v493_v34 = vpop.f32.mrb[1].mxu1 }
 0x286   :  { %v874_v31 = vpack.c.bf16 %v1032_v30, %v493_v34  ;;  %v652_v35 = vsub.f32 %v493_v34, %v1187_v12 }
 0x287   :  { %v720_v36 = vmul.f32 %v653_v33, %v653_v33 }
 0x288   :  { %875 = vst [vmem:[%s1439_s3] sm:$0xff] %v874_v31   ;;  %v719_v38 = vmul.f32 %v652_v35, %v652_v35  ;;  %v1035_v39 = vpop.f32.mrb[2].mxu1 }
 0x289   :  { %v503_v41 = vpop.f32.mrb[3].mxu1  ;;  %v655_v43 = vsub.f32 %v1035_v39, %v1201_v17 }
 0x28a   :  { %v752_v42 = vadd.f32 %v720_v36, %v719_v38  ;;  %v879_v14 = vpack.c.bf16 %v1035_v39, %v503_v41  ;;  %v654_v44 = vsub.f32 %v503_v41, %v1190_v13 }
 0x28b   :  { %v722_v49 = vmul.f32 %v655_v43, %v655_v43 }
 0x28c   :  { %911 = vst [vmem:[%s1439_s3 + $0x8] sm:$0xff] %v879_v14   ;;  %v721_v10 = vmul.f32 %v654_v44, %v654_v44  ;;  %v1038_v12 = vpop.f32.mrb[4].mxu1 }
 0x28d   :  { %v657_v46 = vsub.f32 %v1038_v12, %v1218_v24  ;;  %v513_v47 = vpop.f32.mrb[5].mxu1 }
 0x28e   :  { %v753_v50 = vadd.f32 %v752_v42, %v721_v10  ;;  %v884_v51 = vpack.c.bf16 %v1038_v12, %v513_v47  ;;  %v656_v52 = vsub.f32 %v513_v47, %v1213_v21  ;;  %v1132_v42 = vmov 0.0  }
 0x28f   :  { %v724_v55 = vmul.f32 %v657_v46, %v657_v46  ;;  %23 = vst.msk [vmem:[#allocation2] sm:$0x1] %vm22_vm1, %v1132_v42 }
 0x290   :  { %912 = vst [vmem:[%s1439_s3 + $0x10] sm:$0xff] %v884_v51   ;;  %v723_v17 = vmul.f32 %v656_v52, %v656_v52  ;;  %v754_v13 = vadd.f32 %v753_v50, %v722_v49  ;;  %v1041_v54 = vpop.f32.mrb[6].mxu1 }
 0x291   :  { %v523_v57 = vpop.f32.mrb[7].mxu1  ;;  %v659_v60 = vsub.f32 %v1041_v54, %v1239_v32 }
 0x292   :  { %v755_v58 = vadd.f32 %v754_v13, %v723_v17  ;;  %v889_v62 = vpack.c.bf16 %v1041_v54, %v523_v57  ;;  %v658_v24 = vsub.f32 %v523_v57, %v1234_v29 }
 0x293   :  { %v726_v3 = vmul.f32 %v659_v60, %v659_v60 }
 0x294   :  { %913 = vst [vmem:[%s1439_s3 + $0x18] sm:$0xff] %v889_v62   ;;  %v725_v21 = vmul.f32 %v658_v24, %v658_v24  ;;  %v756_v63 = vadd.f32 %v755_v58, %v724_v55  ;;  %v1044_v0 = vpop.f32.mrb[8].mxu1 }
 0x295   :  { %v661_v1 = vsub.f32 %v1044_v0, %v1256_v40  ;;  %v533_v2 = vpop.f32.mrb[9].mxu1 }
 0x296   :  { %v757_v4 = vadd.f32 %v756_v63, %v725_v21  ;;  %v894_v6 = vpack.c.bf16 %v1044_v0, %v533_v2  ;;  %v660_v5 = vsub.f32 %v533_v2, %v1252_v37  ;;  %v751_v46 = vld [vmem:[#allocation2] sm:$0x1] }
 0x297   :  { %v728_v8 = vmul.f32 %v661_v1, %v661_v1 }
 0x298   :  { %914 = vst [vmem:[%s1439_s3 + $0x20] sm:$0xff] %v894_v6   ;;  %v727_v29 = vmul.f32 %v660_v5, %v660_v5  ;;  %v758_v32 = vadd.f32 %v757_v4, %v726_v3  ;;  %v1047_v7 = vpop.f32.mrb[10].mxu1 }
 0x299   :  { %v543_v20 = vpop.f32.mrb[11].mxu1  ;;  %v663_v11 = vsub.f32 %v1047_v7, %v1273_v48 }
 0x29a   :  { %v759_v9 = vadd.f32 %v758_v32, %v727_v29  ;;  %v899_v15 = vpack.c.bf16 %v1047_v7, %v543_v20  ;;  %v662_v40 = vsub.f32 %v543_v20, %v1269_v45 }
 0x29b   :  { %v730_v23 = vmul.f32 %v663_v11, %v663_v11 }
 0x29c   :  { %915 = vst [vmem:[%s1439_s3 + $0x28] sm:$0xff] %v899_v15   ;;  %v729_v37 = vmul.f32 %v662_v40, %v662_v40  ;;  %v760_v16 = vadd.f32 %v759_v9, %v728_v8  ;;  %v1050_v18 = vpop.f32.mrb[12].mxu1 }
 0x29d   :  { %v665_v19 = vsub.f32 %v1050_v18, %v1290_v56  ;;  %v553_v22 = vpop.f32.mrb[13].mxu1 }
 0x29e   :  { %v761_v25 = vadd.f32 %v760_v16, %v729_v37  ;;  %v904_v26 = vpack.c.bf16 %v1050_v18, %v553_v22  ;;  %v664_v27 = vsub.f32 %v553_v22, %v1286_v53 }
 0x29f   :  { %v732_v30 = vmul.f32 %v665_v19, %v665_v19 }
 0x2a0   :  { %916 = vst [vmem:[%s1439_s3 + $0x30] sm:$0xff] %v904_v26   ;;  %v731_v45 = vmul.f32 %v664_v27, %v664_v27  ;;  %v762_v48 = vadd.f32 %v761_v25, %v730_v23  ;;  %v1053_v28 = vpop.f32.mrb[14].mxu1 }
 0x2a1   :  { %v563_v33 = vpop.f32.mrb[15].mxu1  ;;  %v667_v31 = vsub.f32 %v1053_v28, %v1301_v61 }
 0x2a2   :  { %v763_v34 = vadd.f32 %v762_v48, %v731_v45  ;;  %v909_v35 = vpack.c.bf16 %v1053_v28, %v563_v33  ;;  %v666_v56 = vsub.f32 %v563_v33, %v1297_v59 }
 0x2a3   :  { %v734_v38 = vmul.f32 %v667_v31, %v667_v31 }
 0x2a4   :  { %917 = vst [vmem:[%s1439_s3 + $0x38] sm:$0xff] %v909_v35   ;;  %v733_v53 = vmul.f32 %v666_v56, %v666_v56  ;;  %v764_v36 = vadd.f32 %v763_v34, %v732_v30  ;;  %s1133_s3 = smov [#allocation2]  }
 0x2a5   :  { %s788_s26 = sshll.u32 %s1133_s3, 4  ;;  %s789_s26 = int_to_ptr.vmem [resolvable:$true] %s788_s26 }
 0x2a6   :  { %v765_v39 = vadd.f32 %v764_v36, %v733_v53  ;;  %s1107_s28 = scalar_lea.vmem %s789_s26, 16  ;;  %s1111_s29 = scalar_lea.vmem %s789_s26, 32 }
 0x2a7   :  { %p1108_p0 = scmp.ne.s32.totalorder %s789_s26, %s1107_s28  ;;  %p1112_p1 = scmp.lt.s32.totalorder %s789_s26, %s789_s26 }
 0x2a8   :  { %v766_v41 = vadd.f32 %v765_v39, %v734_v38  ;;  %p1113_p2 = scmp.lt.s32.totalorder %s1111_s29, %s1107_s28 }
 0x2aa   :  { %767 = vadd.xlane.f32.xlu0 %v766_v41  ;;  %p1114_p3 = por %p1113_p2, %p1112_p1 }
 0x2ac   :  { %p1115_p4 = pnand %p1114_p3, %p1108_p0 }
 0x337   :  { %v768_v43 = vpop.xlane.xlu0 %767 }
 0x338   :  { %v769_v14 = vrot.slane %v768_v43, 4 }
 0x33a   :  { %v770_v61 = vadd.f32 %v769_v14, %v768_v43 }
 0x33c   :  { %v771_v44 = vrot.slane %v770_v61, 2 }
 0x33e   :  { %v772_v10 = vadd.f32 %v771_v44, %v770_v61 }
 0x340   :  { %v773_v59 = vrot.slane %v772_v10, 1 }
 0x342   :  { %v774_v12 = vadd.f32 %v773_v59, %v772_v10 }
 0x344   :  { %1086 = vpush %v774_v12 }
 0x375   :  { %s1087_s27 = spop %1086 }
 0x376   :  { %v776_v47 = vstv %s1087_s27 }
 0x377   :  { %v777_v49 = vadd.f32 %v776_v47, %v751_v46 }
 0x379   :  { %779 = vst.msk [vmem:[#allocation2] sm:$0x1] %vm22_vm1, %v777_v49 }
 0x37a   :  { %1118 = shalt.err (!%p1115_p4)
}
 0x37b   :  { %s1119_s6 = scalar_lea.hbm %s1440_s4, 16 }
 0x37c   :  { %p1120_p5 = scmp.ne.s32.totalorder %s1440_s4, %s1119_s6  ;;  %p1123_p6 = scmp.lt.u32.totalorder %s1119_s6, %s1440_s4 }
 0x37e   :  { %p1125_p7 = pnand %p1123_p6, %p1120_p5 }
 0x380   :  { %1128 = shalt.err (!%p1125_p7)
}
 0x381   :  { %791 = dma.vmem_to_hbm [thread:$0]  %s789_s26, 16, %s1440_s4, [#allocation3]  }
 0x382   :  { %1129 = dma.done.wait [#allocation3], 16  }
 0x383   :  { %1130 = vsyncadd [#allocation3], 4294967280 }
 0x384   :  { %797 = vsyncpa [#allocation3], 1 }

// kernel: skvqgan_forward.61
= control target key start
LH: loop header
LB: loop body
LE: loop exit
PB: predicated region body
PF: predicated region fallthrough
CT: control target
= control target key end

     0   :  { %s820_s1 = inlined_call_operand.vmem [shape: bf16[256,128], index: 1, kind: input, shape index: {}]   ;;  %s821_s0 = inlined_call_operand.vmem [shape: bf16[128,256], index: 0, kind: input, shape index: {}]   ;;  %s822_s2 = inlined_call_operand.vmem [shape: f32[1,128], index: 2, kind: input, shape index: {}]   ;;  %s823_s3 = inlined_call_operand.vmem [shape: bf16[128,128], index: 3, kind: output, shape index: {}]  }
   0x1   :  { %v619_v0 = vld [vmem:[%s820_s1 + $0x40] sm:$0xff]   ;;  %v621_v2 = vld [vmem:[%s820_s1 + $0x48] sm:$0xff]   ;;  %v623_v4 = vld [vmem:[%s820_s1 + $0x50] sm:$0xff]  }
   0x2   :  { %v620_v1 = vld [vmem:[%s820_s1] sm:$0xff]   ;;  %539 = vmatprep.subr.bf16.mxu0 %v619_v0  ;;  %603 = vmatprep.subr.bf16.mxu1 %v619_v0  ;;  %v622_v3 = vld [vmem:[%s820_s1 + $0x8] sm:$0xff]   ;;  %v624_v5 = vld [vmem:[%s820_s1 + $0x10] sm:$0xff]  }
   0x3   :  { %540 = vmatpush3.bf16.msra.mxu0 %v620_v1  ;;  %611 = vmatpush3.bf16.msra.mxu1 %v620_v1  ;;  %v625_v6 = vld [vmem:[%s820_s1 + $0x58] sm:$0xff]   ;;  %v627_v8 = vld [vmem:[%s820_s1 + $0x60] sm:$0xff]   ;;  %v629_v10 = vld [vmem:[%s820_s1 + $0x68] sm:$0xff]  }
   0x4   :  { %541 = vmatprep.subr.bf16.mxu0 %v621_v2  ;;  %604 = vmatprep.subr.bf16.mxu1 %v621_v2  ;;  %v626_v7 = vld [vmem:[%s820_s1 + $0x18] sm:$0xff]   ;;  %v628_v9 = vld [vmem:[%s820_s1 + $0x20] sm:$0xff]   ;;  %v630_v13 = vld [vmem:[%s820_s1 + $0x28] sm:$0xff]  }
   0x5   :  { %v637_v11 = vld [vmem:[%s821_s0 + $0x4] ss:$8 sps:$4 sm:$0xff]   ;;  %v631_v14 = vld [vmem:[%s820_s1 + $0x70] sm:$0xff]   ;;  %v633_v16 = vld [vmem:[%s820_s1 + $0x78] sm:$0xff]  }
   0x6   :  { %v640_v12 = vld [vmem:[%s821_s0 + $0x44] ss:$8 sps:$4 sm:$0xff]   ;;  %278 = vmatprep.mubr.bf16.mxu0 %v637_v11  ;;  %v632_v15 = vld [vmem:[%s820_s1 + $0x30] sm:$0xff]   ;;  %v634_v17 = vld [vmem:[%s820_s1 + $0x38] sm:$0xff]  }
   0x7   :  { %542 = vmatpush3.bf16.msra.mxu0 %v622_v3  ;;  %612 = vmatpush3.bf16.msra.mxu1 %v622_v3  ;;  %v635_v18 = vld [vmem:[%s821_s0] ss:$8 sps:$4 sm:$0xff]   ;;  %v641_v20 = vld [vmem:[%s821_s0 + $0x14] ss:$8 sps:$4 sm:$0xff]   ;;  %v645_v22 = vld [vmem:[%s821_s0 + $0x10] ss:$8 sps:$4 sm:$0xff]  }
   0x8   :  { %543 = vmatprep.subr.bf16.mxu0 %v623_v4  ;;  %605 = vmatprep.subr.bf16.mxu1 %v623_v4  ;;  %v638_v19 = vld [vmem:[%s821_s0 + $0x40] ss:$8 sps:$4 sm:$0xff]   ;;  %v643_v21 = vld [vmem:[%s821_s0 + $0x54] ss:$8 sps:$4 sm:$0xff]   ;;  %v646_v23 = vld [vmem:[%s821_s0 + $0x50] ss:$8 sps:$4 sm:$0xff]  }
   0x9   :  { %310 = vmatprep.mubr.bf16.mxu1 %v640_v12  ;;  %v647_v24 = vld [vmem:[%s821_s0 + $0x24] ss:$8 sps:$4 sm:$0xff]   ;;  %v651_v26 = vld [vmem:[%s821_s0 + $0x20] ss:$8 sps:$4 sm:$0xff]   ;;  %v653_v28 = vld [vmem:[%s821_s0 + $0x34] ss:$8 sps:$4 sm:$0xff]  }
   0xa   :  { %v649_v25 = vld [vmem:[%s821_s0 + $0x64] ss:$8 sps:$4 sm:$0xff]   ;;  %v652_v27 = vld [vmem:[%s821_s0 + $0x60] ss:$8 sps:$4 sm:$0xff]   ;;  %v655_v29 = vld [vmem:[%s821_s0 + $0x74] ss:$8 sps:$4 sm:$0xff]  }
   0xb   :  { %544 = vmatpush3.bf16.msra.mxu0 %v624_v5  ;;  %613 = vmatpush3.bf16.msra.mxu1 %v624_v5  ;;  %v657_v30 = vld [vmem:[%s821_s0 + $0x30] ss:$8 sps:$4 sm:$0xff]   ;;  %v778_v40 = vld [vmem:[%s822_s2] ss:$0 sm:$0xff] }
   0xc   :  { %545 = vmatprep.subr.bf16.mxu0 %v625_v6  ;;  %606 = vmatprep.subr.bf16.mxu1 %v625_v6  ;;  %v658_v31 = vld [vmem:[%s821_s0 + $0x70] ss:$8 sps:$4 sm:$0xff]  }
   0xf   :  { %546 = vmatpush3.bf16.msra.mxu0 %v626_v7  ;;  %614 = vmatpush3.bf16.msra.mxu1 %v626_v7 }
  0x10   :  { %547 = vmatprep.subr.bf16.mxu0 %v627_v8  ;;  %607 = vmatprep.subr.bf16.mxu1 %v627_v8 }
  0x13   :  { %548 = vmatpush3.bf16.msra.mxu0 %v628_v9  ;;  %615 = vmatpush3.bf16.msra.mxu1 %v628_v9 }
  0x14   :  { %549 = vmatprep.subr.bf16.mxu0 %v629_v10  ;;  %608 = vmatprep.subr.bf16.mxu1 %v629_v10 }
  0x17   :  { %550 = vmatpush3.bf16.msra.mxu0 %v630_v13  ;;  %616 = vmatpush3.bf16.msra.mxu1 %v630_v13 }
  0x18   :  { %551 = vmatprep.subr.bf16.mxu0 %v631_v14  ;;  %609 = vmatprep.subr.bf16.mxu1 %v631_v14 }
  0x1b   :  { %552 = vmatpush3.bf16.msra.mxu0 %v632_v15  ;;  %617 = vmatpush3.bf16.msra.mxu1 %v632_v15 }
  0x1c   :  { %553 = vmatprep.subr.bf16.mxu0 %v633_v16  ;;  %610 = vmatprep.subr.bf16.mxu1 %v633_v16 }
  0x1f   :  { %554 = vmatpush3.bf16.msra.mxu0 %v634_v17  ;;  %618 = vmatpush3.bf16.msra.mxu1 %v634_v17 }
  0x22   :  { %279 = vmatmul.mubr.bf16.vlgmr.msra.gmra.mrb[0].mxu0 %v635_v18  ;;  %311 = vmatmul.mubr.bf16.vlgmr.msra.gmra.mrb[0].mxu1 %v638_v19 }
  0x23   :  { %286 = vmatprep.mubr.bf16.mxu0 %v641_v20  ;;  %318 = vmatprep.mubr.bf16.mxu1 %v643_v21 }
  0x2a   :  { %287 = vmatmul.mubr.bf16.gmra.mrb[4].mxu0 %v645_v22  ;;  %319 = vmatmul.mubr.bf16.gmra.mrb[4].mxu1 %v646_v23 }
  0x2b   :  { %294 = vmatprep.mubr.bf16.mxu0 %v647_v24  ;;  %326 = vmatprep.mubr.bf16.mxu1 %v649_v25 }
  0x32   :  { %295 = vmatmul.mubr.bf16.gmra.mrb[8].mxu0 %v651_v26  ;;  %327 = vmatmul.mubr.bf16.gmra.mrb[8].mxu1 %v652_v27 }
  0x33   :  { %302 = vmatprep.mubr.bf16.mxu0 %v653_v28  ;;  %334 = vmatprep.mubr.bf16.mxu1 %v655_v29 }
  0x3a   :  { %303 = vmatmul.mubr.bf16.gmra.mrb[12].mxu0 %v657_v30  ;;  %335 = vmatmul.mubr.bf16.gmra.mrb[12].mxu1 %v658_v31 }
  0xf5   :  { %v555_v32 = vpop.f32.mrb[0].mxu0  ;;  %v579_v33 = vpop.f32.mrb[0].mxu1 }
  0xf6   :  { %v556_v34 = vpop.f32.mrb[1].mxu0  ;;  %v580_v35 = vpop.f32.mrb[1].mxu1 }
  0xf7   :  { %v557_v36 = vadd.f32 %v556_v34, %v555_v32  ;;  %v581_v37 = vadd.f32 %v580_v35, %v579_v33  ;;  %v558_v38 = vpop.f32.mrb[2].mxu0  ;;  %v582_v39 = vpop.f32.mrb[2].mxu1 }
  0xf8   :  { %v559_v41 = vpop.f32.mrb[3].mxu0  ;;  %v583_v42 = vpop.f32.mrb[3].mxu1 }
  0xf9   :  { %v560_v43 = vadd.f32 %v559_v41, %v558_v38  ;;  %v584_v44 = vadd.f32 %v583_v42, %v582_v39  ;;  %v281_v45 = vadd.f32 %v557_v36, %v778_v40  ;;  %v313_v46 = vadd.f32 %v581_v37, %v778_v40 }
  0xfb   :  { %v284_v47 = vadd.f32 %v560_v43, %v778_v40  ;;  %v316_v48 = vadd.f32 %v584_v44, %v778_v40 }
  0xfd   :  { %v495_v49 = vpack.c.bf16 %v284_v47, %v281_v45  ;;  %v515_v50 = vpack.c.bf16 %v316_v48, %v313_v46  ;;  %v561_v51 = vpop.f32.mrb[4].mxu0  ;;  %v585_v52 = vpop.f32.mrb[4].mxu1 }
  0xfe   :  { %v562_v53 = vpop.f32.mrb[5].mxu0  ;;  %v586_v54 = vpop.f32.mrb[5].mxu1 }
  0xff   :  { %496 = vst [vmem:[%s823_s3] sm:$0xff] %v495_v49   ;;  %535 = vst [vmem:[%s823_s3 + $0x20] sm:$0xff] %v515_v50   ;;  %v563_v55 = vadd.f32 %v562_v53, %v561_v51  ;;  %v587_v56 = vadd.f32 %v586_v54, %v585_v52  ;;  %v564_v57 = vpop.f32.mrb[6].mxu0  ;;  %v588_v58 = vpop.f32.mrb[6].mxu1 }
 0x100   :  { %v565_v59 = vpop.f32.mrb[7].mxu0  ;;  %v589_v60 = vpop.f32.mrb[7].mxu1 }
 0x101   :  { %v566_v61 = vadd.f32 %v565_v59, %v564_v57  ;;  %v590_v62 = vadd.f32 %v589_v60, %v588_v58  ;;  %v289_v63 = vadd.f32 %v563_v55, %v778_v40  ;;  %v321_v0 = vadd.f32 %v587_v56, %v778_v40 }
 0x103   :  { %v292_v1 = vadd.f32 %v566_v61, %v778_v40  ;;  %v324_v2 = vadd.f32 %v590_v62, %v778_v40 }
 0x105   :  { %v500_v3 = vpack.c.bf16 %v292_v1, %v289_v63  ;;  %v520_v4 = vpack.c.bf16 %v324_v2, %v321_v0  ;;  %v567_v5 = vpop.f32.mrb[8].mxu0  ;;  %v591_v6 = vpop.f32.mrb[8].mxu1 }
 0x106   :  { %v568_v7 = vpop.f32.mrb[9].mxu0  ;;  %v592_v8 = vpop.f32.mrb[9].mxu1 }
 0x107   :  { %532 = vst [vmem:[%s823_s3 + $0x8] sm:$0xff] %v500_v3   ;;  %536 = vst [vmem:[%s823_s3 + $0x28] sm:$0xff] %v520_v4   ;;  %v569_v9 = vadd.f32 %v568_v7, %v567_v5  ;;  %v593_v10 = vadd.f32 %v592_v8, %v591_v6  ;;  %v570_v11 = vpop.f32.mrb[10].mxu0  ;;  %v594_v12 = vpop.f32.mrb[10].mxu1 }
 0x108   :  { %v571_v13 = vpop.f32.mrb[11].mxu0  ;;  %v595_v14 = vpop.f32.mrb[11].mxu1 }
 0x109   :  { %v572_v15 = vadd.f32 %v571_v13, %v570_v11  ;;  %v596_v16 = vadd.f32 %v595_v14, %v594_v12  ;;  %v297_v17 = vadd.f32 %v569_v9, %v778_v40  ;;  %v329_v18 = vadd.f32 %v593_v10, %v778_v40 }
 0x10b   :  { %v300_v19 = vadd.f32 %v572_v15, %v778_v40  ;;  %v332_v20 = vadd.f32 %v596_v16, %v778_v40 }
 0x10d   :  { %v505_v21 = vpack.c.bf16 %v300_v19, %v297_v17  ;;  %v525_v22 = vpack.c.bf16 %v332_v20, %v329_v18  ;;  %v573_v23 = vpop.f32.mrb[12].mxu0  ;;  %v597_v24 = vpop.f32.mrb[12].mxu1 }
 0x10e   :  { %v574_v25 = vpop.f32.mrb[13].mxu0  ;;  %v598_v26 = vpop.f32.mrb[13].mxu1 }
 0x10f   :  { %533 = vst [vmem:[%s823_s3 + $0x10] sm:$0xff] %v505_v21   ;;  %537 = vst [vmem:[%s823_s3 + $0x30] sm:$0xff] %v525_v22   ;;  %v575_v27 = vadd.f32 %v574_v25, %v573_v23  ;;  %v599_v28 = vadd.f32 %v598_v26, %v597_v24  ;;  %v576_v29 = vpop.f32.mrb[14].mxu0  ;;  %v600_v30 = vpop.f32.mrb[14].mxu1 }
 0x110   :  { %v577_v31 = vpop.f32.mrb[15].mxu0  ;;  %v601_v32 = vpop.f32.mrb[15].mxu1 }
 0x111   :  { %v578_v33 = vadd.f32 %v577_v31, %v576_v29  ;;  %v602_v34 = vadd.f32 %v601_v32, %v600_v30  ;;  %v305_v35 = vadd.f32 %v575_v27, %v778_v40  ;;  %v337_v36 = vadd.f32 %v599_v28, %v778_v40 }
 0x113   :  { %v308_v37 = vadd.f32 %v578_v33, %v778_v40  ;;  %v340_v38 = vadd.f32 %v602_v34, %v778_v40 }
 0x115   :  { %v510_v39 = vpack.c.bf16 %v308_v37, %v305_v35  ;;  %v530_v41 = vpack.c.bf16 %v340_v38, %v337_v36 }
 0x117   :  { %534 = vst [vmem:[%s823_s3 + $0x18] sm:$0xff] %v510_v39   ;;  %538 = vst [vmem:[%s823_s3 + $0x38] sm:$0xff] %v530_v41  }

// kernel: skvqgan_forward.75
= control target key start
LH: loop header
LB: loop body
LE: loop exit
PB: predicated region body
PF: predicated region fallthrough
CT: control target
= control target key end

     0   :  { %s2639_s12 = smov 0   ;;  %s2641_s13 = smov 0   ;;  %s3035_s0 = inlined_call_operand.vmem [shape: bf16[512,640], index: 0, kind: input, shape index: {}]   ;;  %s3036_s1 = inlined_call_operand.vmem [shape: bf16[640,128], index: 1, kind: input, shape index: {}]   ;;  %s3037_s2 = inlined_call_operand.vmem [shape: f32[1,128], index: 2, kind: input, shape index: {}]   ;;  %s3038_s3 = inlined_call_operand.vmem [shape: bf16[512,128], index: 3, kind: output, shape index: {}]  }
   0x1   :  { %s2643_s14 = smov 0  }
   0x2 LB: > { %s25_s15 = sadd.s32 1, %s2613_s13  ;;  %p1819_p0 = scmp.ge.s32.totalorder %s2617_s14, 1  ;;  %s2617_s14 = sphi %s2643_s14, %s13_s14   ;;  %s2613_s13 = sphi %s2641_s13, %s3040_s13   ;;  %s2609_s12 = sphi %s2639_s12, %s3039_s12  }
   0x3   : > { %p27_p1 = scmp.ge.s32.totalorder %s25_s15, 2  ;;  %p170_p2 = scmp.lt.s32.totalorder %s2617_s14, 3 }
   0x5   : > { %s3042_s15 = smov (%p27_p1, %s25_s15), 0  ;;  %p171_p3 = pnand %p1819_p0, %p170_p2 }
   0x6   : > { %v2443_v0 = vld [vmem:[%s3036_s1 + $0x40] sm:$0xff] (!%p171_p3)   ;;  %s1820_s18 = sshll.u32 (!%p171_p3), %s2609_s12, 5  ;;  %v2445_v2 = vld [vmem:[%s3036_s1 + $0x48] sm:$0xff] (!%p171_p3)   ;;  %v2447_v4 = vld [vmem:[%s3036_s1 + $0x50] sm:$0xff] (!%p171_p3)  }
   0x7   : > { %174 = sbr.rel (%p171_p3) target bundleno = 415 (0x19f), region = 32  ;;  %v2444_v1 = vld [vmem:[%s3036_s1] sm:$0xff] (!%p171_p3)   ;;  %2106 = vmatprep.subr.bf16.mxu0 (!%p171_p3), %v2443_v0  ;;  %2402 = vmatprep.subr.bf16.mxu1 (!%p171_p3), %v2443_v0  ;;  %p206_p4 = scmp.lt.s32.totalorder (!%p171_p3), %s1820_s18, 63  ;;  %v2446_v3 = vld [vmem:[%s3036_s1 + $0x8] sm:$0xff] (!%p171_p3)   ;;  %v2448_v5 = vld [vmem:[%s3036_s1 + $0x10] sm:$0xff] (!%p171_p3)  }
   0x8   : > { %2107 = vmatpush3.bf16.msra.mxu0 (!%p171_p3), %v2444_v1  ;;  %2410 = vmatpush3.bf16.msra.mxu1 (!%p171_p3), %v2444_v1  ;;  %v2449_v6 = vld [vmem:[%s3036_s1 + $0x58] sm:$0xff] (!%p171_p3)   ;;  %v2451_v8 = vld [vmem:[%s3036_s1 + $0x60] sm:$0xff] (!%p171_p3)   ;;  %v2453_v10 = vld [vmem:[%s3036_s1 + $0x68] sm:$0xff] (!%p171_p3)  }
   0x9   : > { %2108 = vmatprep.subr.bf16.mxu0 (!%p171_p3), %v2445_v2  ;;  %2403 = vmatprep.subr.bf16.mxu1 (!%p171_p3), %v2445_v2  ;;  %v2450_v7 = vld [vmem:[%s3036_s1 + $0x18] sm:$0xff] (!%p171_p3)   ;;  %v2452_v9 = vld [vmem:[%s3036_s1 + $0x20] sm:$0xff] (!%p171_p3)   ;;  %v2454_v13 = vld [vmem:[%s3036_s1 + $0x28] sm:$0xff] (!%p171_p3)  }
   0xa   : > { %v2455_v14 = vld [vmem:[%s3036_s1 + $0x70] sm:$0xff] (!%p171_p3)   ;;  %v2457_v16 = vld [vmem:[%s3036_s1 + $0x78] sm:$0xff] (!%p171_p3)   ;;  %v2465_v18 = vld [vmem:[%s3036_s1 + $0xc0] sm:$0xff] (!%p171_p3)  }
   0xb   : > { %v2456_v15 = vld [vmem:[%s3036_s1 + $0x30] sm:$0xff] (!%p171_p3)   ;;  %v2458_v17 = vld [vmem:[%s3036_s1 + $0x38] sm:$0xff] (!%p171_p3)   ;;  %v2468_v19 = vld [vmem:[%s3036_s1 + $0x100] sm:$0xff] (!%p171_p3)  }
   0xc   : > { %2109 = vmatpush3.bf16.msra.mxu0 (!%p171_p3), %v2446_v3  ;;  %2411 = vmatpush3.bf16.msra.mxu1 (!%p171_p3), %v2446_v3  ;;  %v2466_v22 = vld [vmem:[%s3036_s1 + $0x80] sm:$0xff] (!%p171_p3)   ;;  %v2467_v23 = vld [vmem:[%s3036_s1 + $0xc8] sm:$0xff] (!%p171_p3)   ;;  %v2476_v29 = vld [vmem:[%s3036_s1 + $0xd0] sm:$0xff] (!%p171_p3)  }
   0xd   : > { %2110 = vmatprep.subr.bf16.mxu0 (!%p171_p3), %v2447_v4  ;;  %2404 = vmatprep.subr.bf16.mxu1 (!%p171_p3), %v2447_v4  ;;  %v2487_v26 = vld [vmem:[%s3036_s1 + $0x108] sm:$0xff] (!%p171_p3)   ;;  %v2477_v31 = vld [vmem:[%s3036_s1 + $0x90] sm:$0xff] (!%p171_p3)   ;;  %v2478_v33 = vld [vmem:[%s3036_s1 + $0xd8] sm:$0xff] (!%p171_p3)  }
   0xe   : > { %s3044_s18 = smov (!%p206_p4, %s1820_s18), 63  ;;  %v2469_v27 = vld [vmem:[%s3036_s1 + $0x88] sm:$0xff]   ;;  %v2479_v35 = vld [vmem:[%s3036_s1 + $0x98] sm:$0xff]   ;;  %v2486_v36 = vld [vmem:[%s3036_s1 + $0xe0] sm:$0xff]  }
   0xf   : > { %s2418_s4 = smul.u32 20, %s3044_s18  ;;  %v2500_v38 = vld [vmem:[%s3036_s1 + $0x110] sm:$0xff]   ;;  %v2488_v40 = vld [vmem:[%s3036_s1 + $0xa0] sm:$0xff]   ;;  %v2489_v41 = vld [vmem:[%s3036_s1 + $0xe8] sm:$0xff]   ;;  %s1823_s8 = sshll.u32 %s3044_s18, 2 }
  0x10   : > { %2111 = vmatpush3.bf16.msra.mxu0 %v2448_v5  ;;  %2412 = vmatpush3.bf16.msra.mxu1 %v2448_v5  ;;  %v2490_v44 = vld [vmem:[%s3036_s1 + $0xa8] sm:$0xff]   ;;  %v2514_v45 = vld [vmem:[%s3036_s1 + $0x118] sm:$0xff]   ;;  %v2497_v48 = vld [vmem:[%s3036_s1 + $0xf0] sm:$0xff]   ;;  %s2961_s12 = scalar_lea.vmem %s3038_s3, %s1823_s8 }
  0x11   : > { %2112 = vmatprep.subr.bf16.mxu0 %v2449_v6  ;;  %2405 = vmatprep.subr.bf16.mxu1 %v2449_v6  ;;  %s2690_s11 = scalar_lea.vmem %s3035_s0, %s2418_s4  ;;  %v2498_v49 = vld [vmem:[%s3036_s1 + $0xb0] sm:$0xff]   ;;  %v2499_v50 = vld [vmem:[%s3036_s1 + $0xf8] sm:$0xff]   ;;  %v2521_v52 = vld [vmem:[%s3036_s1 + $0x120] sm:$0xff]  }
  0x12   : > { %v2461_v11 = vld [vmem:[%s2690_s11 + $0x4] ss:$20 sps:$4 sm:$0xff]   ;;  %v2459_v20 = vld [vmem:[%s2690_s11] ss:$20 sps:$4 sm:$0xff]   ;;  %v2474_v28 = vld [vmem:[%s2690_s11 + $0x28] ss:$20 sps:$4 sm:$0xff]  }
  0x13   : > { %v2464_v12 = vld [vmem:[%s2690_s11 + $0x1e4] ss:$20 sps:$4 sm:$0xff]   ;;  %1100 = vmatprep.mubr.bf16.mxu0 %v2461_v11  ;;  %v2462_v21 = vld [vmem:[%s2690_s11 + $0x1e0] ss:$20 sps:$4 sm:$0xff]   ;;  %v2475_v30 = vld [vmem:[%s2690_s11 + $0x208] ss:$20 sps:$4 sm:$0xff]  }
  0x14   : > { %2113 = vmatpush3.bf16.msra.mxu0 %v2450_v7  ;;  %2413 = vmatpush3.bf16.msra.mxu1 %v2450_v7  ;;  %v2470_v24 = vld [vmem:[%s2690_s11 + $0x2c] ss:$20 sps:$4 sm:$0xff]   ;;  %v2480_v32 = vld [vmem:[%s2690_s11 + $0x54] ss:$20 sps:$4 sm:$0xff]   ;;  %v2484_v37 = vld [vmem:[%s2690_s11 + $0x50] ss:$20 sps:$4 sm:$0xff]  }
  0x15   : > { %2114 = vmatprep.subr.bf16.mxu0 %v2451_v8  ;;  %2406 = vmatprep.subr.bf16.mxu1 %v2451_v8  ;;  %v2472_v25 = vld [vmem:[%s2690_s11 + $0x20c] ss:$20 sps:$4 sm:$0xff]   ;;  %v2482_v34 = vld [vmem:[%s2690_s11 + $0x234] ss:$20 sps:$4 sm:$0xff]   ;;  %v2485_v39 = vld [vmem:[%s2690_s11 + $0x230] ss:$20 sps:$4 sm:$0xff]  }
  0x16   : > { %1196 = vmatprep.mubr.bf16.mxu1 %v2464_v12  ;;  %v2491_v42 = vld [vmem:[%s2690_s11 + $0x7c] ss:$20 sps:$4 sm:$0xff]   ;;  %v2495_v46 = vld [vmem:[%s2690_s11 + $0x78] ss:$20 sps:$4 sm:$0xff]   ;;  %v2507_v56 = vld [vmem:[%s2690_s11 + $0xa0] ss:$20 sps:$4 sm:$0xff]  }
  0x17   : > { %v2493_v43 = vld [vmem:[%s2690_s11 + $0x25c] ss:$20 sps:$4 sm:$0xff]   ;;  %v2496_v47 = vld [vmem:[%s2690_s11 + $0x258] ss:$20 sps:$4 sm:$0xff]   ;;  %v2510_v59 = vld [vmem:[%s2690_s11 + $0x34] ss:$20 sps:$4 sm:$0xff]  }
  0x18   : > { %2115 = vmatpush3.bf16.msra.mxu0 %v2452_v9  ;;  %2414 = vmatpush3.bf16.msra.mxu1 %v2452_v9  ;;  %v2502_v51 = vld [vmem:[%s2690_s11 + $0xa4] ss:$20 sps:$4 sm:$0xff]   ;;  %v2506_v53 = vld [vmem:[%s2690_s11 + $0xc] ss:$20 sps:$4 sm:$0xff]   ;;  %v2504_v55 = vld [vmem:[%s2690_s11 + $0x8] ss:$20 sps:$4 sm:$0xff]  }
  0x19   : > { %2116 = vmatprep.subr.bf16.mxu0 %v2453_v10  ;;  %2407 = vmatprep.subr.bf16.mxu1 %v2453_v10  ;;  %v2501_v54 = vld [vmem:[%s3036_s1 + $0xb8] sm:$0xff]   ;;  %v2534_v57 = vld [vmem:[%s3036_s1 + $0x128] sm:$0xff]   ;;  %v2541_v60 = vld [vmem:[%s3036_s1 + $0x130] sm:$0xff]  }
  0x1a   : > { %v2508_v58 = vld [vmem:[%s2690_s11 + $0xcc] ss:$20 sps:$4 sm:$0xff]   ;;  %v2512_v61 = vld [vmem:[%s2690_s11 + $0xc8] ss:$20 sps:$4 sm:$0xff]   ;;  %v2513_v62 = vld [vmem:[%s2690_s11 + $0x30] ss:$20 sps:$4 sm:$0xff]  }
  0x1b   : > { %v2515_v63 = vld [vmem:[%s2690_s11 + $0xf4] ss:$20 sps:$4 sm:$0xff]   ;;  %v2517_v0 = vld [vmem:[%s2690_s11 + $0x5c] ss:$20 sps:$4 sm:$0xff]   ;;  %v2520_v3 = vld [vmem:[%s2690_s11 + $0x58] ss:$20 sps:$4 sm:$0xff]  }
  0x1c   : > { %2117 = vmatpush3.bf16.msra.mxu0 %v2454_v13  ;;  %2415 = vmatpush3.bf16.msra.mxu1 %v2454_v13  ;;  %v2554_v1 = vld [vmem:[%s3036_s1 + $0x138] sm:$0xff]   ;;  %v2519_v2 = vld [vmem:[%s2690_s11 + $0xf0] ss:$20 sps:$4 sm:$0xff]   ;;  %v2527_v7 = vld [vmem:[%s2690_s11 + $0x80] ss:$20 sps:$4 sm:$0xff]  }
  0x1d   : > { %2118 = vmatprep.subr.bf16.mxu0 %v2455_v14  ;;  %2408 = vmatprep.subr.bf16.mxu1 %v2455_v14  ;;  %v2522_v4 = vld [vmem:[%s2690_s11 + $0x11c] ss:$20 sps:$4 sm:$0xff]   ;;  %v2524_v5 = vld [vmem:[%s2690_s11 + $0x84] ss:$20 sps:$4 sm:$0xff]   ;;  %v2530_v9 = vld [vmem:[%s2690_s11 + $0xac] ss:$20 sps:$4 sm:$0xff]  }
  0x1e   : > { %v2526_v6 = vld [vmem:[%s2690_s11 + $0x118] ss:$20 sps:$4 sm:$0xff]   ;;  %v2532_v10 = vld [vmem:[%s2690_s11 + $0x140] ss:$20 sps:$4 sm:$0xff]   ;;  %v2533_v11 = vld [vmem:[%s2690_s11 + $0xa8] ss:$20 sps:$4 sm:$0xff]  }
  0x1f   : > { %v2528_v8 = vld [vmem:[%s2690_s11 + $0x144] ss:$20 sps:$4 sm:$0xff]   ;;  %v2535_v12 = vld [vmem:[%s2690_s11 + $0x16c] ss:$20 sps:$4 sm:$0xff]   ;;  %v2537_v13 = vld [vmem:[%s2690_s11 + $0xd4] ss:$20 sps:$4 sm:$0xff]  }
  0x20   : > { %2119 = vmatpush3.bf16.msra.mxu0 %v2456_v15  ;;  %2416 = vmatpush3.bf16.msra.mxu1 %v2456_v15  ;;  %v2539_v14 = vld [vmem:[%s2690_s11 + $0x168] ss:$20 sps:$4 sm:$0xff]   ;;  %v2540_v15 = vld [vmem:[%s2690_s11 + $0xd0] ss:$20 sps:$4 sm:$0xff]  }
  0x21   : > { %2120 = vmatprep.subr.bf16.mxu0 %v2457_v16  ;;  %2409 = vmatprep.subr.bf16.mxu1 %v2457_v16  ;;  %v2542_v16 = vld [vmem:[%s2690_s11 + $0x194] ss:$20 sps:$4 sm:$0xff]  }
  0x24   : > { %2121 = vmatpush3.bf16.msra.mxu0 %v2458_v17  ;;  %2417 = vmatpush3.bf16.msra.mxu1 %v2458_v17  ;;  %v2544_v17 = vld [vmem:[%s2690_s11 + $0xfc] ss:$20 sps:$4 sm:$0xff]  }
  0x25   : > { %2218 = vmatprep.subr.bf16.mxu1 %v2465_v18  ;;  %2354 = vmatprep.subr.bf16.mxu0 %v2468_v19  ;;  %v2546_v18 = vld [vmem:[%s2690_s11 + $0x190] ss:$20 sps:$4 sm:$0xff]  }
  0x27   : > { %1101 = vmatmul.mubr.bf16.vlgmr.msra.gmra.mrb[0].mxu0 %v2459_v20  ;;  %1197 = vmatmul.mubr.bf16.vlgmr.msra.gmra.mrb[0].mxu1 %v2462_v21  ;;  %v2548_v20 = vld [vmem:[%s2690_s11 + $0x1bc] ss:$20 sps:$4 sm:$0xff]   ;;  %v2550_v21 = vld [vmem:[%s2690_s11 + $0x124] ss:$20 sps:$4 sm:$0xff]  }
  0x28   : > { %2219 = vmatpush3.bf16.msra.mxu1 %v2466_v22  ;;  %2355 = vmatpush3.bf16.msra.mxu0 %v2468_v19  ;;  %v2547_v19 = vld [vmem:[%s2690_s11 + $0xf8] ss:$20 sps:$4 sm:$0xff]  }
  0x29   : > { %2220 = vmatprep.subr.bf16.mxu1 %v2467_v23  ;;  %1108 = vmatprep.mubr.bf16.mxu0 %v2470_v24  ;;  %v2552_v22 = vld [vmem:[%s2690_s11 + $0x1b8] ss:$20 sps:$4 sm:$0xff]   ;;  %v2553_v23 = vld [vmem:[%s2690_s11 + $0x120] ss:$20 sps:$4 sm:$0xff]  }
  0x2a   : > { %1204 = vmatprep.mubr.bf16.mxu1 %v2472_v25  ;;  %2356 = vmatprep.subr.bf16.mxu0 %v2487_v26  ;;  %v2555_v24 = vld [vmem:[%s2690_s11 + $0x14c] ss:$20 sps:$4 sm:$0xff]   ;;  %v2557_v25 = vld [vmem:[%s2690_s11 + $0x10] ss:$20 sps:$4 sm:$0xff]  }
  0x2c   : > { %2221 = vmatpush3.bf16.msra.mxu1 %v2469_v27  ;;  %2357 = vmatpush3.bf16.msra.mxu0 %v2487_v26  ;;  %v2558_v26 = vld [vmem:[%s2690_s11 + $0x148] ss:$20 sps:$4 sm:$0xff]   ;;  %v2559_v27 = vld [vmem:[%s2690_s11 + $0x38] ss:$20 sps:$4 sm:$0xff]  }
  0x2d   : > { %2222 = vmatprep.subr.bf16.mxu1 %v2476_v29  ;;  %2358 = vmatprep.subr.bf16.mxu0 %v2500_v38  ;;  %v2562_v29 = vld [vmem:[%s2690_s11 + $0x60] ss:$20 sps:$4 sm:$0xff]  }
  0x2f   : > { %1109 = vmatmul.mubr.bf16.gmra.mrb[4].mxu0 %v2474_v28  ;;  %1205 = vmatmul.mubr.bf16.gmra.mrb[4].mxu1 %v2475_v30  ;;  %v2560_v28 = vld [vmem:[%s2690_s11 + $0x174] ss:$20 sps:$4 sm:$0xff]   ;;  %v2563_v30 = vld [vmem:[%s2690_s11 + $0x170] ss:$20 sps:$4 sm:$0xff]  }
  0x30   : > { %2223 = vmatpush3.bf16.msra.mxu1 %v2477_v31  ;;  %1116 = vmatprep.mubr.bf16.mxu0 %v2480_v32  ;;  %v2564_v31 = vld [vmem:[%s2690_s11 + $0x88] ss:$20 sps:$4 sm:$0xff]  }
  0x31   : > { %2224 = vmatprep.subr.bf16.mxu1 %v2478_v33  ;;  %1212 = vmatprep.mubr.bf16.mxu1 %v2482_v34  ;;  %v2565_v32 = vld [vmem:[%s2690_s11 + $0x19c] ss:$20 sps:$4 sm:$0xff]   ;;  %v2568_v34 = vld [vmem:[%s2690_s11 + $0x198] ss:$20 sps:$4 sm:$0xff]  }
  0x32   : > { %2359 = vmatpush3.bf16.msra.mxu0 %v2500_v38  ;;  %v2567_v33 = vld [vmem:[%s2690_s11 + $0xb0] ss:$20 sps:$4 sm:$0xff]   ;;  %v2573_v38 = vld [vmem:[%s2690_s11 + $0x1c0] ss:$20 sps:$4 sm:$0xff]  }
  0x33   : > { %2360 = vmatprep.subr.bf16.mxu0 %v2514_v45 }
  0x34   : > { %2225 = vmatpush3.bf16.msra.mxu1 %v2479_v35  ;;  %v2569_v35 = vld [vmem:[%s2690_s11 + $0xd8] ss:$20 sps:$4 sm:$0xff]  }
  0x35   : > { %2226 = vmatprep.subr.bf16.mxu1 %v2486_v36  ;;  %v2570_v36 = vld [vmem:[%s2690_s11 + $0x1c4] ss:$20 sps:$4 sm:$0xff]  }
  0x36   : > { %2361 = vmatpush3.bf16.msra.mxu0 %v2514_v45  ;;  %v2582_v45 = vld [vmem:[%s2690_s11 + $0x1a0] ss:$20 sps:$4 sm:$0xff]  }
  0x37   : > { %1117 = vmatmul.mubr.bf16.gmra.mrb[8].mxu0 %v2484_v37  ;;  %1213 = vmatmul.mubr.bf16.gmra.mrb[8].mxu1 %v2485_v39  ;;  %v2572_v37 = vld [vmem:[%s2690_s11 + $0x100] ss:$20 sps:$4 sm:$0xff]   ;;  %v2574_v39 = vld [vmem:[%s2690_s11 + $0x128] ss:$20 sps:$4 sm:$0xff]  }
  0x38   : > { %2227 = vmatpush3.bf16.msra.mxu1 %v2488_v40  ;;  %1124 = vmatprep.mubr.bf16.mxu0 %v2491_v42  ;;  %v2575_v40 = vld [vmem:[%s2690_s11 + $0x1ec] ss:$20 sps:$4 sm:$0xff]   ;;  %v2578_v42 = vld [vmem:[%s2690_s11 + $0x1e8] ss:$20 sps:$4 sm:$0xff]  }
  0x39   : > { %2228 = vmatprep.subr.bf16.mxu1 %v2489_v41  ;;  %1220 = vmatprep.mubr.bf16.mxu1 %v2493_v43  ;;  %v2577_v41 = vld [vmem:[%s2690_s11 + $0x150] ss:$20 sps:$4 sm:$0xff]   ;;  %v2579_v43 = vld [vmem:[%s2690_s11 + $0x178] ss:$20 sps:$4 sm:$0xff]  }
  0x3a   : > { %2362 = vmatprep.subr.bf16.mxu0 %v2521_v52 }
  0x3b   : > { %2363 = vmatpush3.bf16.msra.mxu0 %v2521_v52  ;;  %v2590_v52 = vld [vmem:[%s2690_s11 + $0x264] ss:$20 sps:$4 sm:$0xff]  }
  0x3c   : > { %2229 = vmatpush3.bf16.msra.mxu1 %v2490_v44  ;;  %2364 = vmatprep.subr.bf16.mxu0 %v2534_v57  ;;  %v2580_v44 = vld [vmem:[%s2690_s11 + $0x214] ss:$20 sps:$4 sm:$0xff]  }
  0x3d   : > { %2230 = vmatprep.subr.bf16.mxu1 %v2497_v48  ;;  %v2585_v48 = vld [vmem:[%s2690_s11 + $0x23c] ss:$20 sps:$4 sm:$0xff]  }
  0x3f   : > { %1125 = vmatmul.mubr.bf16.gmra.mrb[12].mxu0 %v2495_v46  ;;  %1221 = vmatmul.mubr.bf16.gmra.mrb[12].mxu1 %v2496_v47  ;;  %v2583_v46 = vld [vmem:[%s2690_s11 + $0x210] ss:$20 sps:$4 sm:$0xff]   ;;  %v2584_v47 = vld [vmem:[%s2690_s11 + $0x1c8] ss:$20 sps:$4 sm:$0xff]  }
  0x40   : > { %2231 = vmatpush3.bf16.msra.mxu1 %v2498_v49  ;;  %1132 = vmatprep.mubr.bf16.mxu0 %v2502_v51  ;;  %v2587_v49 = vld [vmem:[%s2690_s11 + $0x1f0] ss:$20 sps:$4 sm:$0xff]   ;;  %v2589_v51 = vld [vmem:[%s2690_s11 + $0x218] ss:$20 sps:$4 sm:$0xff]  }
  0x41   : > { %2232 = vmatprep.subr.bf16.mxu1 %v2499_v50  ;;  %1261 = vmatprep.mubr.bf16.mxu1 %v2506_v53  ;;  %v2588_v50 = vld [vmem:[%s2690_s11 + $0x238] ss:$20 sps:$4 sm:$0xff]   ;;  %v2592_v53 = vld [vmem:[%s2690_s11 + $0x240] ss:$20 sps:$4 sm:$0xff]  }
  0x42   : > { %2365 = vmatpush3.bf16.msra.mxu0 %v2534_v57 }
  0x43   : > { %2366 = vmatprep.subr.bf16.mxu0 %v2541_v60 }
  0x44   : > { %2233 = vmatpush3.bf16.msra.mxu1 %v2501_v54  ;;  %v2593_v54 = vld [vmem:[%s2690_s11 + $0x260] ss:$20 sps:$4 sm:$0xff]  }
  0x46   : > { %2367 = vmatpush3.bf16.msra.mxu0 %v2541_v60 }
  0x47   : > { %1133 = vmatmul.mubr.bf16.gmra.mrb[16].mxu0 %v2507_v56  ;;  %1262 = vmatmul.mubr.bf16.vlgmr.msra.gmra.mrb[16].mxu1 %v2504_v55  ;;  %v2594_v55 = vld [vmem:[%s2690_s11 + $0x268] ss:$20 sps:$4 sm:$0xff]  }
  0x48   : > { %1140 = vmatprep.mubr.bf16.mxu0 %v2508_v58  ;;  %1269 = vmatprep.mubr.bf16.mxu1 %v2510_v59 }
  0x49   : > { %2368 = vmatprep.subr.bf16.mxu0 %v2554_v1 }
  0x4a   : > { %2369 = vmatpush3.bf16.msra.mxu0 %v2554_v1 }
  0x4f   : > { %1141 = vmatmul.mubr.bf16.gmra.mrb[20].mxu0 %v2512_v61  ;;  %1270 = vmatmul.mubr.bf16.gmra.mrb[20].mxu1 %v2513_v62 }
  0x50   : > { %1148 = vmatprep.mubr.bf16.mxu0 %v2515_v63  ;;  %1277 = vmatprep.mubr.bf16.mxu1 %v2517_v0 }
  0x57   : > { %1149 = vmatmul.mubr.bf16.gmra.mrb[24].mxu0 %v2519_v2  ;;  %1278 = vmatmul.mubr.bf16.gmra.mrb[24].mxu1 %v2520_v3 }
  0x58   : > { %1156 = vmatprep.mubr.bf16.mxu0 %v2522_v4  ;;  %1285 = vmatprep.mubr.bf16.mxu1 %v2524_v5 }
  0x5f   : > { %1157 = vmatmul.mubr.bf16.gmra.mrb[28].mxu0 %v2526_v6  ;;  %1286 = vmatmul.mubr.bf16.gmra.mrb[28].mxu1 %v2527_v7 }
  0x60   : > { %1164 = vmatprep.mubr.bf16.mxu0 %v2528_v8  ;;  %1293 = vmatprep.mubr.bf16.mxu1 %v2530_v9 }
  0x67   : > { %1165 = vmatmul.mubr.bf16.gmra.mrb[32].mxu0 %v2532_v10  ;;  %1294 = vmatmul.mubr.bf16.gmra.mrb[32].mxu1 %v2533_v11 }
  0x68   : > { %1172 = vmatprep.mubr.bf16.mxu0 %v2535_v12  ;;  %1301 = vmatprep.mubr.bf16.mxu1 %v2537_v13 }
  0x6f   : > { %1173 = vmatmul.mubr.bf16.gmra.mrb[36].mxu0 %v2539_v14  ;;  %1302 = vmatmul.mubr.bf16.gmra.mrb[36].mxu1 %v2540_v15 }
  0x70   : > { %1180 = vmatprep.mubr.bf16.mxu0 %v2542_v16  ;;  %1309 = vmatprep.mubr.bf16.mxu1 %v2544_v17 }
  0x77   : > { %1181 = vmatmul.mubr.bf16.gmra.mrb[40].mxu0 %v2546_v18  ;;  %1310 = vmatmul.mubr.bf16.gmra.mrb[40].mxu1 %v2547_v19 }
  0x78   : > { %1188 = vmatprep.mubr.bf16.mxu0 %v2548_v20  ;;  %1317 = vmatprep.mubr.bf16.mxu1 %v2550_v21 }
  0x7f   : > { %1189 = vmatmul.mubr.bf16.gmra.mrb[44].mxu0 %v2552_v22  ;;  %1318 = vmatmul.mubr.bf16.gmra.mrb[44].mxu1 %v2553_v23 }
  0x80   : > { %1325 = vmatprep.mubr.bf16.mxu1 %v2555_v24  ;;  %2370 = vmatprep.mubr.bf16.mxu0 %v2557_v25 }
  0x87   : > { %1326 = vmatmul.mubr.bf16.gmra.mrb[48].mxu1 %v2558_v26  ;;  %2371 = vmatmul.mubr.bf16.vlgmr.msra.gmra.mrb[48].mxu0 %v2559_v27 }
  0x88   : > { %1333 = vmatprep.mubr.bf16.mxu1 %v2560_v28  ;;  %2374 = vmatprep.mubr.bf16.mxu0 %v2562_v29 }
  0x8f   : > { %1334 = vmatmul.mubr.bf16.gmra.mrb[52].mxu1 %v2563_v30  ;;  %2375 = vmatmul.mubr.bf16.gmra.mrb[52].mxu0 %v2564_v31 }
  0x90   : > { %1341 = vmatprep.mubr.bf16.mxu1 %v2565_v32  ;;  %2378 = vmatprep.mubr.bf16.mxu0 %v2567_v33 }
  0x97   : > { %1342 = vmatmul.mubr.bf16.gmra.mrb[56].mxu1 %v2568_v34  ;;  %2379 = vmatmul.mubr.bf16.gmra.mrb[56].mxu0 %v2569_v35 }
  0x98   : > { %1349 = vmatprep.mubr.bf16.mxu1 %v2570_v36  ;;  %2382 = vmatprep.mubr.bf16.mxu0 %v2572_v37 }
  0x9f   : > { %1350 = vmatmul.mubr.bf16.gmra.mrb[60].mxu1 %v2573_v38  ;;  %2383 = vmatmul.mubr.bf16.gmra.mrb[60].mxu0 %v2574_v39 }
  0xa0   : > { %1357 = vmatprep.mubr.bf16.mxu1 %v2575_v40  ;;  %2386 = vmatprep.mubr.bf16.mxu0 %v2577_v41 }
  0xa7   : > { %1358 = vmatmul.mubr.bf16.gmra.mrb[64].mxu1 %v2578_v42  ;;  %2387 = vmatmul.mubr.bf16.gmra.mrb[64].mxu0 %v2579_v43  ;;  %v2884_v42 = vld [vmem:[%s3037_s2] ss:$0 sm:$0xff] }
  0xa8   : > { %1365 = vmatprep.mubr.bf16.mxu1 %v2580_v44  ;;  %2390 = vmatprep.mubr.bf16.mxu0 %v2582_v45 }
  0xaf   : > { %1366 = vmatmul.mubr.bf16.gmra.mrb[68].mxu1 %v2583_v46  ;;  %2391 = vmatmul.mubr.bf16.gmra.mrb[68].mxu0 %v2584_v47 }
  0xb0   : > { %1373 = vmatprep.mubr.bf16.mxu1 %v2585_v48  ;;  %2394 = vmatprep.mubr.bf16.mxu0 %v2587_v49 }
  0xb7   : > { %1374 = vmatmul.mubr.bf16.gmra.mrb[72].mxu1 %v2588_v50  ;;  %2395 = vmatmul.mubr.bf16.gmra.mrb[72].mxu0 %v2589_v51 }
  0xb8   : > { %1381 = vmatprep.mubr.bf16.mxu1 %v2590_v52  ;;  %2398 = vmatprep.mubr.bf16.mxu0 %v2592_v53 }
  0xbf   : > { %1382 = vmatmul.mubr.bf16.gmra.mrb[76].mxu1 %v2593_v54  ;;  %2399 = vmatmul.mubr.bf16.gmra.mrb[76].mxu0 %v2594_v55 }
  0xfa   : > { %v2194_v56 = vpop.f32.mrb[0].mxu1  ;;  %v2122_v57 = vpop.f32.mrb[0].mxu0 }
  0xfb   : > { %v2195_v58 = vpop.f32.mrb[1].mxu1  ;;  %v2123_v59 = vpop.f32.mrb[1].mxu0 }
  0xfc   : > { %v2865_v60 = vadd.f32 %v2195_v58, %v2194_v56  ;;  %v2197_v61 = vpop.f32.mrb[2].mxu1  ;;  %v2124_v62 = vadd.f32 %v2123_v59, %v2122_v57  ;;  %v2125_v63 = vpop.f32.mrb[2].mxu0 }
  0xfd   : > { %v2198_v0 = vpop.f32.mrb[3].mxu1  ;;  %v2126_v1 = vpop.f32.mrb[3].mxu0 }
  0xfe   : > { %v2867_v2 = vadd.f32 %v2198_v0, %v2197_v61  ;;  %v2127_v3 = vadd.f32 %v2126_v1, %v2125_v63  ;;  %v1103_v45 = vadd.f32 %v2124_v62, %v2884_v42 }
 0x100   : > { %v1106_v52 = vadd.f32 %v2127_v3, %v2884_v42 }
 0x102   : > { %v2200_v4 = vpop.f32.mrb[4].mxu1  ;;  %v2128_v5 = vpop.f32.mrb[4].mxu0 }
 0x103   : > { %v2201_v6 = vpop.f32.mrb[5].mxu1  ;;  %v2129_v7 = vpop.f32.mrb[5].mxu0 }
 0x104   : > { %v2869_v8 = vadd.f32 %v2201_v6, %v2200_v4  ;;  %v2203_v9 = vpop.f32.mrb[6].mxu1  ;;  %v2130_v10 = vadd.f32 %v2129_v7, %v2128_v5  ;;  %v2131_v11 = vpop.f32.mrb[6].mxu0 }
 0x105   : > { %v2204_v12 = vpop.f32.mrb[7].mxu1  ;;  %v2132_v13 = vpop.f32.mrb[7].mxu0 }
 0x106   : > { %v2871_v14 = vadd.f32 %v2204_v12, %v2203_v9  ;;  %v2133_v15 = vadd.f32 %v2132_v13, %v2131_v11  ;;  %v1111_v62 = vadd.f32 %v2130_v10, %v2884_v42 }
 0x108   : > { %v1114_v3 = vadd.f32 %v2133_v15, %v2884_v42 }
 0x10a   : > { %v2206_v16 = vpop.f32.mrb[8].mxu1  ;;  %v2134_v17 = vpop.f32.mrb[8].mxu0 }
 0x10b   : > { %v2207_v18 = vpop.f32.mrb[9].mxu1  ;;  %v2135_v19 = vpop.f32.mrb[9].mxu0 }
 0x10c   : > { %v2873_v20 = vadd.f32 %v2207_v18, %v2206_v16  ;;  %v2209_v21 = vpop.f32.mrb[10].mxu1  ;;  %v2136_v22 = vadd.f32 %v2135_v19, %v2134_v17  ;;  %v2137_v23 = vpop.f32.mrb[10].mxu0 }
 0x10d   : > { %v2210_v24 = vpop.f32.mrb[11].mxu1  ;;  %v2138_v25 = vpop.f32.mrb[11].mxu0 }
 0x10e   : > { %v2875_v26 = vadd.f32 %v2210_v24, %v2209_v21  ;;  %v2139_v27 = vadd.f32 %v2138_v25, %v2137_v23  ;;  %v1119_v10 = vadd.f32 %v2136_v22, %v2884_v42 }
 0x110   : > { %v1122_v15 = vadd.f32 %v2139_v27, %v2884_v42 }
 0x112   : > { %v2212_v28 = vpop.f32.mrb[12].mxu1  ;;  %v2140_v29 = vpop.f32.mrb[12].mxu0 }
 0x113   : > { %v2213_v30 = vpop.f32.mrb[13].mxu1  ;;  %v2141_v31 = vpop.f32.mrb[13].mxu0 }
 0x114   : > { %v2877_v32 = vadd.f32 %v2213_v30, %v2212_v28  ;;  %v2215_v33 = vpop.f32.mrb[14].mxu1  ;;  %v2142_v34 = vadd.f32 %v2141_v31, %v2140_v29  ;;  %v2143_v35 = vpop.f32.mrb[14].mxu0 }
 0x115   : > { %v2216_v36 = vpop.f32.mrb[15].mxu1  ;;  %v2144_v37 = vpop.f32.mrb[15].mxu0 }
 0x116   : > { %v2879_v38 = vadd.f32 %v2216_v36, %v2215_v33  ;;  %v2145_v39 = vadd.f32 %v2144_v37, %v2143_v35  ;;  %v1127_v22 = vadd.f32 %v2142_v34, %v2884_v42 }
 0x118   : > { %v1130_v27 = vadd.f32 %v2145_v39, %v2884_v42 }
 0x11a   : > { %v2234_v40 = vpop.f32.mrb[16].mxu1  ;;  %v2146_v41 = vpop.f32.mrb[16].mxu0 }
 0x11b   : > { %v2235_v43 = vpop.f32.mrb[17].mxu1  ;;  %v2147_v44 = vpop.f32.mrb[17].mxu0 }
 0x11c   : > { %v2236_v46 = vadd.f32 %v2235_v43, %v2234_v40  ;;  %v2237_v47 = vpop.f32.mrb[18].mxu1  ;;  %v2148_v48 = vadd.f32 %v2147_v44, %v2146_v41  ;;  %v2149_v49 = vpop.f32.mrb[18].mxu0 }
 0x11d   : > { %v2238_v50 = vpop.f32.mrb[19].mxu1  ;;  %v2150_v51 = vpop.f32.mrb[19].mxu0 }
 0x11e   : > { %v2239_v53 = vadd.f32 %v2238_v50, %v2237_v47  ;;  %v2151_v54 = vadd.f32 %v2150_v51, %v2149_v49  ;;  %v2888_v55 = vadd.f32 %v2236_v46, %v1103_v45  ;;  %v1135_v34 = vadd.f32 %v2148_v48, %v2884_v42 }
 0x120   : > { %v2890_v56 = vadd.f32 %v2239_v53, %v1106_v52  ;;  %v1138_v39 = vadd.f32 %v2151_v54, %v2884_v42 }
 0x122   : > { %v2240_v57 = vpop.f32.mrb[20].mxu1  ;;  %v2152_v58 = vpop.f32.mrb[20].mxu0 }
 0x123   : > { %v2241_v59 = vpop.f32.mrb[21].mxu1  ;;  %v2153_v61 = vpop.f32.mrb[21].mxu0 }
 0x124   : > { %v2242_v63 = vadd.f32 %v2241_v59, %v2240_v57  ;;  %v2243_v0 = vpop.f32.mrb[22].mxu1  ;;  %v2154_v1 = vadd.f32 %v2153_v61, %v2152_v58  ;;  %v2155_v4 = vpop.f32.mrb[22].mxu0 }
 0x125   : > { %v2244_v5 = vpop.f32.mrb[23].mxu1  ;;  %v2156_v6 = vpop.f32.mrb[23].mxu0 }
 0x126   : > { %v2245_v7 = vadd.f32 %v2244_v5, %v2243_v0  ;;  %v2157_v9 = vadd.f32 %v2156_v6, %v2155_v4  ;;  %v2894_v11 = vadd.f32 %v2242_v63, %v1111_v62 }
 0x128   : > { %v2896_v12 = vadd.f32 %v2245_v7, %v1114_v3 }
 0x12a   : > { %v2246_v13 = vpop.f32.mrb[24].mxu1  ;;  %v2158_v16 = vpop.f32.mrb[24].mxu0 }
 0x12b   : > { %v2247_v17 = vpop.f32.mrb[25].mxu1  ;;  %v2159_v18 = vpop.f32.mrb[25].mxu0 }
 0x12c   : > { %v2248_v19 = vadd.f32 %v2247_v17, %v2246_v13  ;;  %v2249_v21 = vpop.f32.mrb[26].mxu1  ;;  %v2160_v23 = vadd.f32 %v2159_v18, %v2158_v16  ;;  %v2161_v24 = vpop.f32.mrb[26].mxu0 }
 0x12d   : > { %v2250_v25 = vpop.f32.mrb[27].mxu1  ;;  %v2162_v28 = vpop.f32.mrb[27].mxu0 }
 0x12e   : > { %v2251_v29 = vadd.f32 %v2250_v25, %v2249_v21  ;;  %v2163_v30 = vadd.f32 %v2162_v28, %v2161_v24  ;;  %v2900_v31 = vadd.f32 %v2248_v19, %v1119_v10  ;;  %v1143_v10 = vadd.f32 %v2154_v1, %v2884_v42 }
 0x130   : > { %v2902_v33 = vadd.f32 %v2251_v29, %v1122_v15  ;;  %v1146_v15 = vadd.f32 %v2157_v9, %v2884_v42 }
 0x132   : > { %v2252_v35 = vpop.f32.mrb[28].mxu1  ;;  %v2164_v36 = vpop.f32.mrb[28].mxu0 }
 0x133   : > { %v2253_v37 = vpop.f32.mrb[29].mxu1  ;;  %v2165_v40 = vpop.f32.mrb[29].mxu0 }
 0x134   : > { %v2254_v41 = vadd.f32 %v2253_v37, %v2252_v35  ;;  %v2255_v43 = vpop.f32.mrb[30].mxu1  ;;  %v2166_v44 = vadd.f32 %v2165_v40, %v2164_v36  ;;  %v2167_v45 = vpop.f32.mrb[30].mxu0 }
 0x135   : > { %v2256_v46 = vpop.f32.mrb[31].mxu1  ;;  %v2168_v47 = vpop.f32.mrb[31].mxu0 }
 0x136   : > { %v2257_v49 = vadd.f32 %v2256_v46, %v2255_v43  ;;  %v2169_v50 = vadd.f32 %v2168_v47, %v2167_v45  ;;  %v2906_v51 = vadd.f32 %v2254_v41, %v1127_v22  ;;  %v1151_v43 = vadd.f32 %v2160_v23, %v2884_v42 }
 0x138   : > { %v2908_v52 = vadd.f32 %v2257_v49, %v1130_v27 }
 0x13a   : > { %v2258_v53 = vpop.f32.mrb[32].mxu1  ;;  %v2170_v57 = vpop.f32.mrb[32].mxu0 }
 0x13b   : > { %v2259_v58 = vpop.f32.mrb[33].mxu1  ;;  %v2171_v59 = vpop.f32.mrb[33].mxu0 }
 0x13c   : > { %v2260_v61 = vadd.f32 %v2259_v58, %v2258_v53  ;;  %v2261_v62 = vpop.f32.mrb[34].mxu1  ;;  %v2911_v63 = vadd.f32 %v2171_v59, %v2170_v57  ;;  %v2173_v0 = vpop.f32.mrb[34].mxu0  ;;  %v1154_v53 = vadd.f32 %v2163_v30, %v2884_v42 }
 0x13d   : > { %v2262_v4 = vpop.f32.mrb[35].mxu1  ;;  %v2174_v5 = vpop.f32.mrb[35].mxu0 }
 0x13e   : > { %v2263_v6 = vadd.f32 %v2262_v4, %v2261_v62  ;;  %v2914_v3 = vadd.f32 %v2174_v5, %v2173_v0  ;;  %v2916_v7 = vadd.f32 %v2260_v61, %v1135_v34  ;;  %v1159_v4 = vadd.f32 %v2166_v44, %v2884_v42 }
 0x140   : > { %v2918_v13 = vadd.f32 %v2263_v6, %v1138_v39 }
 0x142   : > { %v2264_v16 = vpop.f32.mrb[36].mxu1  ;;  %v2176_v17 = vpop.f32.mrb[36].mxu0 }
 0x143   : > { %v2265_v18 = vpop.f32.mrb[37].mxu1  ;;  %v2177_v48 = vpop.f32.mrb[37].mxu0 }
 0x144   : > { %v2266_v19 = vadd.f32 %v2265_v18, %v2264_v16  ;;  %v2267_v21 = vpop.f32.mrb[38].mxu1  ;;  %v2921_v24 = vadd.f32 %v2177_v48, %v2176_v17  ;;  %v2179_v25 = vpop.f32.mrb[38].mxu0  ;;  %v1162_v18 = vadd.f32 %v2169_v50, %v2884_v42 }
 0x145   : > { %v2268_v28 = vpop.f32.mrb[39].mxu1  ;;  %v2180_v54 = vpop.f32.mrb[39].mxu0 }
 0x146   : > { %v2269_v29 = vadd.f32 %v2268_v28, %v2267_v21  ;;  %v2924_v35 = vadd.f32 %v2180_v54, %v2179_v25  ;;  %v2926_v36 = vadd.f32 %v2266_v19, %v1143_v10 }
 0x148   : > { %v2928_v37 = vadd.f32 %v2269_v29, %v1146_v15  ;;  %v1167_v29 = vadd.f32 %v2911_v63, %v2884_v42 }
 0x14a   : > { %v2270_v40 = vpop.f32.mrb[40].mxu1  ;;  %v2182_v22 = vpop.f32.mrb[40].mxu0 }
 0x14b   : > { %v2271_v41 = vpop.f32.mrb[41].mxu1  ;;  %v2183_v1 = vpop.f32.mrb[41].mxu0 }
 0x14c   : > { %v2272_v45 = vadd.f32 %v2271_v41, %v2270_v40  ;;  %v2273_v46 = vpop.f32.mrb[42].mxu1  ;;  %v2931_v47 = vadd.f32 %v2183_v1, %v2182_v22  ;;  %v2185_v27 = vpop.f32.mrb[42].mxu0 }
 0x14d   : > { %v2274_v49 = vpop.f32.mrb[43].mxu1  ;;  %v2186_v9 = vpop.f32.mrb[43].mxu0 }
 0x14e   : > { %v2275_v57 = vadd.f32 %v2274_v49, %v2273_v46  ;;  %v2934_v58 = vadd.f32 %v2186_v9, %v2185_v27  ;;  %v2936_v59 = vadd.f32 %v2272_v45, %v1151_v43  ;;  %v1170_v46 = vadd.f32 %v2914_v3, %v2884_v42 }
 0x150   : > { %v2938_v34 = vadd.f32 %v2275_v57, %v1154_v53 }
 0x152   : > { %v2276_v61 = vpop.f32.mrb[44].mxu1  ;;  %v2188_v62 = vpop.f32.mrb[44].mxu0 }
 0x153   : > { %v2277_v0 = vpop.f32.mrb[45].mxu1  ;;  %v2189_v23 = vpop.f32.mrb[45].mxu0 }
 0x154   : > { %v2278_v5 = vadd.f32 %v2277_v0, %v2276_v61  ;;  %v2279_v39 = vpop.f32.mrb[46].mxu1  ;;  %v2941_v6 = vadd.f32 %v2189_v23, %v2188_v62  ;;  %v2191_v16 = vpop.f32.mrb[46].mxu0  ;;  %v1175_v62 = vadd.f32 %v2921_v24, %v2884_v42 }
 0x155   : > { %v2280_v30 = vpop.f32.mrb[47].mxu1  ;;  %v2192_v17 = vpop.f32.mrb[47].mxu0 }
 0x156   : > { %v2281_v48 = vadd.f32 %v2280_v30, %v2279_v39  ;;  %v2944_v10 = vadd.f32 %v2192_v17, %v2191_v16  ;;  %v2946_v19 = vadd.f32 %v2278_v5, %v1159_v4  ;;  %v1178_v30 = vadd.f32 %v2924_v35, %v2884_v42 }
 0x158   : > { %v2948_v21 = vadd.f32 %v2281_v48, %v1162_v18 }
 0x15a   : > { %v2282_v25 = vpop.f32.mrb[48].mxu1  ;;  %v2372_v28 = vpop.f32.mrb[48].mxu0 }
 0x15b   : > { %v1433_v44 = vadd.f32 %v2372_v28, %v2894_v11  ;;  %v2283_v54 = vpop.f32.mrb[49].mxu1  ;;  %v1424_v15 = vpop.f32.mrb[49].mxu0 }
 0x15c   : > { %v2284_v40 = vadd.f32 %v2283_v54, %v2282_v25  ;;  %v1425_v50 = vadd.f32 %v1424_v15, %v2888_v55  ;;  %v2285_v22 = vpop.f32.mrb[50].mxu1  ;;  %v2373_v41 = vpop.f32.mrb[50].mxu0  ;;  %v1183_v15 = vadd.f32 %v2931_v47, %v2884_v42 }
 0x15d   : > { %v1436_v1 = vadd.f32 %v2373_v41, %v2896_v12  ;;  %v2286_v43 = vpop.f32.mrb[51].mxu1  ;;  %v1427_v45 = vpop.f32.mrb[51].mxu0 }
 0x15e   : > { %v2287_v11 = vadd.f32 %v2286_v43, %v2285_v22  ;;  %v1428_v63 = vadd.f32 %v1427_v45, %v2890_v56  ;;  %v2964_v55 = vadd.f32 %v2284_v40, %v1167_v29 }
 0x15f   : > { %v2019_v27 = vpack.c.bf16 %v1436_v1, %v1433_v44  ;;  %v1186_v1 = vadd.f32 %v2934_v58, %v2884_v42 }
 0x160   : > { %v2014_v49 = vpack.c.bf16 %v1428_v63, %v1425_v50  ;;  %v2966_v12 = vadd.f32 %v2287_v11, %v1170_v46 }
 0x161   : > { %2091 = vst [vmem:[%s2961_s12 + $0x8] sm:$0xff] %v2019_v27  }
 0x162   : > { %2015 = vst [vmem:[%s2961_s12] sm:$0xff] %v2014_v49   ;;  %v2288_v9 = vpop.f32.mrb[52].mxu1  ;;  %v2376_v3 = vpop.f32.mrb[52].mxu0 }
 0x163   : > { %v1449_v53 = vadd.f32 %v2376_v3, %v2906_v51  ;;  %v2289_v57 = vpop.f32.mrb[53].mxu1  ;;  %v1440_v61 = vpop.f32.mrb[53].mxu0 }
 0x164   : > { %v2290_v56 = vadd.f32 %v2289_v57, %v2288_v9  ;;  %v1441_v0 = vadd.f32 %v1440_v61, %v2900_v31  ;;  %v2291_v23 = vpop.f32.mrb[54].mxu1  ;;  %v2377_v4 = vpop.f32.mrb[54].mxu0  ;;  %v1191_v9 = vadd.f32 %v2941_v6, %v2884_v42 }
 0x165   : > { %v1452_v5 = vadd.f32 %v2377_v4, %v2908_v52  ;;  %v2292_v39 = vpop.f32.mrb[55].mxu1  ;;  %v1443_v16 = vpop.f32.mrb[55].mxu0 }
 0x166   : > { %v2293_v51 = vadd.f32 %v2292_v39, %v2291_v23  ;;  %v1444_v17 = vadd.f32 %v1443_v16, %v2902_v33  ;;  %v1336_v18 = vadd.f32 %v2290_v56, %v1175_v62  ;;  %v1194_v56 = vadd.f32 %v2944_v10, %v2884_v42 }
 0x167   : > { %v2029_v48 = vpack.c.bf16 %v1452_v5, %v1449_v53 }
 0x168   : > { %v2024_v25 = vpack.c.bf16 %v1444_v17, %v1441_v0  ;;  %v1339_v24 = vadd.f32 %v2293_v51, %v1178_v30 }
 0x169   : > { %2093 = vst [vmem:[%s2961_s12 + $0x18] sm:$0xff] %v2029_v48  }
 0x16a   : > { %2092 = vst [vmem:[%s2961_s12 + $0x10] sm:$0xff] %v2024_v25   ;;  %v2294_v28 = vpop.f32.mrb[56].mxu1  ;;  %v2380_v31 = vpop.f32.mrb[56].mxu0 }
 0x16b   : > { %v1465_v44 = vadd.f32 %v2380_v31, %v2926_v36  ;;  %v2295_v54 = vpop.f32.mrb[57].mxu1  ;;  %v1456_v52 = vpop.f32.mrb[57].mxu0 }
 0x16c   : > { %v2296_v35 = vadd.f32 %v2295_v54, %v2294_v28  ;;  %v1457_v33 = vadd.f32 %v1456_v52, %v2916_v7  ;;  %v2297_v29 = vpop.f32.mrb[58].mxu1  ;;  %v2381_v40 = vpop.f32.mrb[58].mxu0 }
 0x16d   : > { %v1468_v50 = vadd.f32 %v2381_v40, %v2928_v37  ;;  %v2298_v22 = vpop.f32.mrb[59].mxu1  ;;  %v1459_v41 = vpop.f32.mrb[59].mxu0 }
 0x16e   : > { %v2299_v36 = vadd.f32 %v2298_v22, %v2297_v29  ;;  %v1460_v43 = vadd.f32 %v1459_v41, %v2918_v13  ;;  %v1344_v45 = vadd.f32 %v2296_v35, %v1183_v15 }
 0x16f   : > { %v2039_v46 = vpack.c.bf16 %v1468_v50, %v1465_v44  ;;  %v1202_v44 = vadd.f32 %v2867_v2, %v2884_v42 }
 0x170   : > { %v2034_v11 = vpack.c.bf16 %v1460_v43, %v1457_v33  ;;  %v1347_v47 = vadd.f32 %v2299_v36, %v1186_v1 }
 0x171   : > { %2095 = vst [vmem:[%s2961_s12 + $0x28] sm:$0xff] %v2039_v46   ;;  %v1210_v46 = vadd.f32 %v2871_v14, %v2884_v42 }
 0x172   : > { %2094 = vst [vmem:[%s2961_s12 + $0x20] sm:$0xff] %v2034_v11   ;;  %v2300_v63 = vpop.f32.mrb[60].mxu1  ;;  %v2384_v7 = vpop.f32.mrb[60].mxu0 }
 0x173   : > { %v1481_v27 = vadd.f32 %v2384_v7, %v2946_v19  ;;  %v2301_v49 = vpop.f32.mrb[61].mxu1  ;;  %v1472_v37 = vpop.f32.mrb[61].mxu0 }
 0x174   : > { %v2302_v58 = vadd.f32 %v2301_v49, %v2300_v63  ;;  %v1473_v13 = vadd.f32 %v1472_v37, %v2936_v59  ;;  %v2303_v3 = vpop.f32.mrb[62].mxu1  ;;  %v2385_v53 = vpop.f32.mrb[62].mxu0 }
 0x175   : > { %v1484_v57 = vadd.f32 %v2385_v53, %v2948_v21  ;;  %v2304_v61 = vpop.f32.mrb[63].mxu1  ;;  %v1475_v62 = vpop.f32.mrb[63].mxu0  ;;  %v1199_v21 = vadd.f32 %v2865_v60, %v2884_v42 }
 0x176   : > { %v2305_v19 = vadd.f32 %v2304_v61, %v2303_v3  ;;  %v1476_v0 = vadd.f32 %v1475_v62, %v2938_v34  ;;  %v1352_v23 = vadd.f32 %v2302_v58, %v1191_v9  ;;  %v1215_v3 = vadd.f32 %v2873_v20, %v2884_v42 }
 0x177   : > { %v2049_v4 = vpack.c.bf16 %v1484_v57, %v1481_v27 }
 0x178   : > { %v2044_v5 = vpack.c.bf16 %v1476_v0, %v1473_v13  ;;  %v1355_v6 = vadd.f32 %v2305_v19, %v1194_v56  ;;  %v1218_v19 = vadd.f32 %v2875_v26, %v2884_v42 }
 0x179   : > { %2097 = vst [vmem:[%s2961_s12 + $0x38] sm:$0xff] %v2049_v4  }
 0x17a   : > { %2096 = vst [vmem:[%s2961_s12 + $0x30] sm:$0xff] %v2044_v5   ;;  %v2306_v39 = vpop.f32.mrb[64].mxu1  ;;  %v2388_v59 = vpop.f32.mrb[64].mxu0 }
 0x17b   : > { %v1497_v16 = vadd.f32 %v2388_v59, %v1336_v18  ;;  %v2307_v30 = vpop.f32.mrb[65].mxu1  ;;  %v1488_v51 = vpop.f32.mrb[65].mxu0 }
 0x17c   : > { %v2308_v10 = vadd.f32 %v2307_v30, %v2306_v39  ;;  %v1489_v17 = vadd.f32 %v1488_v51, %v2964_v55  ;;  %v2309_v34 = vpop.f32.mrb[66].mxu1  ;;  %v2389_v48 = vpop.f32.mrb[66].mxu0  ;;  %v1223_v51 = vadd.f32 %v2877_v32, %v2884_v42 }
 0x17d   : > { %v1500_v25 = vadd.f32 %v2389_v48, %v1339_v24  ;;  %v2310_v28 = vpop.f32.mrb[67].mxu1  ;;  %v1491_v31 = vpop.f32.mrb[67].mxu0  ;;  %v1207_v24 = vadd.f32 %v2869_v8, %v2884_v42 }
 0x17e   : > { %v2311_v54 = vadd.f32 %v2310_v28, %v2309_v34  ;;  %v1492_v18 = vadd.f32 %v1491_v31, %v2966_v12  ;;  %v1360_v52 = vadd.f32 %v2308_v10, %v1199_v21 }
 0x17f   : > { %v2059_v15 = vpack.c.bf16 %v1500_v25, %v1497_v16  ;;  %v1226_v25 = vadd.f32 %v2879_v38, %v2884_v42 }
 0x180   : > { %v2054_v35 = vpack.c.bf16 %v1492_v18, %v1489_v17  ;;  %v1363_v33 = vadd.f32 %v2311_v54, %v1202_v44 }
 0x181   : > { %2099 = vst [vmem:[%s2961_s12 + $0x48] sm:$0xff] %v2059_v15  }
 0x182   : > { %2098 = vst [vmem:[%s2961_s12 + $0x40] sm:$0xff] %v2054_v35   ;;  %v2312_v60 = vpop.f32.mrb[68].mxu1  ;;  %v2392_v29 = vpop.f32.mrb[68].mxu0 }
 0x183   : > { %v1513_v55 = vadd.f32 %v2392_v29, %v1352_v23  ;;  %v2313_v40 = vpop.f32.mrb[69].mxu1  ;;  %v1504_v50 = vpop.f32.mrb[69].mxu0 }
 0x184   : > { %v2314_v2 = vadd.f32 %v2313_v40, %v2312_v60  ;;  %v1505_v22 = vadd.f32 %v1504_v50, %v1344_v45  ;;  %v2315_v41 = vpop.f32.mrb[70].mxu1  ;;  %v2393_v12 = vpop.f32.mrb[70].mxu0 }
 0x185   : > { %v1516_v1 = vadd.f32 %v2393_v12, %v1355_v6  ;;  %v2316_v36 = vpop.f32.mrb[71].mxu1  ;;  %v1507_v43 = vpop.f32.mrb[71].mxu0 }
 0x186   : > { %v2317_v11 = vadd.f32 %v2316_v36, %v2315_v41  ;;  %v1508_v63 = vadd.f32 %v1507_v43, %v1347_v47  ;;  %v1368_v7 = vadd.f32 %v2314_v2, %v1207_v24 }
 0x187   : > { %v2069_v27 = vpack.c.bf16 %v1516_v1, %v1513_v55 }
 0x188   : > { %v2064_v49 = vpack.c.bf16 %v1508_v63, %v1505_v22  ;;  %v1371_v37 = vadd.f32 %v2317_v11, %v1210_v46 }
 0x189   : > { %2101 = vst [vmem:[%s2961_s12 + $0x58] sm:$0xff] %v2069_v27  }
 0x18a   : > { %2100 = vst [vmem:[%s2961_s12 + $0x50] sm:$0xff] %v2064_v49   ;;  %v2318_v8 = vpop.f32.mrb[72].mxu1  ;;  %v2396_v9 = vpop.f32.mrb[72].mxu0 }
 0x18b   : > { %v1529_v58 = vadd.f32 %v2396_v9, %v1368_v7  ;;  %v2319_v45 = vpop.f32.mrb[73].mxu1  ;;  %v1520_v13 = vpop.f32.mrb[73].mxu0 }
 0x18c   : > { %v2320_v53 = vadd.f32 %v2319_v45, %v2318_v8  ;;  %v1521_v14 = vadd.f32 %v1520_v13, %v1360_v52  ;;  %v2321_v57 = vpop.f32.mrb[74].mxu1  ;;  %v2397_v47 = vpop.f32.mrb[74].mxu0 }
 0x18d   : > { %v1532_v61 = vadd.f32 %v2397_v47, %v1371_v37  ;;  %v2322_v62 = vpop.f32.mrb[75].mxu1  ;;  %v1523_v56 = vpop.f32.mrb[75].mxu0 }
 0x18e   : > { %v2323_v0 = vadd.f32 %v2322_v62, %v2321_v57  ;;  %v1524_v23 = vadd.f32 %v1523_v56, %v1363_v33  ;;  %v1376_v4 = vadd.f32 %v2320_v53, %v1215_v3 }
 0x18f   : > { %v2079_v5 = vpack.c.bf16 %v1532_v61, %v1529_v58 }
 0x190   : > { %v2074_v6 = vpack.c.bf16 %v1524_v23, %v1521_v14  ;;  %v1379_v39 = vadd.f32 %v2323_v0, %v1218_v19 }
 0x191   : > { %2103 = vst [vmem:[%s2961_s12 + $0x68] sm:$0xff] %v2079_v5  }
 0x192   : > { %2102 = vst [vmem:[%s2961_s12 + $0x60] sm:$0xff] %v2074_v6   ;;  %v2324_v20 = vpop.f32.mrb[76].mxu1  ;;  %v2400_v59 = vpop.f32.mrb[76].mxu0 }
 0x193   : > { %v2325_v16 = vpop.f32.mrb[77].mxu1  ;;  %v1536_v30 = vpop.f32.mrb[77].mxu0 }
 0x194   : > { %v2326_v21 = vadd.f32 %v2325_v16, %v2324_v20  ;;  %v1537_v10 = vadd.f32 %v1536_v30, %v1376_v4  ;;  %v2327_v26 = vpop.f32.mrb[78].mxu1  ;;  %v2401_v17 = vpop.f32.mrb[78].mxu0 }
 0x195   : > { %v2328_v34 = vpop.f32.mrb[79].mxu1  ;;  %v1539_v48 = vpop.f32.mrb[79].mxu0 }
 0x196   : > { %v1384_v28 = vadd.f32 %v2326_v21, %v1223_v51  ;;  %v2329_v31 = vadd.f32 %v2328_v34, %v2327_v26  ;;  %v1540_v44 = vadd.f32 %v1539_v48, %v1379_v39 }
 0x198   : > { %v1545_v54 = vadd.f32 %v2400_v59, %v1384_v28  ;;  %v1387_v18 = vadd.f32 %v2329_v31, %v1226_v25  ;;  %v2084_v52 = vpack.c.bf16 %v1540_v44, %v1537_v10 }
 0x19a   : > { %v1548_v15 = vadd.f32 %v2401_v17, %v1387_v18  ;;  %2104 = vst [vmem:[%s2961_s12 + $0x70] sm:$0xff] %v2084_v52  }
 0x19c   : > { %v2089_v35 = vpack.c.bf16 %v1548_v15, %v1545_v54 }
 0x19e   : > { %2105 = vst [vmem:[%s2961_s12 + $0x78] sm:$0xff] %v2089_v35  }
 0x19f PF: > { %s13_s14 = sadd.s32 1, %s2617_s14   ;;  %s3039_s12 = smov %s2613_s13 }
 0x1a0   : > { %p10_p5 = scmp.ge.s32.totalorder %s13_s14, 4   ;;  %s3040_s13 = smov %s3042_s15 }
 0x1a2   :  { %12 = sbr.rel (!%p10_p5) target bundleno = 2 (0x2), region = 68 }

// kernel: skvqgan_forward.81
= control target key start
LH: loop header
LB: loop body
LE: loop exit
PB: predicated region body
PF: predicated region fallthrough
CT: control target
= control target key end

     0   :  { %s1647_s12 = smov 0   ;;  %s1649_s13 = smov 0   ;;  %s1907_s0 = inlined_call_operand.vmem [shape: bf16[512,384], index: 0, kind: input, shape index: {}]   ;;  %s1908_s1 = inlined_call_operand.vmem [shape: bf16[384,128], index: 1, kind: input, shape index: {}]   ;;  %s1909_s2 = inlined_call_operand.vmem [shape: f32[1,128], index: 2, kind: input, shape index: {}]   ;;  %s1910_s3 = inlined_call_operand.vmem [shape: f32[512,128], index: 3, kind: output, shape index: {}]  }
   0x1   :  { %s1651_s14 = smov 0  }
   0x2 LB: > { %s25_s15 = sadd.s32 1, %s1621_s13  ;;  %p1210_p0 = scmp.ge.s32.totalorder %s1625_s14, 1  ;;  %s1625_s14 = sphi %s1651_s14, %s13_s14   ;;  %s1621_s13 = sphi %s1649_s13, %s1912_s13   ;;  %s1617_s12 = sphi %s1647_s12, %s1911_s12  }
   0x3   : > { %p27_p1 = scmp.ge.s32.totalorder %s25_s15, 2  ;;  %p170_p2 = scmp.lt.s32.totalorder %s1625_s14, 3 }
   0x5   : > { %s1914_s15 = smov (%p27_p1, %s25_s15), 0  ;;  %p171_p3 = pnand %p1210_p0, %p170_p2 }
   0x6   : > { %v1515_v0 = vld [vmem:[%s1908_s1 + $0x40] sm:$0xff] (!%p171_p3)   ;;  %s1211_s18 = sshll.u32 (!%p171_p3), %s1617_s12, 5  ;;  %v1517_v2 = vld [vmem:[%s1908_s1 + $0x48] sm:$0xff] (!%p171_p3)   ;;  %v1519_v4 = vld [vmem:[%s1908_s1 + $0x50] sm:$0xff] (!%p171_p3)  }
   0x7   : > { %174 = sbr.rel (%p171_p3) target bundleno = 349 (0x15d), region = 32  ;;  %v1516_v1 = vld [vmem:[%s1908_s1] sm:$0xff] (!%p171_p3)   ;;  %1290 = vmatprep.subr.bf16.mxu0 (!%p171_p3), %v1515_v0  ;;  %1474 = vmatprep.subr.bf16.mxu1 (!%p171_p3), %v1515_v0  ;;  %p206_p4 = scmp.lt.s32.totalorder (!%p171_p3), %s1211_s18, 63  ;;  %v1518_v3 = vld [vmem:[%s1908_s1 + $0x8] sm:$0xff] (!%p171_p3)   ;;  %v1520_v5 = vld [vmem:[%s1908_s1 + $0x10] sm:$0xff] (!%p171_p3)  }
   0x8   : > { %1291 = vmatpush3.bf16.msra.mxu0 (!%p171_p3), %v1516_v1  ;;  %1482 = vmatpush3.bf16.msra.mxu1 (!%p171_p3), %v1516_v1  ;;  %v1521_v6 = vld [vmem:[%s1908_s1 + $0x58] sm:$0xff] (!%p171_p3)   ;;  %v1523_v8 = vld [vmem:[%s1908_s1 + $0x60] sm:$0xff] (!%p171_p3)   ;;  %v1525_v10 = vld [vmem:[%s1908_s1 + $0x68] sm:$0xff] (!%p171_p3)  }
   0x9   : > { %1292 = vmatprep.subr.bf16.mxu0 (!%p171_p3), %v1517_v2  ;;  %1475 = vmatprep.subr.bf16.mxu1 (!%p171_p3), %v1517_v2  ;;  %v1522_v7 = vld [vmem:[%s1908_s1 + $0x18] sm:$0xff] (!%p171_p3)   ;;  %v1524_v9 = vld [vmem:[%s1908_s1 + $0x20] sm:$0xff] (!%p171_p3)   ;;  %v1526_v13 = vld [vmem:[%s1908_s1 + $0x28] sm:$0xff] (!%p171_p3)  }
   0xa   : > { %v1527_v14 = vld [vmem:[%s1908_s1 + $0x70] sm:$0xff] (!%p171_p3)   ;;  %v1529_v16 = vld [vmem:[%s1908_s1 + $0x78] sm:$0xff] (!%p171_p3)   ;;  %v1537_v18 = vld [vmem:[%s1908_s1 + $0x80] sm:$0xff] (!%p171_p3)  }
   0xb   : > { %v1528_v15 = vld [vmem:[%s1908_s1 + $0x30] sm:$0xff] (!%p171_p3)   ;;  %v1530_v17 = vld [vmem:[%s1908_s1 + $0x38] sm:$0xff] (!%p171_p3)   ;;  %v1538_v22 = vld [vmem:[%s1908_s1 + $0x88] sm:$0xff] (!%p171_p3)  }
   0xc   : > { %1293 = vmatpush3.bf16.msra.mxu0 (!%p171_p3), %v1518_v3  ;;  %1483 = vmatpush3.bf16.msra.mxu1 (!%p171_p3), %v1518_v3  ;;  %v1545_v25 = vld [vmem:[%s1908_s1 + $0x90] sm:$0xff] (!%p171_p3)   ;;  %v1546_v27 = vld [vmem:[%s1908_s1 + $0x98] sm:$0xff] (!%p171_p3)   ;;  %v1553_v30 = vld [vmem:[%s1908_s1 + $0xa0] sm:$0xff] (!%p171_p3)  }
   0xd   : > { %1294 = vmatprep.subr.bf16.mxu0 (!%p171_p3), %v1519_v4  ;;  %1476 = vmatprep.subr.bf16.mxu1 (!%p171_p3), %v1519_v4  ;;  %v1554_v33 = vld [vmem:[%s1908_s1 + $0xa8] sm:$0xff] (!%p171_p3)   ;;  %v1561_v36 = vld [vmem:[%s1908_s1 + $0xb0] sm:$0xff] (!%p171_p3)   ;;  %v1562_v40 = vld [vmem:[%s1908_s1 + $0xb8] sm:$0xff] (!%p171_p3)  }
   0xe   : > { %s1916_s18 = smov (!%p206_p4, %s1211_s18), 63 }
   0xf   : > { %s1490_s4 = smul.u32 12, %s1916_s18 }
  0x10   : > { %1295 = vmatpush3.bf16.msra.mxu0 %v1520_v5  ;;  %1484 = vmatpush3.bf16.msra.mxu1 %v1520_v5 }
  0x11   : > { %1296 = vmatprep.subr.bf16.mxu0 %v1521_v6  ;;  %1477 = vmatprep.subr.bf16.mxu1 %v1521_v6  ;;  %s1698_s11 = scalar_lea.vmem %s1907_s0, %s1490_s4 }
  0x12   : > { %v1533_v11 = vld [vmem:[%s1698_s11 + $0x4] ss:$12 sps:$4 sm:$0xff]   ;;  %v1531_v19 = vld [vmem:[%s1698_s11] ss:$12 sps:$4 sm:$0xff]   ;;  %v1539_v21 = vld [vmem:[%s1698_s11 + $0x1c] ss:$12 sps:$4 sm:$0xff]  }
  0x13   : > { %v1536_v12 = vld [vmem:[%s1698_s11 + $0x124] ss:$12 sps:$4 sm:$0xff]   ;;  %780 = vmatprep.mubr.bf16.mxu0 %v1533_v11  ;;  %v1534_v20 = vld [vmem:[%s1698_s11 + $0x120] ss:$12 sps:$4 sm:$0xff]   ;;  %v1541_v23 = vld [vmem:[%s1698_s11 + $0x13c] ss:$12 sps:$4 sm:$0xff]  }
  0x14   : > { %1297 = vmatpush3.bf16.msra.mxu0 %v1522_v7  ;;  %1485 = vmatpush3.bf16.msra.mxu1 %v1522_v7  ;;  %v1543_v24 = vld [vmem:[%s1698_s11 + $0x18] ss:$12 sps:$4 sm:$0xff]   ;;  %v1547_v28 = vld [vmem:[%s1698_s11 + $0x34] ss:$12 sps:$4 sm:$0xff]   ;;  %v1551_v31 = vld [vmem:[%s1698_s11 + $0x30] ss:$12 sps:$4 sm:$0xff]  }
  0x15   : > { %1298 = vmatprep.subr.bf16.mxu0 %v1523_v8  ;;  %1478 = vmatprep.subr.bf16.mxu1 %v1523_v8  ;;  %v1544_v26 = vld [vmem:[%s1698_s11 + $0x138] ss:$12 sps:$4 sm:$0xff]   ;;  %v1549_v29 = vld [vmem:[%s1698_s11 + $0x154] ss:$12 sps:$4 sm:$0xff]   ;;  %v1552_v32 = vld [vmem:[%s1698_s11 + $0x150] ss:$12 sps:$4 sm:$0xff]  }
  0x16   : > { %876 = vmatprep.mubr.bf16.mxu1 %v1536_v12  ;;  %v1555_v34 = vld [vmem:[%s1698_s11 + $0x4c] ss:$12 sps:$4 sm:$0xff]   ;;  %v1559_v37 = vld [vmem:[%s1698_s11 + $0x48] ss:$12 sps:$4 sm:$0xff]   ;;  %v1563_v39 = vld [vmem:[%s1698_s11 + $0x64] ss:$12 sps:$4 sm:$0xff]  }
  0x17   : > { %v1557_v35 = vld [vmem:[%s1698_s11 + $0x16c] ss:$12 sps:$4 sm:$0xff]   ;;  %v1560_v38 = vld [vmem:[%s1698_s11 + $0x168] ss:$12 sps:$4 sm:$0xff]   ;;  %v1572_v47 = vld [vmem:[%s1698_s11 + $0x50] ss:$12 sps:$4 sm:$0xff]  }
  0x18   : > { %1299 = vmatpush3.bf16.msra.mxu0 %v1524_v9  ;;  %1486 = vmatpush3.bf16.msra.mxu1 %v1524_v9  ;;  %v1565_v41 = vld [vmem:[%s1698_s11 + $0x8] ss:$12 sps:$4 sm:$0xff]   ;;  %v1566_v42 = vld [vmem:[%s1698_s11 + $0x60] ss:$12 sps:$4 sm:$0xff]   ;;  %v1570_v45 = vld [vmem:[%s1698_s11 + $0x38] ss:$12 sps:$4 sm:$0xff]  }
  0x19   : > { %1300 = vmatprep.subr.bf16.mxu0 %v1525_v10  ;;  %1479 = vmatprep.subr.bf16.mxu1 %v1525_v10  ;;  %v1567_v43 = vld [vmem:[%s1698_s11 + $0x20] ss:$12 sps:$4 sm:$0xff]   ;;  %v1568_v44 = vld [vmem:[%s1698_s11 + $0x7c] ss:$12 sps:$4 sm:$0xff]   ;;  %v1571_v46 = vld [vmem:[%s1698_s11 + $0x78] ss:$12 sps:$4 sm:$0xff]  }
  0x1a   : > { %v1573_v48 = vld [vmem:[%s1698_s11 + $0x94] ss:$12 sps:$4 sm:$0xff]   ;;  %v1576_v50 = vld [vmem:[%s1698_s11 + $0x90] ss:$12 sps:$4 sm:$0xff]   ;;  %v1578_v52 = vld [vmem:[%s1698_s11 + $0xac] ss:$12 sps:$4 sm:$0xff]  }
  0x1b   : > { %v1575_v49 = vld [vmem:[%s1698_s11 + $0x68] ss:$12 sps:$4 sm:$0xff]   ;;  %v1577_v51 = vld [vmem:[%s1698_s11 + $0x80] ss:$12 sps:$4 sm:$0xff]   ;;  %v1580_v53 = vld [vmem:[%s1698_s11 + $0x98] ss:$12 sps:$4 sm:$0xff]  }
  0x1c   : > { %1301 = vmatpush3.bf16.msra.mxu0 %v1526_v13  ;;  %1487 = vmatpush3.bf16.msra.mxu1 %v1526_v13  ;;  %v1581_v54 = vld [vmem:[%s1698_s11 + $0xa8] ss:$12 sps:$4 sm:$0xff]   ;;  %v1582_v55 = vld [vmem:[%s1698_s11 + $0xb0] ss:$12 sps:$4 sm:$0xff]   ;;  %v1586_v58 = vld [vmem:[%s1698_s11 + $0xc0] ss:$12 sps:$4 sm:$0xff]  }
  0x1d   : > { %1302 = vmatprep.subr.bf16.mxu0 %v1527_v14  ;;  %1480 = vmatprep.subr.bf16.mxu1 %v1527_v14  ;;  %v1583_v56 = vld [vmem:[%s1698_s11 + $0xc4] ss:$12 sps:$4 sm:$0xff]   ;;  %v1585_v57 = vld [vmem:[%s1698_s11 + $0xc8] ss:$12 sps:$4 sm:$0xff]   ;;  %v1587_v59 = vld [vmem:[%s1698_s11 + $0xe0] ss:$12 sps:$4 sm:$0xff]  }
  0x1e   : > { %v1588_v60 = vld [vmem:[%s1698_s11 + $0xdc] ss:$12 sps:$4 sm:$0xff]   ;;  %v1590_v61 = vld [vmem:[%s1698_s11 + $0xf8] ss:$12 sps:$4 sm:$0xff]   ;;  %v1593_v0 = vld [vmem:[%s1698_s11 + $0xf4] ss:$12 sps:$4 sm:$0xff]  }
  0x1f   : > { %v1591_v62 = vld [vmem:[%s1698_s11 + $0xd8] ss:$12 sps:$4 sm:$0xff]   ;;  %v1592_v63 = vld [vmem:[%s1698_s11 + $0x110] ss:$12 sps:$4 sm:$0xff]   ;;  %v1595_v1 = vld [vmem:[%s1698_s11 + $0x128] ss:$12 sps:$4 sm:$0xff]  }
  0x20   : > { %1303 = vmatpush3.bf16.msra.mxu0 %v1528_v15  ;;  %1488 = vmatpush3.bf16.msra.mxu1 %v1528_v15  ;;  %v1596_v2 = vld [vmem:[%s1698_s11 + $0xf0] ss:$12 sps:$4 sm:$0xff]   ;;  %v1597_v3 = vld [vmem:[%s1698_s11 + $0x140] ss:$12 sps:$4 sm:$0xff]   ;;  %v1600_v5 = vld [vmem:[%s1698_s11 + $0x158] ss:$12 sps:$4 sm:$0xff]  }
  0x21   : > { %1304 = vmatprep.subr.bf16.mxu0 %v1529_v16  ;;  %1481 = vmatprep.subr.bf16.mxu1 %v1529_v16  ;;  %v1598_v4 = vld [vmem:[%s1698_s11 + $0x10c] ss:$12 sps:$4 sm:$0xff]   ;;  %v1601_v6 = vld [vmem:[%s1698_s11 + $0x108] ss:$12 sps:$4 sm:$0xff]   ;;  %v1602_v7 = vld [vmem:[%s1698_s11 + $0x170] ss:$12 sps:$4 sm:$0xff]  }
  0x22   : > { %s1214_s11 = sshll.u32 %s1916_s18, 3 }
  0x23   : > { %s1819_s28 = scalar_lea.vmem %s1910_s3, %s1214_s11 }
  0x24   : > { %1305 = vmatpush3.bf16.msra.mxu0 %v1530_v17  ;;  %1489 = vmatpush3.bf16.msra.mxu1 %v1530_v17 }
  0x25   : > { %1426 = vmatprep.subr.bf16.mxu1 %v1537_v18 }
  0x27   : > { %781 = vmatmul.mubr.bf16.vlgmr.msra.gmra.mrb[0].mxu0 %v1531_v19  ;;  %877 = vmatmul.mubr.bf16.vlgmr.msra.gmra.mrb[0].mxu1 %v1534_v20 }
  0x28   : > { %1427 = vmatpush3.bf16.msra.mxu1 %v1537_v18  ;;  %788 = vmatprep.mubr.bf16.mxu0 %v1539_v21 }
  0x29   : > { %1428 = vmatprep.subr.bf16.mxu1 %v1538_v22  ;;  %884 = vmatprep.mubr.bf16.mxu1 %v1541_v23 }
  0x2c   : > { %1429 = vmatpush3.bf16.msra.mxu1 %v1538_v22 }
  0x2d   : > { %1430 = vmatprep.subr.bf16.mxu1 %v1545_v25 }
  0x2f   : > { %789 = vmatmul.mubr.bf16.gmra.mrb[4].mxu0 %v1543_v24  ;;  %885 = vmatmul.mubr.bf16.gmra.mrb[4].mxu1 %v1544_v26 }
  0x30   : > { %1431 = vmatpush3.bf16.msra.mxu1 %v1545_v25  ;;  %796 = vmatprep.mubr.bf16.mxu0 %v1547_v28 }
  0x31   : > { %1432 = vmatprep.subr.bf16.mxu1 %v1546_v27  ;;  %892 = vmatprep.mubr.bf16.mxu1 %v1549_v29 }
  0x34   : > { %1433 = vmatpush3.bf16.msra.mxu1 %v1546_v27 }
  0x35   : > { %1434 = vmatprep.subr.bf16.mxu1 %v1553_v30 }
  0x37   : > { %797 = vmatmul.mubr.bf16.gmra.mrb[8].mxu0 %v1551_v31  ;;  %893 = vmatmul.mubr.bf16.gmra.mrb[8].mxu1 %v1552_v32 }
  0x38   : > { %1435 = vmatpush3.bf16.msra.mxu1 %v1553_v30  ;;  %804 = vmatprep.mubr.bf16.mxu0 %v1555_v34 }
  0x39   : > { %1436 = vmatprep.subr.bf16.mxu1 %v1554_v33  ;;  %900 = vmatprep.mubr.bf16.mxu1 %v1557_v35 }
  0x3c   : > { %1437 = vmatpush3.bf16.msra.mxu1 %v1554_v33 }
  0x3d   : > { %1438 = vmatprep.subr.bf16.mxu1 %v1561_v36 }
  0x3f   : > { %805 = vmatmul.mubr.bf16.gmra.mrb[12].mxu0 %v1559_v37  ;;  %901 = vmatmul.mubr.bf16.gmra.mrb[12].mxu1 %v1560_v38 }
  0x40   : > { %1439 = vmatpush3.bf16.msra.mxu1 %v1561_v36  ;;  %812 = vmatprep.mubr.bf16.mxu0 %v1563_v39 }
  0x41   : > { %1440 = vmatprep.subr.bf16.mxu1 %v1562_v40  ;;  %1442 = vmatprep.mubr.bf16.mxu1 %v1565_v41 }
  0x44   : > { %1441 = vmatpush3.bf16.msra.mxu1 %v1562_v40 }
  0x47   : > { %813 = vmatmul.mubr.bf16.gmra.mrb[16].mxu0 %v1566_v42  ;;  %1443 = vmatmul.mubr.bf16.vlgmr.msra.gmra.mrb[16].mxu1 %v1567_v43 }
  0x48   : > { %820 = vmatprep.mubr.bf16.mxu0 %v1568_v44  ;;  %1446 = vmatprep.mubr.bf16.mxu1 %v1570_v45 }
  0x4f   : > { %821 = vmatmul.mubr.bf16.gmra.mrb[20].mxu0 %v1571_v46  ;;  %1447 = vmatmul.mubr.bf16.gmra.mrb[20].mxu1 %v1572_v47 }
  0x50   : > { %828 = vmatprep.mubr.bf16.mxu0 %v1573_v48  ;;  %1450 = vmatprep.mubr.bf16.mxu1 %v1575_v49 }
  0x57   : > { %829 = vmatmul.mubr.bf16.gmra.mrb[24].mxu0 %v1576_v50  ;;  %1451 = vmatmul.mubr.bf16.gmra.mrb[24].mxu1 %v1577_v51 }
  0x58   : > { %836 = vmatprep.mubr.bf16.mxu0 %v1578_v52  ;;  %1454 = vmatprep.mubr.bf16.mxu1 %v1580_v53 }
  0x5f   : > { %837 = vmatmul.mubr.bf16.gmra.mrb[28].mxu0 %v1581_v54  ;;  %1455 = vmatmul.mubr.bf16.gmra.mrb[28].mxu1 %v1582_v55 }
  0x60   : > { %844 = vmatprep.mubr.bf16.mxu0 %v1583_v56  ;;  %1458 = vmatprep.mubr.bf16.mxu1 %v1585_v57  ;;  %v1813_v56 = vld [vmem:[%s1909_s2] ss:$0 sm:$0xff] }
  0x67   : > { %845 = vmatmul.mubr.bf16.gmra.mrb[32].mxu0 %v1586_v58  ;;  %1459 = vmatmul.mubr.bf16.gmra.mrb[32].mxu1 %v1587_v59 }
  0x68   : > { %852 = vmatprep.mubr.bf16.mxu0 %v1588_v60  ;;  %1462 = vmatprep.mubr.bf16.mxu1 %v1590_v61 }
  0x6f   : > { %853 = vmatmul.mubr.bf16.gmra.mrb[36].mxu0 %v1591_v62  ;;  %1463 = vmatmul.mubr.bf16.gmra.mrb[36].mxu1 %v1592_v63 }
  0x70   : > { %860 = vmatprep.mubr.bf16.mxu0 %v1593_v0  ;;  %1466 = vmatprep.mubr.bf16.mxu1 %v1595_v1 }
  0x77   : > { %861 = vmatmul.mubr.bf16.gmra.mrb[40].mxu0 %v1596_v2  ;;  %1467 = vmatmul.mubr.bf16.gmra.mrb[40].mxu1 %v1597_v3 }
  0x78   : > { %868 = vmatprep.mubr.bf16.mxu0 %v1598_v4  ;;  %1470 = vmatprep.mubr.bf16.mxu1 %v1600_v5 }
  0x7f   : > { %869 = vmatmul.mubr.bf16.gmra.mrb[44].mxu0 %v1601_v6  ;;  %1471 = vmatmul.mubr.bf16.gmra.mrb[44].mxu1 %v1602_v7 }
  0xfa   : > { %v1306_v8 = vpop.f32.mrb[0].mxu0  ;;  %v1378_v9 = vpop.f32.mrb[0].mxu1 }
  0xfb   : > { %v1307_v10 = vpop.f32.mrb[1].mxu0  ;;  %v1379_v11 = vpop.f32.mrb[1].mxu1 }
  0xfc   : > { %v1308_v12 = vadd.f32 %v1307_v10, %v1306_v8  ;;  %v1309_v13 = vpop.f32.mrb[2].mxu0  ;;  %v1793_v14 = vadd.f32 %v1379_v11, %v1378_v9  ;;  %v1381_v15 = vpop.f32.mrb[2].mxu1 }
  0xfd   : > { %v1310_v16 = vpop.f32.mrb[3].mxu0  ;;  %v1382_v17 = vpop.f32.mrb[3].mxu1 }
  0xfe   : > { %v1311_v18 = vadd.f32 %v1310_v16, %v1309_v13  ;;  %v1795_v19 = vadd.f32 %v1382_v17, %v1381_v15  ;;  %v783_v60 = vadd.f32 %v1308_v12, %v1813_v56 }
 0x100   : > { %v786_v5 = vadd.f32 %v1311_v18, %v1813_v56 }
 0x102   : > { %v1312_v20 = vpop.f32.mrb[4].mxu0  ;;  %v1384_v21 = vpop.f32.mrb[4].mxu1 }
 0x103   : > { %v1313_v22 = vpop.f32.mrb[5].mxu0  ;;  %v1385_v23 = vpop.f32.mrb[5].mxu1 }
 0x104   : > { %v1314_v24 = vadd.f32 %v1313_v22, %v1312_v20  ;;  %v1315_v25 = vpop.f32.mrb[6].mxu0  ;;  %v1797_v26 = vadd.f32 %v1385_v23, %v1384_v21  ;;  %v1387_v27 = vpop.f32.mrb[6].mxu1 }
 0x105   : > { %v1316_v28 = vpop.f32.mrb[7].mxu0  ;;  %v1388_v29 = vpop.f32.mrb[7].mxu1 }
 0x106   : > { %v1317_v30 = vadd.f32 %v1316_v28, %v1315_v25  ;;  %v1799_v31 = vadd.f32 %v1388_v29, %v1387_v27  ;;  %v791_v57 = vadd.f32 %v1314_v24, %v1813_v56 }
 0x108   : > { %v794_v0 = vadd.f32 %v1317_v30, %v1813_v56 }
 0x10a   : > { %v1318_v32 = vpop.f32.mrb[8].mxu0  ;;  %v1390_v33 = vpop.f32.mrb[8].mxu1 }
 0x10b   : > { %v1319_v34 = vpop.f32.mrb[9].mxu0  ;;  %v1391_v35 = vpop.f32.mrb[9].mxu1 }
 0x10c   : > { %v1320_v36 = vadd.f32 %v1319_v34, %v1318_v32  ;;  %v1321_v37 = vpop.f32.mrb[10].mxu0  ;;  %v1801_v38 = vadd.f32 %v1391_v35, %v1390_v33  ;;  %v1393_v39 = vpop.f32.mrb[10].mxu1 }
 0x10d   : > { %v1322_v40 = vpop.f32.mrb[11].mxu0  ;;  %v1394_v41 = vpop.f32.mrb[11].mxu1 }
 0x10e   : > { %v1323_v42 = vadd.f32 %v1322_v40, %v1321_v37  ;;  %v1803_v43 = vadd.f32 %v1394_v41, %v1393_v39  ;;  %v799_v15 = vadd.f32 %v1320_v36, %v1813_v56 }
 0x110   : > { %v802_v25 = vadd.f32 %v1323_v42, %v1813_v56 }
 0x112   : > { %v1324_v44 = vpop.f32.mrb[12].mxu0  ;;  %v1396_v45 = vpop.f32.mrb[12].mxu1 }
 0x113   : > { %v1325_v46 = vpop.f32.mrb[13].mxu0  ;;  %v1397_v47 = vpop.f32.mrb[13].mxu1 }
 0x114   : > { %v1326_v48 = vadd.f32 %v1325_v46, %v1324_v44  ;;  %v1327_v49 = vpop.f32.mrb[14].mxu0  ;;  %v1805_v50 = vadd.f32 %v1397_v47, %v1396_v45  ;;  %v1399_v51 = vpop.f32.mrb[14].mxu1 }
 0x115   : > { %v1328_v52 = vpop.f32.mrb[15].mxu0  ;;  %v1400_v53 = vpop.f32.mrb[15].mxu1 }
 0x116   : > { %v1329_v54 = vadd.f32 %v1328_v52, %v1327_v49  ;;  %v1807_v55 = vadd.f32 %v1400_v53, %v1399_v51  ;;  %v807_v11 = vadd.f32 %v1326_v48, %v1813_v56 }
 0x118   : > { %v810_v20 = vadd.f32 %v1329_v54, %v1813_v56 }
 0x11a   : > { %v1330_v58 = vpop.f32.mrb[16].mxu0  ;;  %v1444_v59 = vpop.f32.mrb[16].mxu1 }
 0x11b   : > { %v952_v61 = vadd.f32 %v1444_v59, %v791_v57  ;;  %v1331_v62 = vpop.f32.mrb[17].mxu0  ;;  %v943_v63 = vpop.f32.mrb[17].mxu1 }
 0x11c   : > { %v1332_v1 = vadd.f32 %v1331_v62, %v1330_v58  ;;  %v944_v2 = vadd.f32 %v943_v63, %v783_v60  ;;  %v1333_v3 = vpop.f32.mrb[18].mxu0  ;;  %v1445_v4 = vpop.f32.mrb[18].mxu1 }
 0x11d   : > { %1072 = vst [vmem:[%s1819_s28 + $0x10] sm:$0xff] %v952_v61  ;;  %v955_v6 = vadd.f32 %v1445_v4, %v794_v0  ;;  %v1334_v7 = vpop.f32.mrb[19].mxu0  ;;  %v946_v8 = vpop.f32.mrb[19].mxu1 }
 0x11e   : > { %1070 = vst [vmem:[%s1819_s28] sm:$0xff] %v944_v2  ;;  %v1335_v9 = vadd.f32 %v1334_v7, %v1333_v3  ;;  %v947_v10 = vadd.f32 %v946_v8, %v786_v5  ;;  %v815_v36 = vadd.f32 %v1332_v1, %v1813_v56 }
 0x11f   : > { %1073 = vst [vmem:[%s1819_s28 + $0x18] sm:$0xff] %v955_v6 }
 0x120   : > { %1071 = vst [vmem:[%s1819_s28 + $0x8] sm:$0xff] %v947_v10  ;;  %v818_v47 = vadd.f32 %v1335_v9, %v1813_v56 }
 0x122   : > { %v1336_v12 = vpop.f32.mrb[20].mxu0  ;;  %v1448_v13 = vpop.f32.mrb[20].mxu1 }
 0x123   : > { %v968_v16 = vadd.f32 %v1448_v13, %v807_v11  ;;  %v1337_v17 = vpop.f32.mrb[21].mxu0  ;;  %v959_v18 = vpop.f32.mrb[21].mxu1 }
 0x124   : > { %v1338_v21 = vadd.f32 %v1337_v17, %v1336_v12  ;;  %v960_v22 = vadd.f32 %v959_v18, %v799_v15  ;;  %v1339_v23 = vpop.f32.mrb[22].mxu0  ;;  %v1449_v24 = vpop.f32.mrb[22].mxu1 }
 0x125   : > { %1076 = vst [vmem:[%s1819_s28 + $0x30] sm:$0xff] %v968_v16  ;;  %v971_v27 = vadd.f32 %v1449_v24, %v810_v20  ;;  %v1340_v28 = vpop.f32.mrb[23].mxu0  ;;  %v962_v29 = vpop.f32.mrb[23].mxu1 }
 0x126   : > { %1074 = vst [vmem:[%s1819_s28 + $0x20] sm:$0xff] %v960_v22  ;;  %v1341_v30 = vadd.f32 %v1340_v28, %v1339_v23  ;;  %v963_v32 = vadd.f32 %v962_v29, %v802_v25  ;;  %v823_v33 = vadd.f32 %v1338_v21, %v1813_v56 }
 0x127   : > { %1077 = vst [vmem:[%s1819_s28 + $0x38] sm:$0xff] %v971_v27 }
 0x128   : > { %1075 = vst [vmem:[%s1819_s28 + $0x28] sm:$0xff] %v963_v32  ;;  %v826_v41 = vadd.f32 %v1341_v30, %v1813_v56 }
 0x12a   : > { %v1342_v34 = vpop.f32.mrb[24].mxu0  ;;  %v1452_v35 = vpop.f32.mrb[24].mxu1 }
 0x12b   : > { %v984_v37 = vadd.f32 %v1452_v35, %v823_v33  ;;  %v1343_v39 = vpop.f32.mrb[25].mxu0  ;;  %v975_v40 = vpop.f32.mrb[25].mxu1 }
 0x12c   : > { %v1344_v42 = vadd.f32 %v1343_v39, %v1342_v34  ;;  %v976_v44 = vadd.f32 %v975_v40, %v815_v36  ;;  %v1345_v45 = vpop.f32.mrb[26].mxu0  ;;  %v1453_v46 = vpop.f32.mrb[26].mxu1 }
 0x12d   : > { %1080 = vst [vmem:[%s1819_s28 + $0x50] sm:$0xff] %v984_v37  ;;  %v987_v48 = vadd.f32 %v1453_v46, %v826_v41  ;;  %v1346_v49 = vpop.f32.mrb[27].mxu0  ;;  %v978_v51 = vpop.f32.mrb[27].mxu1 }
 0x12e   : > { %1078 = vst [vmem:[%s1819_s28 + $0x40] sm:$0xff] %v976_v44  ;;  %v1347_v52 = vadd.f32 %v1346_v49, %v1345_v45  ;;  %v979_v53 = vadd.f32 %v978_v51, %v818_v47  ;;  %v831_v58 = vadd.f32 %v1344_v42, %v1813_v56  ;;  %v887_v42 = vadd.f32 %v1797_v26, %v1813_v56 }
 0x12f   : > { %1081 = vst [vmem:[%s1819_s28 + $0x58] sm:$0xff] %v987_v48  ;;  %v879_v47 = vadd.f32 %v1793_v14, %v1813_v56 }
 0x130   : > { %1079 = vst [vmem:[%s1819_s28 + $0x48] sm:$0xff] %v979_v53  ;;  %v834_v1 = vadd.f32 %v1347_v52, %v1813_v56  ;;  %v890_v52 = vadd.f32 %v1799_v31, %v1813_v56 }
 0x132   : > { %v1348_v54 = vpop.f32.mrb[28].mxu0  ;;  %v1456_v57 = vpop.f32.mrb[28].mxu1 }
 0x133   : > { %v1349_v59 = vpop.f32.mrb[29].mxu0  ;;  %v991_v60 = vpop.f32.mrb[29].mxu1 }
 0x134   : > { %v1350_v61 = vadd.f32 %v1349_v59, %v1348_v54  ;;  %v992_v62 = vadd.f32 %v991_v60, %v831_v58  ;;  %v1351_v63 = vpop.f32.mrb[30].mxu0  ;;  %v1457_v0 = vpop.f32.mrb[30].mxu1  ;;  %v882_v58 = vadd.f32 %v1795_v19, %v1813_v56 }
 0x135   : > { %v1352_v2 = vpop.f32.mrb[31].mxu0  ;;  %v994_v3 = vpop.f32.mrb[31].mxu1 }
 0x136   : > { %v839_v4 = vadd.f32 %v1350_v61, %v1813_v56  ;;  %1082 = vst [vmem:[%s1819_s28 + $0x60] sm:$0xff] %v992_v62  ;;  %v1353_v5 = vadd.f32 %v1352_v2, %v1351_v63  ;;  %v995_v6 = vadd.f32 %v994_v3, %v834_v1  ;;  %v903_v1 = vadd.f32 %v1805_v50, %v1813_v56 }
 0x138   : > { %v1000_v7 = vadd.f32 %v1456_v57, %v839_v4  ;;  %v842_v8 = vadd.f32 %v1353_v5, %v1813_v56  ;;  %1083 = vst [vmem:[%s1819_s28 + $0x68] sm:$0xff] %v995_v6  ;;  %v895_v4 = vadd.f32 %v1801_v38, %v1813_v56 }
 0x13a   : > { %1084 = vst [vmem:[%s1819_s28 + $0x70] sm:$0xff] %v1000_v7  ;;  %v1003_v9 = vadd.f32 %v1457_v0, %v842_v8  ;;  %v1354_v10 = vpop.f32.mrb[32].mxu0  ;;  %v1460_v11 = vpop.f32.mrb[32].mxu1  ;;  %v906_v8 = vadd.f32 %v1807_v55, %v1813_v56 }
 0x13b   : > { %v1355_v12 = vpop.f32.mrb[33].mxu0  ;;  %v1007_v13 = vpop.f32.mrb[33].mxu1 }
 0x13c   : > { %1085 = vst [vmem:[%s1819_s28 + $0x78] sm:$0xff] %v1003_v9  ;;  %v1356_v15 = vadd.f32 %v1355_v12, %v1354_v10  ;;  %v1357_v16 = vpop.f32.mrb[34].mxu0  ;;  %v1461_v17 = vpop.f32.mrb[34].mxu1  ;;  %v898_v12 = vadd.f32 %v1803_v43, %v1813_v56 }
 0x13d   : > { %v1358_v18 = vpop.f32.mrb[35].mxu0  ;;  %v1010_v20 = vpop.f32.mrb[35].mxu1 }
 0x13e   : > { %v847_v21 = vadd.f32 %v1356_v15, %v1813_v56  ;;  %v1359_v22 = vadd.f32 %v1358_v18, %v1357_v16 }
 0x140   : > { %v1008_v23 = vadd.f32 %v1007_v13, %v847_v21  ;;  %v850_v24 = vadd.f32 %v1359_v22, %v1813_v56 }
 0x142   : > { %1086 = vst [vmem:[%s1819_s28 + $0x80] sm:$0xff] %v1008_v23  ;;  %v1011_v25 = vadd.f32 %v1010_v20, %v850_v24  ;;  %v1360_v27 = vpop.f32.mrb[36].mxu0  ;;  %v1855_v28 = vpop.f32.mrb[36].mxu1 }
 0x143   : > { %v1361_v29 = vpop.f32.mrb[37].mxu0  ;;  %v1023_v30 = vpop.f32.mrb[37].mxu1 }
 0x144   : > { %1087 = vst [vmem:[%s1819_s28 + $0x88] sm:$0xff] %v1011_v25  ;;  %v1362_v32 = vadd.f32 %v1361_v29, %v1360_v27  ;;  %v1363_v33 = vpop.f32.mrb[38].mxu0  ;;  %v1858_v34 = vpop.f32.mrb[38].mxu1 }
 0x145   : > { %v1364_v35 = vpop.f32.mrb[39].mxu0  ;;  %v1026_v36 = vpop.f32.mrb[39].mxu1 }
 0x146   : > { %v855_v37 = vadd.f32 %v1362_v32, %v1813_v56  ;;  %v1365_v39 = vadd.f32 %v1364_v35, %v1363_v33 }
 0x148   : > { %v1016_v40 = vadd.f32 %v1460_v11, %v855_v37  ;;  %v858_v41 = vadd.f32 %v1365_v39, %v1813_v56 }
 0x14a   : > { %1088 = vst [vmem:[%s1819_s28 + $0x90] sm:$0xff] %v1016_v40  ;;  %v1019_v44 = vadd.f32 %v1461_v17, %v858_v41  ;;  %v1366_v45 = vpop.f32.mrb[40].mxu0  ;;  %v1468_v46 = vpop.f32.mrb[40].mxu1 }
 0x14b   : > { %v1048_v48 = vadd.f32 %v1468_v46, %v887_v42  ;;  %v1367_v49 = vpop.f32.mrb[41].mxu0  ;;  %v1039_v51 = vpop.f32.mrb[41].mxu1 }
 0x14c   : > { %1089 = vst [vmem:[%s1819_s28 + $0x98] sm:$0xff] %v1019_v44  ;;  %v1368_v53 = vadd.f32 %v1367_v49, %v1366_v45  ;;  %v1040_v26 = vadd.f32 %v1039_v51, %v879_v47  ;;  %v1369_v54 = vpop.f32.mrb[42].mxu0  ;;  %v1469_v57 = vpop.f32.mrb[42].mxu1 }
 0x14d   : > { %1096 = vst [vmem:[%s1819_s28 + $0xd0] sm:$0xff] %v1048_v48  ;;  %v1051_v14 = vadd.f32 %v1469_v57, %v890_v52  ;;  %v1370_v59 = vpop.f32.mrb[43].mxu0  ;;  %v1042_v60 = vpop.f32.mrb[43].mxu1 }
 0x14e   : > { %v863_v61 = vadd.f32 %v1368_v53, %v1813_v56  ;;  %1094 = vst [vmem:[%s1819_s28 + $0xc0] sm:$0xff] %v1040_v26  ;;  %v1371_v62 = vadd.f32 %v1370_v59, %v1369_v54  ;;  %v1043_v31 = vadd.f32 %v1042_v60, %v882_v58 }
 0x14f   : > { %1097 = vst [vmem:[%s1819_s28 + $0xd8] sm:$0xff] %v1051_v14 }
 0x150   : > { %v1024_v63 = vadd.f32 %v1023_v30, %v863_v61  ;;  %v866_v0 = vadd.f32 %v1371_v62, %v1813_v56  ;;  %1095 = vst [vmem:[%s1819_s28 + $0xc8] sm:$0xff] %v1043_v31 }
 0x152   : > { %1090 = vst [vmem:[%s1819_s28 + $0xa0] sm:$0xff] %v1024_v63  ;;  %v1027_v19 = vadd.f32 %v1026_v36, %v866_v0  ;;  %v1372_v2 = vpop.f32.mrb[44].mxu0  ;;  %v1472_v3 = vpop.f32.mrb[44].mxu1 }
 0x153   : > { %v1064_v5 = vadd.f32 %v1472_v3, %v903_v1  ;;  %v1373_v6 = vpop.f32.mrb[45].mxu0  ;;  %v1055_v7 = vpop.f32.mrb[45].mxu1 }
 0x154   : > { %1091 = vst [vmem:[%s1819_s28 + $0xa8] sm:$0xff] %v1027_v19  ;;  %v1374_v9 = vadd.f32 %v1373_v6, %v1372_v2  ;;  %v1056_v50 = vadd.f32 %v1055_v7, %v895_v4  ;;  %v1375_v10 = vpop.f32.mrb[46].mxu0  ;;  %v1473_v11 = vpop.f32.mrb[46].mxu1 }
 0x155   : > { %1100 = vst [vmem:[%s1819_s28 + $0xf0] sm:$0xff] %v1064_v5  ;;  %v1067_v38 = vadd.f32 %v1473_v11, %v906_v8  ;;  %v1376_v13 = vpop.f32.mrb[47].mxu0  ;;  %v1058_v15 = vpop.f32.mrb[47].mxu1 }
 0x156   : > { %v871_v16 = vadd.f32 %v1374_v9, %v1813_v56  ;;  %1098 = vst [vmem:[%s1819_s28 + $0xe0] sm:$0xff] %v1056_v50  ;;  %v1377_v17 = vadd.f32 %v1376_v13, %v1375_v10  ;;  %v1059_v55 = vadd.f32 %v1058_v15, %v898_v12 }
 0x157   : > { %1101 = vst [vmem:[%s1819_s28 + $0xf8] sm:$0xff] %v1067_v38 }
 0x158   : > { %v1032_v18 = vadd.f32 %v1855_v28, %v871_v16  ;;  %v874_v20 = vadd.f32 %v1377_v17, %v1813_v56  ;;  %1099 = vst [vmem:[%s1819_s28 + $0xe8] sm:$0xff] %v1059_v55 }
 0x15a   : > { %1092 = vst [vmem:[%s1819_s28 + $0xb0] sm:$0xff] %v1032_v18  ;;  %v1035_v21 = vadd.f32 %v1858_v34, %v874_v20 }
 0x15c   : > { %1093 = vst [vmem:[%s1819_s28 + $0xb8] sm:$0xff] %v1035_v21 }
 0x15d PF: > { %s13_s14 = sadd.s32 1, %s1625_s14   ;;  %s1911_s12 = smov %s1621_s13 }
 0x15e   : > { %p10_p5 = scmp.ge.s32.totalorder %s13_s14, 4   ;;  %s1912_s13 = smov %s1914_s15 }
 0x160   :  { %12 = sbr.rel (!%p10_p5) target bundleno = 2 (0x2), region = 68 }

</bundles_post_ra>
